<compile_context>
chip_gen: v5e
topology: v5e:2x2
jax: 0.10.0
libtpu: 0.0.40
codegen_flags: <defaults>
</compile_context>

<pallas_src>
import functools

import numpy as np
import jax
import jax.numpy as jnp
from jax.experimental import pallas as pl
from jax.experimental.pallas import tpu as pltpu

LN_EPS = 1e-5  # nn.LayerNorm default eps

CFG = dict(
    img_size=16, patch_size=4, in_chans=3,
    embed_dim=32, decoder_embed_dim=32, decoder_depth=2,
    decoder_num_heads=4, mlp_ratio=4.0,
)


# ----------------------------- in-kernel math ------------------------------ #
def _layer_norm(x, g, b):
    mu = jnp.mean(x, axis=-1, keepdims=True)
    var = jnp.mean(jnp.square(x - mu), axis=-1, keepdims=True)
    return (x - mu) * jax.lax.rsqrt(var + LN_EPS) * g + b


def _gelu_tanh(x):
    # tanh-approx GELU; |err| vs PyTorch's exact erf GELU < ~1e-3, and tanh
    # runs on the EUP slot instead of a long VALU polynomial chain.
    c = 0.7978845608028654  # sqrt(2/pi)
    return 0.5 * x * (1.0 + jnp.tanh(c * (x + 0.044715 * x * x * x)))


def _mm(a, b):
    # bf16 MXU operands, f32 accumulation.
    return jnp.dot(a.astype(jnp.bfloat16), b.astype(jnp.bfloat16),
                   preferred_element_type=jnp.float32)


# ------------------------------ fused kernel -------------------------------- #
def _fused_decoder_kernel(num_heads,
                          x_ref, bias_ref, pos_ref, emb_w_ref, emb_b_ref,
                          ln1g_ref, ln1b_ref, wqkv_ref, bqkv_ref,
                          wproj_ref, bproj_ref, ln2g_ref, ln2b_ref,
                          w1_ref, b1_ref, w2_ref, b2_ref,
                          normg_ref, normb_ref, predw_ref, predb_ref,
                          o_ref):
    f32 = jnp.float32
    bf16 = jnp.bfloat16
    N, D = pos_ref.shape
    BN = x_ref.shape[0]
    B = BN // N
    depth = wqkv_ref.shape[0]
    dh = D // num_heads
    scale = dh ** -0.5

    # decoder_embed + decoder_pos_embed
    x = _mm(x_ref[...], emb_w_ref[...]) + emb_b_ref[...]
    x = x + jnp.concatenate([pos_ref[...]] * B, axis=0)      # (BN, D), f32

    bias = bias_ref[...]            # (BN, BN) block-diag: 0 in-batch, -1e30 cross

    for d in range(depth):          # static unroll over decoder_depth
        # ---- multi-head self-attention (pre-norm) ----
        h = _layer_norm(x, ln1g_ref[d], ln1b_ref[d])
        qkv = _mm(h, wqkv_ref[d]) + bqkv_ref[d]               # (BN, 3D), f32
        wproj = wproj_ref[d]                                  # (D, D), f32
        attn = None
        for hi in range(num_heads):                           # static unroll
            q = qkv[:, hi * dh:(hi + 1) * dh]                 # (BN, dh)
            k = qkv[:, D + hi * dh:D + (hi + 1) * dh]
            v = qkv[:, 2 * D + hi * dh:2 * D + (hi + 1) * dh]
            s = jax.lax.dot_general(
                q.astype(bf16), k.astype(bf16),
                (((1,), (1,)), ((), ())),
                preferred_element_type=f32) * scale + bias    # (BN, BN)
            s = s - jnp.max(s, axis=-1, keepdims=True)
            p = jnp.exp(s)
            p = p * pl.reciprocal(jnp.sum(p, axis=-1, keepdims=True), approx=True)
            o = _mm(p, v)                                     # (BN, dh)
            # fold the output projection into the head loop (no lane concat)
            part = _mm(o, wproj[hi * dh:(hi + 1) * dh, :])    # (BN, D)
            attn = part if attn is None else attn + part
        x = x + attn + bproj_ref[d]

        # ---- MLP (pre-norm) ----
        h2 = _layer_norm(x, ln2g_ref[d], ln2b_ref[d])
        h2 = _mm(h2, w1_ref[d]) + b1_ref[d]
        h2 = _gelu_tanh(h2)
        h2 = _mm(h2, w2_ref[d]) + b2_ref[d]
        x = x + h2

    # decoder_norm + decoder_pred
    h = _layer_norm(x, normg_ref[...], normb_ref[...])
    pred = _mm(h, predw_ref[...]) + predb_ref[...]
    o_ref[...] = pred.astype(o_ref.dtype)


# --------------------------- pallas_call wrapper ----------------------------- #
def mae_decoder_forward(latent, params, cfg):
    B, N, E = latent.shape
    H = cfg["decoder_num_heads"]
    P = cfg["patch_size"] ** 2 * cfg["in_chans"]
    BN = B * N

    # Additive attention bias so tokens only attend within their batch element
    # after folding the batch into the row axis.
    bias = np.full((BN, BN), -1e30, np.float32)
    for b in range(B):
        bias[b * N:(b + 1) * N, b * N:(b + 1) * N] = 0.0
    bias = jnp.asarray(bias)

    blocks = params["blocks"]
    stack = lambda k: jnp.stack([blk[k] for blk in blocks], axis=0)

    args = (
        latent.reshape(BN, E), bias, params["pos"],
        params["embed_w"], params["embed_b"],
        stack("ln1_g"), stack("ln1_b"), stack("wqkv"), stack("bqkv"),
        stack("wproj"), stack("bproj"), stack("ln2_g"), stack("ln2_b"),
        stack("w1"), stack("b1"), stack("w2"), stack("b2"),
        params["norm_g"], params["norm_b"], params["pred_w"], params["pred_b"],
    )

    out = pl.pallas_call(
        functools.partial(_fused_decoder_kernel, H),
        out_shape=jax.ShapeDtypeStruct((BN, P), latent.dtype),
        in_specs=[pl.BlockSpec(memory_space=pltpu.MemorySpace.VMEM) for _ in args],
        out_specs=pl.BlockSpec(memory_space=pltpu.MemorySpace.VMEM),
    )(*args)
    # TODO(synk): on v7x a grid=(B,) "parallel" variant (one batch element per
    # TensorCore) would use both cores; kept single-program here since v5e/v6e
    # have one TensorCore and the forward is launch/overhead-bound.
    return out.reshape(B, N, P)


# ------------------------------ pure-JAX reference -------------------------- #
def reference_forward(latent, params, cfg):
    hp = jax.lax.Precision.HIGHEST
    dot = functools.partial(jnp.dot, precision=hp)
    D = cfg["decoder_embed_dim"]
    H = cfg["decoder_num_heads"]
    dh = D // H

    x = dot(latent, params["embed_w"]) + params["embed_b"] + params["pos"][None]
    for blk in params["blocks"]:
        h = _layer_norm(x, blk["ln1_g"], blk["ln1_b"])
        qkv = dot(h, blk["wqkv"]) + blk["bqkv"]                        # (B, N, 3D)
        B, N, _ = qkv.shape
        qkv = qkv.reshape(B, N, 3, H, dh).transpose(2, 0, 3, 1, 4)     # (3, B, H, N, dh)
        q, k, v = qkv[0], qkv[1], qkv[2]
        s = jnp.einsum("bhnd,bhmd->bhnm", q, k, precision=hp) * (dh ** -0.5)
        p = jax.nn.softmax(s, axis=-1)
        o = jnp.einsum("bhnm,bhmd->bhnd", p, v, precision=hp)
        o = o.transpose(0, 2, 1, 3).reshape(B, N, D)
        x = x + dot(o, blk["wproj"]) + blk["bproj"]
        h2 = _layer_norm(x, blk["ln2_g"], blk["ln2_b"])
        h2 = jax.nn.gelu(dot(h2, blk["w1"]) + blk["b1"], approximate=False)
        x = x + dot(h2, blk["w2"]) + blk["b2"]
    x = _layer_norm(x, params["norm_g"], params["norm_b"])
    return dot(x, params["pred_w"]) + params["pred_b"]


# ------------------------------ param init ---------------------------------- #
def init_params(key, cfg):
    E = cfg["embed_dim"]
    D = cfg["decoder_embed_dim"]
    hidden = int(D * cfg["mlp_ratio"])
    N = (cfg["img_size"] // cfg["patch_size"]) ** 2
    P = cfg["patch_size"] ** 2 * cfg["in_chans"]

    keys = jax.random.split(key, 3 + cfg["decoder_depth"])

    def w(k, shape, scale=0.02):
        return (scale * jax.random.normal(k, shape)).astype(jnp.float32)

    params = dict(
        embed_w=w(keys[0], (E, D)), embed_b=jnp.zeros((1, D), jnp.float32),
        pos=w(keys[1], (N, D)),
        norm_g=jnp.ones((1, D), jnp.float32), norm_b=jnp.zeros((1, D), jnp.float32),
        pred_w=w(keys[2], (D, P)), pred_b=jnp.zeros((1, P), jnp.float32),
        blocks=[],
    )
    for i in range(cfg["decoder_depth"]):
        bk = jax.random.split(keys[3 + i], 8)
        params["blocks"].append(dict(
            ln1_g=1.0 + w(bk[0], (1, D)), ln1_b=w(bk[1], (1, D)),
            wqkv=w(bk[2], (D, 3 * D)), bqkv=w(bk[3], (1, 3 * D)),
            wproj=w(bk[4], (D, D)), bproj=w(bk[5], (1, D)),
            ln2_g=1.0 + w(bk[6], (1, D)), ln2_b=jnp.zeros((1, D), jnp.float32),
            w1=w(bk[7], (D, hidden)), b1=jnp.zeros((1, hidden), jnp.float32),
            w2=w(jax.random.fold_in(bk[7], 1), (hidden, D)),
            b2=jnp.zeros((1, D), jnp.float32),
        ))
    return params


if __name__ == "__main__":
    key = jax.random.PRNGKey(0)
    k_param, k_x = jax.random.split(key)
    params = init_params(k_param, CFG)

    B = 2
    N = (CFG["img_size"] // CFG["patch_size"]) ** 2          # 16 patches
    E = CFG["embed_dim"]                                      # 32
    latent = jax.random.normal(k_x, (B, N, E), jnp.float32)   # decoder input tokens

    pred = jax.block_until_ready(mae_decoder_forward(latent, params, CFG))
    ref = jax.block_until_ready(reference_forward(latent, params, CFG))

    P = CFG["patch_size"] ** 2 * CFG["in_chans"]              # 48
    assert pred.shape == (B, N, P), pred.shape
    err = float(jnp.max(jnp.abs(pred - ref)))
    assert np.isfinite(err) and err < 1e-2, f"max abs err {err}"
    print("KERNEL_OK")
</pallas_src>

<mosaic_0001>
module attributes {stable_mosaic.version = 11 : i64} {
  func.func @_fused_decoder_kernel(%arg0: memref<32x32xf32, #tpu.memory_space<vmem>>, %arg1: memref<32x32xf32, #tpu.memory_space<vmem>>, %arg2: memref<16x32xf32, #tpu.memory_space<vmem>>, %arg3: memref<32x32xf32, #tpu.memory_space<vmem>>, %arg4: memref<1x32xf32, #tpu.memory_space<vmem>>, %arg5: memref<2x1x32xf32, #tpu.memory_space<vmem>>, %arg6: memref<2x1x32xf32, #tpu.memory_space<vmem>>, %arg7: memref<2x32x96xf32, #tpu.memory_space<vmem>>, %arg8: memref<2x1x96xf32, #tpu.memory_space<vmem>>, %arg9: memref<2x32x32xf32, #tpu.memory_space<vmem>>, %arg10: memref<2x1x32xf32, #tpu.memory_space<vmem>>, %arg11: memref<2x1x32xf32, #tpu.memory_space<vmem>>, %arg12: memref<2x1x32xf32, #tpu.memory_space<vmem>>, %arg13: memref<2x32x128xf32, #tpu.memory_space<vmem>>, %arg14: memref<2x1x128xf32, #tpu.memory_space<vmem>>, %arg15: memref<2x128x32xf32, #tpu.memory_space<vmem>>, %arg16: memref<2x1x32xf32, #tpu.memory_space<vmem>>, %arg17: memref<1x32xf32, #tpu.memory_space<vmem>>, %arg18: memref<1x32xf32, #tpu.memory_space<vmem>>, %arg19: memref<32x48xf32, #tpu.memory_space<vmem>>, %arg20: memref<1x48xf32, #tpu.memory_space<vmem>>, %arg21: memref<32x48xf32, #tpu.memory_space<vmem>>) attributes {dimension_semantics = [], scalar_prefetch = 0 : i64, scratch_operands = 0 : i64, tpu.core_type = #tpu.core_type<tc>} {
    %c0 = arith.constant 0 : index
    %c0_0 = arith.constant 0 : index
    %0 = vector.load %arg0[%c0, %c0_0] : memref<32x32xf32, #tpu.memory_space<vmem>>, vector<32x32xf32>
    %c0_1 = arith.constant 0 : index
    %c0_2 = arith.constant 0 : index
    %1 = vector.load %arg3[%c0_1, %c0_2] : memref<32x32xf32, #tpu.memory_space<vmem>>, vector<32x32xf32>
    %2 = arith.truncf %0 : vector<32x32xf32> to vector<32x32xbf16>
    %3 = arith.truncf %1 : vector<32x32xf32> to vector<32x32xbf16>
    %cst = arith.constant dense<0.000000e+00> : vector<32x32xf32>
    %4 = tpu.matmul %2, %3, %cst {dimension_numbers = #tpu.dot_dimension_numbers<[1], [0], [0], [1], [0, 0, 1, 1], [], []>} : vector<32x32xbf16>, vector<32x32xbf16>, vector<32x32xf32> -> vector<32x32xf32>
    %c0_3 = arith.constant 0 : index
    %c0_4 = arith.constant 0 : index
    %5 = vector.load %arg4[%c0_3, %c0_4] : memref<1x32xf32, #tpu.memory_space<vmem>>, vector<1x32xf32>
    %6 = vector.broadcast %5 : vector<1x32xf32> to vector<32x32xf32>
    %7 = arith.addf %4, %6 : vector<32x32xf32>
    %c0_5 = arith.constant 0 : index
    %c0_6 = arith.constant 0 : index
    %8 = vector.load %arg2[%c0_5, %c0_6] : memref<16x32xf32, #tpu.memory_space<vmem>>, vector<16x32xf32>
    %9 = tpu.concatenate %8, %8 in 0 : vector<16x32xf32>, vector<16x32xf32> -> vector<32x32xf32>
    %10 = arith.addf %7, %9 : vector<32x32xf32>
    %c0_7 = arith.constant 0 : index
    %c0_8 = arith.constant 0 : index
    %11 = vector.load %arg1[%c0_7, %c0_8] : memref<32x32xf32, #tpu.memory_space<vmem>>, vector<32x32xf32>
    %c0_9 = arith.constant 0 : index
    %c0_10 = arith.constant 0 : index
    %c0_11 = arith.constant 0 : index
    %12 = vector.load %arg5[%c0_9, %c0_10, %c0_11] : memref<2x1x32xf32, #tpu.memory_space<vmem>>, vector<1x1x32xf32>
    %13 = vector.shape_cast %12 : vector<1x1x32xf32> to vector<1x32xf32>
    %c0_12 = arith.constant 0 : index
    %c0_13 = arith.constant 0 : index
    %c0_14 = arith.constant 0 : index
    %14 = vector.load %arg6[%c0_12, %c0_13, %c0_14] : memref<2x1x32xf32, #tpu.memory_space<vmem>>, vector<1x1x32xf32>
    %15 = vector.shape_cast %14 : vector<1x1x32xf32> to vector<1x32xf32>
    %cst_15 = arith.constant dense<0.000000e+00> : vector<32xf32>
    %16 = vector.multi_reduction <add>, %10, %cst_15 [1] : vector<32x32xf32> to vector<32xf32>
    %17 = vector.shape_cast %16 : vector<32xf32> to vector<32x1xf32>
    %cst_16 = arith.constant 3.200000e+01 : f32
    %18 = vector.broadcast %cst_16 : f32 to vector<32x1xf32>
    %19 = arith.divf %17, %18 : vector<32x1xf32>
    %20 = vector.broadcast %19 : vector<32x1xf32> to vector<32x32xf32>
    %21 = arith.subf %10, %20 : vector<32x32xf32>
    %22 = arith.mulf %21, %21 : vector<32x32xf32>
    %cst_17 = arith.constant dense<0.000000e+00> : vector<32xf32>
    %23 = vector.multi_reduction <add>, %22, %cst_17 [1] : vector<32x32xf32> to vector<32xf32>
    %24 = vector.shape_cast %23 : vector<32xf32> to vector<32x1xf32>
    %cst_18 = arith.constant 3.200000e+01 : f32
    %25 = vector.broadcast %cst_18 : f32 to vector<32x1xf32>
    %26 = arith.divf %24, %25 : vector<32x1xf32>
    %27 = vector.broadcast %19 : vector<32x1xf32> to vector<32x32xf32>
    %28 = arith.subf %10, %27 : vector<32x32xf32>
    %cst_19 = arith.constant 9.99999974E-6 : f32
    %29 = vector.broadcast %cst_19 : f32 to vector<32x1xf32>
    %30 = arith.addf %26, %29 : vector<32x1xf32>
    %31 = math.rsqrt %30 : vector<32x1xf32>
    %32 = vector.broadcast %31 : vector<32x1xf32> to vector<32x32xf32>
    %33 = arith.mulf %28, %32 : vector<32x32xf32>
    %34 = vector.broadcast %13 : vector<1x32xf32> to vector<32x32xf32>
    %35 = arith.mulf %33, %34 : vector<32x32xf32>
    %36 = vector.broadcast %15 : vector<1x32xf32> to vector<32x32xf32>
    %37 = arith.addf %35, %36 : vector<32x32xf32>
    %c0_20 = arith.constant 0 : index
    %c0_21 = arith.constant 0 : index
    %c0_22 = arith.constant 0 : index
    %38 = vector.load %arg7[%c0_20, %c0_21, %c0_22] : memref<2x32x96xf32, #tpu.memory_space<vmem>>, vector<1x32x96xf32>
    %39 = vector.shape_cast %38 : vector<1x32x96xf32> to vector<32x96xf32>
    %40 = arith.truncf %37 : vector<32x32xf32> to vector<32x32xbf16>
    %41 = arith.truncf %39 : vector<32x96xf32> to vector<32x96xbf16>
    %cst_23 = arith.constant dense<0.000000e+00> : vector<32x96xf32>
    %42 = tpu.matmul %40, %41, %cst_23 {dimension_numbers = #tpu.dot_dimension_numbers<[1], [0], [0], [1], [0, 0, 1, 1], [], []>} : vector<32x32xbf16>, vector<32x96xbf16>, vector<32x96xf32> -> vector<32x96xf32>
    %c0_24 = arith.constant 0 : index
    %c0_25 = arith.constant 0 : index
    %c0_26 = arith.constant 0 : index
    %43 = vector.load %arg8[%c0_24, %c0_25, %c0_26] : memref<2x1x96xf32, #tpu.memory_space<vmem>>, vector<1x1x96xf32>
    %44 = vector.shape_cast %43 : vector<1x1x96xf32> to vector<1x96xf32>
    %45 = vector.broadcast %44 : vector<1x96xf32> to vector<32x96xf32>
    %46 = arith.addf %42, %45 : vector<32x96xf32>
    %c0_27 = arith.constant 0 : index
    %c0_28 = arith.constant 0 : index
    %c0_29 = arith.constant 0 : index
    %47 = vector.load %arg9[%c0_27, %c0_28, %c0_29] : memref<2x32x32xf32, #tpu.memory_space<vmem>>, vector<1x32x32xf32>
    %48 = vector.shape_cast %47 : vector<1x32x32xf32> to vector<32x32xf32>
    %49 = vector.extract_strided_slice %46 {offsets = [0, 0], sizes = [32, 8], strides = [1, 1]} : vector<32x96xf32> to vector<32x8xf32>
    %50 = vector.extract_strided_slice %46 {offsets = [0, 32], sizes = [32, 8], strides = [1, 1]} : vector<32x96xf32> to vector<32x8xf32>
    %51 = vector.extract_strided_slice %46 {offsets = [0, 64], sizes = [32, 8], strides = [1, 1]} : vector<32x96xf32> to vector<32x8xf32>
    %52 = arith.truncf %49 : vector<32x8xf32> to vector<32x8xbf16>
    %53 = arith.truncf %50 : vector<32x8xf32> to vector<32x8xbf16>
    %cst_30 = arith.constant dense<0.000000e+00> : vector<32x32xf32>
    %54 = tpu.matmul %52, %53, %cst_30 {dimension_numbers = #tpu.dot_dimension_numbers<[1], [1], [0], [0], [0, 0, 1, 0], [], []>} : vector<32x8xbf16>, vector<32x8xbf16>, vector<32x32xf32> -> vector<32x32xf32>
    %cst_31 = arith.constant 0.353553385 : f32
    %55 = vector.broadcast %cst_31 : f32 to vector<32x32xf32>
    %56 = arith.mulf %54, %55 : vector<32x32xf32>
    %57 = arith.addf %56, %11 : vector<32x32xf32>
    %cst_32 = arith.constant dense<0xFF800000> : vector<32xf32>
    %58 = vector.multi_reduction <maximumf>, %57, %cst_32 [1] : vector<32x32xf32> to vector<32xf32>
    %59 = vector.shape_cast %58 : vector<32xf32> to vector<32x1xf32>
    %60 = vector.broadcast %59 : vector<32x1xf32> to vector<32x32xf32>
    %61 = arith.subf %57, %60 : vector<32x32xf32>
    %62 = math.exp %61 : vector<32x32xf32>
    %cst_33 = arith.constant dense<0.000000e+00> : vector<32xf32>
    %63 = vector.multi_reduction <add>, %62, %cst_33 [1] : vector<32x32xf32> to vector<32xf32>
    %64 = vector.shape_cast %63 : vector<32xf32> to vector<32x1xf32>
    %65 = tpu.reciprocal %64 {approx = true} : vector<32x1xf32> -> vector<32x1xf32>
    %66 = vector.broadcast %65 : vector<32x1xf32> to vector<32x32xf32>
    %67 = arith.mulf %62, %66 : vector<32x32xf32>
    %68 = arith.truncf %67 : vector<32x32xf32> to vector<32x32xbf16>
    %69 = arith.truncf %51 : vector<32x8xf32> to vector<32x8xbf16>
    %cst_34 = arith.constant dense<0.000000e+00> : vector<32x8xf32>
    %70 = tpu.matmul %68, %69, %cst_34 {dimension_numbers = #tpu.dot_dimension_numbers<[1], [0], [0], [1], [0, 0, 1, 1], [], []>} : vector<32x32xbf16>, vector<32x8xbf16>, vector<32x8xf32> -> vector<32x8xf32>
    %71 = vector.extract_strided_slice %48 {offsets = [0, 0], sizes = [8, 32], strides = [1, 1]} : vector<32x32xf32> to vector<8x32xf32>
    %72 = arith.truncf %70 : vector<32x8xf32> to vector<32x8xbf16>
    %73 = arith.truncf %71 : vector<8x32xf32> to vector<8x32xbf16>
    %cst_35 = arith.constant dense<0.000000e+00> : vector<32x32xf32>
    %74 = tpu.matmul %72, %73, %cst_35 {dimension_numbers = #tpu.dot_dimension_numbers<[1], [0], [0], [1], [0, 0, 1, 1], [], []>} : vector<32x8xbf16>, vector<8x32xbf16>, vector<32x32xf32> -> vector<32x32xf32>
    %75 = vector.extract_strided_slice %46 {offsets = [0, 8], sizes = [32, 8], strides = [1, 1]} : vector<32x96xf32> to vector<32x8xf32>
    %76 = vector.extract_strided_slice %46 {offsets = [0, 40], sizes = [32, 8], strides = [1, 1]} : vector<32x96xf32> to vector<32x8xf32>
    %77 = vector.extract_strided_slice %46 {offsets = [0, 72], sizes = [32, 8], strides = [1, 1]} : vector<32x96xf32> to vector<32x8xf32>
    %78 = arith.truncf %75 : vector<32x8xf32> to vector<32x8xbf16>
    %79 = arith.truncf %76 : vector<32x8xf32> to vector<32x8xbf16>
    %cst_36 = arith.constant dense<0.000000e+00> : vector<32x32xf32>
    %80 = tpu.matmul %78, %79, %cst_36 {dimension_numbers = #tpu.dot_dimension_numbers<[1], [1], [0], [0], [0, 0, 1, 0], [], []>} : vector<32x8xbf16>, vector<32x8xbf16>, vector<32x32xf32> -> vector<32x32xf32>
    %cst_37 = arith.constant 0.353553385 : f32
    %81 = vector.broadcast %cst_37 : f32 to vector<32x32xf32>
    %82 = arith.mulf %80, %81 : vector<32x32xf32>
    %83 = arith.addf %82, %11 : vector<32x32xf32>
    %cst_38 = arith.constant dense<0xFF800000> : vector<32xf32>
    %84 = vector.multi_reduction <maximumf>, %83, %cst_38 [1] : vector<32x32xf32> to vector<32xf32>
    %85 = vector.shape_cast %84 : vector<32xf32> to vector<32x1xf32>
    %86 = vector.broadcast %85 : vector<32x1xf32> to vector<32x32xf32>
    %87 = arith.subf %83, %86 : vector<32x32xf32>
    %88 = math.exp %87 : vector<32x32xf32>
    %cst_39 = arith.constant dense<0.000000e+00> : vector<32xf32>
    %89 = vector.multi_reduction <add>, %88, %cst_39 [1] : vector<32x32xf32> to vector<32xf32>
    %90 = vector.shape_cast %89 : vector<32xf32> to vector<32x1xf32>
    %91 = tpu.reciprocal %90 {approx = true} : vector<32x1xf32> -> vector<32x1xf32>
    %92 = vector.broadcast %91 : vector<32x1xf32> to vector<32x32xf32>
    %93 = arith.mulf %88, %92 : vector<32x32xf32>
    %94 = arith.truncf %93 : vector<32x32xf32> to vector<32x32xbf16>
    %95 = arith.truncf %77 : vector<32x8xf32> to vector<32x8xbf16>
    %cst_40 = arith.constant dense<0.000000e+00> : vector<32x8xf32>
    %96 = tpu.matmul %94, %95, %cst_40 {dimension_numbers = #tpu.dot_dimension_numbers<[1], [0], [0], [1], [0, 0, 1, 1], [], []>} : vector<32x32xbf16>, vector<32x8xbf16>, vector<32x8xf32> -> vector<32x8xf32>
    %97 = vector.extract_strided_slice %48 {offsets = [8, 0], sizes = [8, 32], strides = [1, 1]} : vector<32x32xf32> to vector<8x32xf32>
    %98 = arith.truncf %96 : vector<32x8xf32> to vector<32x8xbf16>
    %99 = arith.truncf %97 : vector<8x32xf32> to vector<8x32xbf16>
    %cst_41 = arith.constant dense<0.000000e+00> : vector<32x32xf32>
    %100 = tpu.matmul %98, %99, %cst_41 {dimension_numbers = #tpu.dot_dimension_numbers<[1], [0], [0], [1], [0, 0, 1, 1], [], []>} : vector<32x8xbf16>, vector<8x32xbf16>, vector<32x32xf32> -> vector<32x32xf32>
    %101 = arith.addf %74, %100 : vector<32x32xf32>
    %102 = vector.extract_strided_slice %46 {offsets = [0, 16], sizes = [32, 8], strides = [1, 1]} : vector<32x96xf32> to vector<32x8xf32>
    %103 = vector.extract_strided_slice %46 {offsets = [0, 48], sizes = [32, 8], strides = [1, 1]} : vector<32x96xf32> to vector<32x8xf32>
    %104 = vector.extract_strided_slice %46 {offsets = [0, 80], sizes = [32, 8], strides = [1, 1]} : vector<32x96xf32> to vector<32x8xf32>
    %105 = arith.truncf %102 : vector<32x8xf32> to vector<32x8xbf16>
    %106 = arith.truncf %103 : vector<32x8xf32> to vector<32x8xbf16>
    %cst_42 = arith.constant dense<0.000000e+00> : vector<32x32xf32>
    %107 = tpu.matmul %105, %106, %cst_42 {dimension_numbers = #tpu.dot_dimension_numbers<[1], [1], [0], [0], [0, 0, 1, 0], [], []>} : vector<32x8xbf16>, vector<32x8xbf16>, vector<32x32xf32> -> vector<32x32xf32>
    %cst_43 = arith.constant 0.353553385 : f32
    %108 = vector.broadcast %cst_43 : f32 to vector<32x32xf32>
    %109 = arith.mulf %107, %108 : vector<32x32xf32>
    %110 = arith.addf %109, %11 : vector<32x32xf32>
    %cst_44 = arith.constant dense<0xFF800000> : vector<32xf32>
    %111 = vector.multi_reduction <maximumf>, %110, %cst_44 [1] : vector<32x32xf32> to vector<32xf32>
    %112 = vector.shape_cast %111 : vector<32xf32> to vector<32x1xf32>
    %113 = vector.broadcast %112 : vector<32x1xf32> to vector<32x32xf32>
    %114 = arith.subf %110, %113 : vector<32x32xf32>
    %115 = math.exp %114 : vector<32x32xf32>
    %cst_45 = arith.constant dense<0.000000e+00> : vector<32xf32>
    %116 = vector.multi_reduction <add>, %115, %cst_45 [1] : vector<32x32xf32> to vector<32xf32>
    %117 = vector.shape_cast %116 : vector<32xf32> to vector<32x1xf32>
    %118 = tpu.reciprocal %117 {approx = true} : vector<32x1xf32> -> vector<32x1xf32>
    %119 = vector.broadcast %118 : vector<32x1xf32> to vector<32x32xf32>
    %120 = arith.mulf %115, %119 : vector<32x32xf32>
    %121 = arith.truncf %120 : vector<32x32xf32> to vector<32x32xbf16>
    %122 = arith.truncf %104 : vector<32x8xf32> to vector<32x8xbf16>
    %cst_46 = arith.constant dense<0.000000e+00> : vector<32x8xf32>
    %123 = tpu.matmul %121, %122, %cst_46 {dimension_numbers = #tpu.dot_dimension_numbers<[1], [0], [0], [1], [0, 0, 1, 1], [], []>} : vector<32x32xbf16>, vector<32x8xbf16>, vector<32x8xf32> -> vector<32x8xf32>
    %124 = vector.extract_strided_slice %48 {offsets = [16, 0], sizes = [8, 32], strides = [1, 1]} : vector<32x32xf32> to vector<8x32xf32>
    %125 = arith.truncf %123 : vector<32x8xf32> to vector<32x8xbf16>
    %126 = arith.truncf %124 : vector<8x32xf32> to vector<8x32xbf16>
    %cst_47 = arith.constant dense<0.000000e+00> : vector<32x32xf32>
    %127 = tpu.matmul %125, %126, %cst_47 {dimension_numbers = #tpu.dot_dimension_numbers<[1], [0], [0], [1], [0, 0, 1, 1], [], []>} : vector<32x8xbf16>, vector<8x32xbf16>, vector<32x32xf32> -> vector<32x32xf32>
    %128 = arith.addf %101, %127 : vector<32x32xf32>
    %129 = vector.extract_strided_slice %46 {offsets = [0, 24], sizes = [32, 8], strides = [1, 1]} : vector<32x96xf32> to vector<32x8xf32>
    %130 = vector.extract_strided_slice %46 {offsets = [0, 56], sizes = [32, 8], strides = [1, 1]} : vector<32x96xf32> to vector<32x8xf32>
    %131 = vector.extract_strided_slice %46 {offsets = [0, 88], sizes = [32, 8], strides = [1, 1]} : vector<32x96xf32> to vector<32x8xf32>
    %132 = arith.truncf %129 : vector<32x8xf32> to vector<32x8xbf16>
    %133 = arith.truncf %130 : vector<32x8xf32> to vector<32x8xbf16>
    %cst_48 = arith.constant dense<0.000000e+00> : vector<32x32xf32>
    %134 = tpu.matmul %132, %133, %cst_48 {dimension_numbers = #tpu.dot_dimension_numbers<[1], [1], [0], [0], [0, 0, 1, 0], [], []>} : vector<32x8xbf16>, vector<32x8xbf16>, vector<32x32xf32> -> vector<32x32xf32>
    %cst_49 = arith.constant 0.353553385 : f32
    %135 = vector.broadcast %cst_49 : f32 to vector<32x32xf32>
    %136 = arith.mulf %134, %135 : vector<32x32xf32>
    %137 = arith.addf %136, %11 : vector<32x32xf32>
    %cst_50 = arith.constant dense<0xFF800000> : vector<32xf32>
    %138 = vector.multi_reduction <maximumf>, %137, %cst_50 [1] : vector<32x32xf32> to vector<32xf32>
    %139 = vector.shape_cast %138 : vector<32xf32> to vector<32x1xf32>
    %140 = vector.broadcast %139 : vector<32x1xf32> to vector<32x32xf32>
    %141 = arith.subf %137, %140 : vector<32x32xf32>
    %142 = math.exp %141 : vector<32x32xf32>
    %cst_51 = arith.constant dense<0.000000e+00> : vector<32xf32>
    %143 = vector.multi_reduction <add>, %142, %cst_51 [1] : vector<32x32xf32> to vector<32xf32>
    %144 = vector.shape_cast %143 : vector<32xf32> to vector<32x1xf32>
    %145 = tpu.reciprocal %144 {approx = true} : vector<32x1xf32> -> vector<32x1xf32>
    %146 = vector.broadcast %145 : vector<32x1xf32> to vector<32x32xf32>
    %147 = arith.mulf %142, %146 : vector<32x32xf32>
    %148 = arith.truncf %147 : vector<32x32xf32> to vector<32x32xbf16>
    %149 = arith.truncf %131 : vector<32x8xf32> to vector<32x8xbf16>
    %cst_52 = arith.constant dense<0.000000e+00> : vector<32x8xf32>
    %150 = tpu.matmul %148, %149, %cst_52 {dimension_numbers = #tpu.dot_dimension_numbers<[1], [0], [0], [1], [0, 0, 1, 1], [], []>} : vector<32x32xbf16>, vector<32x8xbf16>, vector<32x8xf32> -> vector<32x8xf32>
    %151 = vector.extract_strided_slice %48 {offsets = [24, 0], sizes = [8, 32], strides = [1, 1]} : vector<32x32xf32> to vector<8x32xf32>
    %152 = arith.truncf %150 : vector<32x8xf32> to vector<32x8xbf16>
    %153 = arith.truncf %151 : vector<8x32xf32> to vector<8x32xbf16>
    %cst_53 = arith.constant dense<0.000000e+00> : vector<32x32xf32>
    %154 = tpu.matmul %152, %153, %cst_53 {dimension_numbers = #tpu.dot_dimension_numbers<[1], [0], [0], [1], [0, 0, 1, 1], [], []>} : vector<32x8xbf16>, vector<8x32xbf16>, vector<32x32xf32> -> vector<32x32xf32>
    %155 = arith.addf %128, %154 : vector<32x32xf32>
    %156 = arith.addf %10, %155 : vector<32x32xf32>
    %c0_54 = arith.constant 0 : index
    %c0_55 = arith.constant 0 : index
    %c0_56 = arith.constant 0 : index
    %157 = vector.load %arg10[%c0_54, %c0_55, %c0_56] : memref<2x1x32xf32, #tpu.memory_space<vmem>>, vector<1x1x32xf32>
    %158 = vector.shape_cast %157 : vector<1x1x32xf32> to vector<1x32xf32>
    %159 = vector.broadcast %158 : vector<1x32xf32> to vector<32x32xf32>
    %160 = arith.addf %156, %159 : vector<32x32xf32>
    %c0_57 = arith.constant 0 : index
    %c0_58 = arith.constant 0 : index
    %c0_59 = arith.constant 0 : index
    %161 = vector.load %arg11[%c0_57, %c0_58, %c0_59] : memref<2x1x32xf32, #tpu.memory_space<vmem>>, vector<1x1x32xf32>
    %162 = vector.shape_cast %161 : vector<1x1x32xf32> to vector<1x32xf32>
    %c0_60 = arith.constant 0 : index
    %c0_61 = arith.constant 0 : index
    %c0_62 = arith.constant 0 : index
    %163 = vector.load %arg12[%c0_60, %c0_61, %c0_62] : memref<2x1x32xf32, #tpu.memory_space<vmem>>, vector<1x1x32xf32>
    %164 = vector.shape_cast %163 : vector<1x1x32xf32> to vector<1x32xf32>
    %cst_63 = arith.constant dense<0.000000e+00> : vector<32xf32>
    %165 = vector.multi_reduction <add>, %160, %cst_63 [1] : vector<32x32xf32> to vector<32xf32>
    %166 = vector.shape_cast %165 : vector<32xf32> to vector<32x1xf32>
    %cst_64 = arith.constant 3.200000e+01 : f32
    %167 = vector.broadcast %cst_64 : f32 to vector<32x1xf32>
    %168 = arith.divf %166, %167 : vector<32x1xf32>
    %169 = vector.broadcast %168 : vector<32x1xf32> to vector<32x32xf32>
    %170 = arith.subf %160, %169 : vector<32x32xf32>
    %171 = arith.mulf %170, %170 : vector<32x32xf32>
    %cst_65 = arith.constant dense<0.000000e+00> : vector<32xf32>
    %172 = vector.multi_reduction <add>, %171, %cst_65 [1] : vector<32x32xf32> to vector<32xf32>
    %173 = vector.shape_cast %172 : vector<32xf32> to vector<32x1xf32>
    %cst_66 = arith.constant 3.200000e+01 : f32
    %174 = vector.broadcast %cst_66 : f32 to vector<32x1xf32>
    %175 = arith.divf %173, %174 : vector<32x1xf32>
    %176 = vector.broadcast %168 : vector<32x1xf32> to vector<32x32xf32>
    %177 = arith.subf %160, %176 : vector<32x32xf32>
    %cst_67 = arith.constant 9.99999974E-6 : f32
    %178 = vector.broadcast %cst_67 : f32 to vector<32x1xf32>
    %179 = arith.addf %175, %178 : vector<32x1xf32>
    %180 = math.rsqrt %179 : vector<32x1xf32>
    %181 = vector.broadcast %180 : vector<32x1xf32> to vector<32x32xf32>
    %182 = arith.mulf %177, %181 : vector<32x32xf32>
    %183 = vector.broadcast %162 : vector<1x32xf32> to vector<32x32xf32>
    %184 = arith.mulf %182, %183 : vector<32x32xf32>
    %185 = vector.broadcast %164 : vector<1x32xf32> to vector<32x32xf32>
    %186 = arith.addf %184, %185 : vector<32x32xf32>
    %c0_68 = arith.constant 0 : index
    %c0_69 = arith.constant 0 : index
    %c0_70 = arith.constant 0 : index
    %187 = vector.load %arg13[%c0_68, %c0_69, %c0_70] : memref<2x32x128xf32, #tpu.memory_space<vmem>>, vector<1x32x128xf32>
    %188 = vector.shape_cast %187 : vector<1x32x128xf32> to vector<32x128xf32>
    %189 = arith.truncf %186 : vector<32x32xf32> to vector<32x32xbf16>
    %190 = arith.truncf %188 : vector<32x128xf32> to vector<32x128xbf16>
    %cst_71 = arith.constant dense<0.000000e+00> : vector<32x128xf32>
    %191 = tpu.matmul %189, %190, %cst_71 {dimension_numbers = #tpu.dot_dimension_numbers<[1], [0], [0], [1], [0, 0, 1, 1], [], []>} : vector<32x32xbf16>, vector<32x128xbf16>, vector<32x128xf32> -> vector<32x128xf32>
    %c0_72 = arith.constant 0 : index
    %c0_73 = arith.constant 0 : index
    %c0_74 = arith.constant 0 : index
    %192 = vector.load %arg14[%c0_72, %c0_73, %c0_74] : memref<2x1x128xf32, #tpu.memory_space<vmem>>, vector<1x1x128xf32>
    %193 = vector.shape_cast %192 : vector<1x1x128xf32> to vector<1x128xf32>
    %194 = vector.broadcast %193 : vector<1x128xf32> to vector<32x128xf32>
    %195 = arith.addf %191, %194 : vector<32x128xf32>
    %cst_75 = arith.constant 5.000000e-01 : f32
    %196 = vector.broadcast %cst_75 : f32 to vector<32x128xf32>
    %197 = arith.mulf %196, %195 : vector<32x128xf32>
    %cst_76 = arith.constant 4.471500e-02 : f32
    %198 = vector.broadcast %cst_76 : f32 to vector<32x128xf32>
    %199 = arith.mulf %198, %195 : vector<32x128xf32>
    %200 = arith.mulf %199, %195 : vector<32x128xf32>
    %201 = arith.mulf %200, %195 : vector<32x128xf32>
    %202 = arith.addf %195, %201 : vector<32x128xf32>
    %cst_77 = arith.constant 0.797884583 : f32
    %203 = vector.broadcast %cst_77 : f32 to vector<32x128xf32>
    %204 = arith.mulf %203, %202 : vector<32x128xf32>
    %205 = math.tanh %204 : vector<32x128xf32>
    %cst_78 = arith.constant 1.000000e+00 : f32
    %206 = vector.broadcast %cst_78 : f32 to vector<32x128xf32>
    %207 = arith.addf %206, %205 : vector<32x128xf32>
    %208 = arith.mulf %197, %207 : vector<32x128xf32>
    %c0_79 = arith.constant 0 : index
    %c0_80 = arith.constant 0 : index
    %c0_81 = arith.constant 0 : index
    %209 = vector.load %arg15[%c0_79, %c0_80, %c0_81] : memref<2x128x32xf32, #tpu.memory_space<vmem>>, vector<1x128x32xf32>
    %210 = vector.shape_cast %209 : vector<1x128x32xf32> to vector<128x32xf32>
    %211 = arith.truncf %208 : vector<32x128xf32> to vector<32x128xbf16>
    %212 = arith.truncf %210 : vector<128x32xf32> to vector<128x32xbf16>
    %cst_82 = arith.constant dense<0.000000e+00> : vector<32x32xf32>
    %213 = tpu.matmul %211, %212, %cst_82 {dimension_numbers = #tpu.dot_dimension_numbers<[1], [0], [0], [1], [0, 0, 1, 1], [], []>} : vector<32x128xbf16>, vector<128x32xbf16>, vector<32x32xf32> -> vector<32x32xf32>
    %c0_83 = arith.constant 0 : index
    %c0_84 = arith.constant 0 : index
    %c0_85 = arith.constant 0 : index
    %214 = vector.load %arg16[%c0_83, %c0_84, %c0_85] : memref<2x1x32xf32, #tpu.memory_space<vmem>>, vector<1x1x32xf32>
    %215 = vector.shape_cast %214 : vector<1x1x32xf32> to vector<1x32xf32>
    %216 = vector.broadcast %215 : vector<1x32xf32> to vector<32x32xf32>
    %217 = arith.addf %213, %216 : vector<32x32xf32>
    %218 = arith.addf %160, %217 : vector<32x32xf32>
    %c1 = arith.constant 1 : index
    %c0_86 = arith.constant 0 : index
    %c0_87 = arith.constant 0 : index
    %219 = vector.load %arg5[%c1, %c0_86, %c0_87] : memref<2x1x32xf32, #tpu.memory_space<vmem>>, vector<1x1x32xf32>
    %220 = vector.shape_cast %219 : vector<1x1x32xf32> to vector<1x32xf32>
    %c1_88 = arith.constant 1 : index
    %c0_89 = arith.constant 0 : index
    %c0_90 = arith.constant 0 : index
    %221 = vector.load %arg6[%c1_88, %c0_89, %c0_90] : memref<2x1x32xf32, #tpu.memory_space<vmem>>, vector<1x1x32xf32>
    %222 = vector.shape_cast %221 : vector<1x1x32xf32> to vector<1x32xf32>
    %cst_91 = arith.constant dense<0.000000e+00> : vector<32xf32>
    %223 = vector.multi_reduction <add>, %218, %cst_91 [1] : vector<32x32xf32> to vector<32xf32>
    %224 = vector.shape_cast %223 : vector<32xf32> to vector<32x1xf32>
    %cst_92 = arith.constant 3.200000e+01 : f32
    %225 = vector.broadcast %cst_92 : f32 to vector<32x1xf32>
    %226 = arith.divf %224, %225 : vector<32x1xf32>
    %227 = vector.broadcast %226 : vector<32x1xf32> to vector<32x32xf32>
    %228 = arith.subf %218, %227 : vector<32x32xf32>
    %229 = arith.mulf %228, %228 : vector<32x32xf32>
    %cst_93 = arith.constant dense<0.000000e+00> : vector<32xf32>
    %230 = vector.multi_reduction <add>, %229, %cst_93 [1] : vector<32x32xf32> to vector<32xf32>
    %231 = vector.shape_cast %230 : vector<32xf32> to vector<32x1xf32>
    %cst_94 = arith.constant 3.200000e+01 : f32
    %232 = vector.broadcast %cst_94 : f32 to vector<32x1xf32>
    %233 = arith.divf %231, %232 : vector<32x1xf32>
    %234 = vector.broadcast %226 : vector<32x1xf32> to vector<32x32xf32>
    %235 = arith.subf %218, %234 : vector<32x32xf32>
    %cst_95 = arith.constant 9.99999974E-6 : f32
    %236 = vector.broadcast %cst_95 : f32 to vector<32x1xf32>
    %237 = arith.addf %233, %236 : vector<32x1xf32>
    %238 = math.rsqrt %237 : vector<32x1xf32>
    %239 = vector.broadcast %238 : vector<32x1xf32> to vector<32x32xf32>
    %240 = arith.mulf %235, %239 : vector<32x32xf32>
    %241 = vector.broadcast %220 : vector<1x32xf32> to vector<32x32xf32>
    %242 = arith.mulf %240, %241 : vector<32x32xf32>
    %243 = vector.broadcast %222 : vector<1x32xf32> to vector<32x32xf32>
    %244 = arith.addf %242, %243 : vector<32x32xf32>
    %c1_96 = arith.constant 1 : index
    %c0_97 = arith.constant 0 : index
    %c0_98 = arith.constant 0 : index
    %245 = vector.load %arg7[%c1_96, %c0_97, %c0_98] : memref<2x32x96xf32, #tpu.memory_space<vmem>>, vector<1x32x96xf32>
    %246 = vector.shape_cast %245 : vector<1x32x96xf32> to vector<32x96xf32>
    %247 = arith.truncf %244 : vector<32x32xf32> to vector<32x32xbf16>
    %248 = arith.truncf %246 : vector<32x96xf32> to vector<32x96xbf16>
    %cst_99 = arith.constant dense<0.000000e+00> : vector<32x96xf32>
    %249 = tpu.matmul %247, %248, %cst_99 {dimension_numbers = #tpu.dot_dimension_numbers<[1], [0], [0], [1], [0, 0, 1, 1], [], []>} : vector<32x32xbf16>, vector<32x96xbf16>, vector<32x96xf32> -> vector<32x96xf32>
    %c1_100 = arith.constant 1 : index
    %c0_101 = arith.constant 0 : index
    %c0_102 = arith.constant 0 : index
    %250 = vector.load %arg8[%c1_100, %c0_101, %c0_102] : memref<2x1x96xf32, #tpu.memory_space<vmem>>, vector<1x1x96xf32>
    %251 = vector.shape_cast %250 : vector<1x1x96xf32> to vector<1x96xf32>
    %252 = vector.broadcast %251 : vector<1x96xf32> to vector<32x96xf32>
    %253 = arith.addf %249, %252 : vector<32x96xf32>
    %c1_103 = arith.constant 1 : index
    %c0_104 = arith.constant 0 : index
    %c0_105 = arith.constant 0 : index
    %254 = vector.load %arg9[%c1_103, %c0_104, %c0_105] : memref<2x32x32xf32, #tpu.memory_space<vmem>>, vector<1x32x32xf32>
    %255 = vector.shape_cast %254 : vector<1x32x32xf32> to vector<32x32xf32>
    %256 = vector.extract_strided_slice %253 {offsets = [0, 0], sizes = [32, 8], strides = [1, 1]} : vector<32x96xf32> to vector<32x8xf32>
    %257 = vector.extract_strided_slice %253 {offsets = [0, 32], sizes = [32, 8], strides = [1, 1]} : vector<32x96xf32> to vector<32x8xf32>
    %258 = vector.extract_strided_slice %253 {offsets = [0, 64], sizes = [32, 8], strides = [1, 1]} : vector<32x96xf32> to vector<32x8xf32>
    %259 = arith.truncf %256 : vector<32x8xf32> to vector<32x8xbf16>
    %260 = arith.truncf %257 : vector<32x8xf32> to vector<32x8xbf16>
    %cst_106 = arith.constant dense<0.000000e+00> : vector<32x32xf32>
    %261 = tpu.matmul %259, %260, %cst_106 {dimension_numbers = #tpu.dot_dimension_numbers<[1], [1], [0], [0], [0, 0, 1, 0], [], []>} : vector<32x8xbf16>, vector<32x8xbf16>, vector<32x32xf32> -> vector<32x32xf32>
    %cst_107 = arith.constant 0.353553385 : f32
    %262 = vector.broadcast %cst_107 : f32 to vector<32x32xf32>
    %263 = arith.mulf %261, %262 : vector<32x32xf32>
    %264 = arith.addf %263, %11 : vector<32x32xf32>
    %cst_108 = arith.constant dense<0xFF800000> : vector<32xf32>
    %265 = vector.multi_reduction <maximumf>, %264, %cst_108 [1] : vector<32x32xf32> to vector<32xf32>
    %266 = vector.shape_cast %265 : vector<32xf32> to vector<32x1xf32>
    %267 = vector.broadcast %266 : vector<32x1xf32> to vector<32x32xf32>
    %268 = arith.subf %264, %267 : vector<32x32xf32>
    %269 = math.exp %268 : vector<32x32xf32>
    %cst_109 = arith.constant dense<0.000000e+00> : vector<32xf32>
    %270 = vector.multi_reduction <add>, %269, %cst_109 [1] : vector<32x32xf32> to vector<32xf32>
    %271 = vector.shape_cast %270 : vector<32xf32> to vector<32x1xf32>
    %272 = tpu.reciprocal %271 {approx = true} : vector<32x1xf32> -> vector<32x1xf32>
    %273 = vector.broadcast %272 : vector<32x1xf32> to vector<32x32xf32>
    %274 = arith.mulf %269, %273 : vector<32x32xf32>
    %275 = arith.truncf %274 : vector<32x32xf32> to vector<32x32xbf16>
    %276 = arith.truncf %258 : vector<32x8xf32> to vector<32x8xbf16>
    %cst_110 = arith.constant dense<0.000000e+00> : vector<32x8xf32>
    %277 = tpu.matmul %275, %276, %cst_110 {dimension_numbers = #tpu.dot_dimension_numbers<[1], [0], [0], [1], [0, 0, 1, 1], [], []>} : vector<32x32xbf16>, vector<32x8xbf16>, vector<32x8xf32> -> vector<32x8xf32>
    %278 = vector.extract_strided_slice %255 {offsets = [0, 0], sizes = [8, 32], strides = [1, 1]} : vector<32x32xf32> to vector<8x32xf32>
    %279 = arith.truncf %277 : vector<32x8xf32> to vector<32x8xbf16>
    %280 = arith.truncf %278 : vector<8x32xf32> to vector<8x32xbf16>
    %cst_111 = arith.constant dense<0.000000e+00> : vector<32x32xf32>
    %281 = tpu.matmul %279, %280, %cst_111 {dimension_numbers = #tpu.dot_dimension_numbers<[1], [0], [0], [1], [0, 0, 1, 1], [], []>} : vector<32x8xbf16>, vector<8x32xbf16>, vector<32x32xf32> -> vector<32x32xf32>
    %282 = vector.extract_strided_slice %253 {offsets = [0, 8], sizes = [32, 8], strides = [1, 1]} : vector<32x96xf32> to vector<32x8xf32>
    %283 = vector.extract_strided_slice %253 {offsets = [0, 40], sizes = [32, 8], strides = [1, 1]} : vector<32x96xf32> to vector<32x8xf32>
    %284 = vector.extract_strided_slice %253 {offsets = [0, 72], sizes = [32, 8], strides = [1, 1]} : vector<32x96xf32> to vector<32x8xf32>
    %285 = arith.truncf %282 : vector<32x8xf32> to vector<32x8xbf16>
    %286 = arith.truncf %283 : vector<32x8xf32> to vector<32x8xbf16>
    %cst_112 = arith.constant dense<0.000000e+00> : vector<32x32xf32>
    %287 = tpu.matmul %285, %286, %cst_112 {dimension_numbers = #tpu.dot_dimension_numbers<[1], [1], [0], [0], [0, 0, 1, 0], [], []>} : vector<32x8xbf16>, vector<32x8xbf16>, vector<32x32xf32> -> vector<32x32xf32>
    %cst_113 = arith.constant 0.353553385 : f32
    %288 = vector.broadcast %cst_113 : f32 to vector<32x32xf32>
    %289 = arith.mulf %287, %288 : vector<32x32xf32>
    %290 = arith.addf %289, %11 : vector<32x32xf32>
    %cst_114 = arith.constant dense<0xFF800000> : vector<32xf32>
    %291 = vector.multi_reduction <maximumf>, %290, %cst_114 [1] : vector<32x32xf32> to vector<32xf32>
    %292 = vector.shape_cast %291 : vector<32xf32> to vector<32x1xf32>
    %293 = vector.broadcast %292 : vector<32x1xf32> to vector<32x32xf32>
    %294 = arith.subf %290, %293 : vector<32x32xf32>
    %295 = math.exp %294 : vector<32x32xf32>
    %cst_115 = arith.constant dense<0.000000e+00> : vector<32xf32>
    %296 = vector.multi_reduction <add>, %295, %cst_115 [1] : vector<32x32xf32> to vector<32xf32>
    %297 = vector.shape_cast %296 : vector<32xf32> to vector<32x1xf32>
    %298 = tpu.reciprocal %297 {approx = true} : vector<32x1xf32> -> vector<32x1xf32>
    %299 = vector.broadcast %298 : vector<32x1xf32> to vector<32x32xf32>
    %300 = arith.mulf %295, %299 : vector<32x32xf32>
    %301 = arith.truncf %300 : vector<32x32xf32> to vector<32x32xbf16>
    %302 = arith.truncf %284 : vector<32x8xf32> to vector<32x8xbf16>
    %cst_116 = arith.constant dense<0.000000e+00> : vector<32x8xf32>
    %303 = tpu.matmul %301, %302, %cst_116 {dimension_numbers = #tpu.dot_dimension_numbers<[1], [0], [0], [1], [0, 0, 1, 1], [], []>} : vector<32x32xbf16>, vector<32x8xbf16>, vector<32x8xf32> -> vector<32x8xf32>
    %304 = vector.extract_strided_slice %255 {offsets = [8, 0], sizes = [8, 32], strides = [1, 1]} : vector<32x32xf32> to vector<8x32xf32>
    %305 = arith.truncf %303 : vector<32x8xf32> to vector<32x8xbf16>
    %306 = arith.truncf %304 : vector<8x32xf32> to vector<8x32xbf16>
    %cst_117 = arith.constant dense<0.000000e+00> : vector<32x32xf32>
    %307 = tpu.matmul %305, %306, %cst_117 {dimension_numbers = #tpu.dot_dimension_numbers<[1], [0], [0], [1], [0, 0, 1, 1], [], []>} : vector<32x8xbf16>, vector<8x32xbf16>, vector<32x32xf32> -> vector<32x32xf32>
    %308 = arith.addf %281, %307 : vector<32x32xf32>
    %309 = vector.extract_strided_slice %253 {offsets = [0, 16], sizes = [32, 8], strides = [1, 1]} : vector<32x96xf32> to vector<32x8xf32>
    %310 = vector.extract_strided_slice %253 {offsets = [0, 48], sizes = [32, 8], strides = [1, 1]} : vector<32x96xf32> to vector<32x8xf32>
    %311 = vector.extract_strided_slice %253 {offsets = [0, 80], sizes = [32, 8], strides = [1, 1]} : vector<32x96xf32> to vector<32x8xf32>
    %312 = arith.truncf %309 : vector<32x8xf32> to vector<32x8xbf16>
    %313 = arith.truncf %310 : vector<32x8xf32> to vector<32x8xbf16>
    %cst_118 = arith.constant dense<0.000000e+00> : vector<32x32xf32>
    %314 = tpu.matmul %312, %313, %cst_118 {dimension_numbers = #tpu.dot_dimension_numbers<[1], [1], [0], [0], [0, 0, 1, 0], [], []>} : vector<32x8xbf16>, vector<32x8xbf16>, vector<32x32xf32> -> vector<32x32xf32>
    %cst_119 = arith.constant 0.353553385 : f32
    %315 = vector.broadcast %cst_119 : f32 to vector<32x32xf32>
    %316 = arith.mulf %314, %315 : vector<32x32xf32>
    %317 = arith.addf %316, %11 : vector<32x32xf32>
    %cst_120 = arith.constant dense<0xFF800000> : vector<32xf32>
    %318 = vector.multi_reduction <maximumf>, %317, %cst_120 [1] : vector<32x32xf32> to vector<32xf32>
    %319 = vector.shape_cast %318 : vector<32xf32> to vector<32x1xf32>
    %320 = vector.broadcast %319 : vector<32x1xf32> to vector<32x32xf32>
    %321 = arith.subf %317, %320 : vector<32x32xf32>
    %322 = math.exp %321 : vector<32x32xf32>
    %cst_121 = arith.constant dense<0.000000e+00> : vector<32xf32>
    %323 = vector.multi_reduction <add>, %322, %cst_121 [1] : vector<32x32xf32> to vector<32xf32>
    %324 = vector.shape_cast %323 : vector<32xf32> to vector<32x1xf32>
    %325 = tpu.reciprocal %324 {approx = true} : vector<32x1xf32> -> vector<32x1xf32>
    %326 = vector.broadcast %325 : vector<32x1xf32> to vector<32x32xf32>
    %327 = arith.mulf %322, %326 : vector<32x32xf32>
    %328 = arith.truncf %327 : vector<32x32xf32> to vector<32x32xbf16>
    %329 = arith.truncf %311 : vector<32x8xf32> to vector<32x8xbf16>
    %cst_122 = arith.constant dense<0.000000e+00> : vector<32x8xf32>
    %330 = tpu.matmul %328, %329, %cst_122 {dimension_numbers = #tpu.dot_dimension_numbers<[1], [0], [0], [1], [0, 0, 1, 1], [], []>} : vector<32x32xbf16>, vector<32x8xbf16>, vector<32x8xf32> -> vector<32x8xf32>
    %331 = vector.extract_strided_slice %255 {offsets = [16, 0], sizes = [8, 32], strides = [1, 1]} : vector<32x32xf32> to vector<8x32xf32>
    %332 = arith.truncf %330 : vector<32x8xf32> to vector<32x8xbf16>
    %333 = arith.truncf %331 : vector<8x32xf32> to vector<8x32xbf16>
    %cst_123 = arith.constant dense<0.000000e+00> : vector<32x32xf32>
    %334 = tpu.matmul %332, %333, %cst_123 {dimension_numbers = #tpu.dot_dimension_numbers<[1], [0], [0], [1], [0, 0, 1, 1], [], []>} : vector<32x8xbf16>, vector<8x32xbf16>, vector<32x32xf32> -> vector<32x32xf32>
    %335 = arith.addf %308, %334 : vector<32x32xf32>
    %336 = vector.extract_strided_slice %253 {offsets = [0, 24], sizes = [32, 8], strides = [1, 1]} : vector<32x96xf32> to vector<32x8xf32>
    %337 = vector.extract_strided_slice %253 {offsets = [0, 56], sizes = [32, 8], strides = [1, 1]} : vector<32x96xf32> to vector<32x8xf32>
    %338 = vector.extract_strided_slice %253 {offsets = [0, 88], sizes = [32, 8], strides = [1, 1]} : vector<32x96xf32> to vector<32x8xf32>
    %339 = arith.truncf %336 : vector<32x8xf32> to vector<32x8xbf16>
    %340 = arith.truncf %337 : vector<32x8xf32> to vector<32x8xbf16>
    %cst_124 = arith.constant dense<0.000000e+00> : vector<32x32xf32>
    %341 = tpu.matmul %339, %340, %cst_124 {dimension_numbers = #tpu.dot_dimension_numbers<[1], [1], [0], [0], [0, 0, 1, 0], [], []>} : vector<32x8xbf16>, vector<32x8xbf16>, vector<32x32xf32> -> vector<32x32xf32>
    %cst_125 = arith.constant 0.353553385 : f32
    %342 = vector.broadcast %cst_125 : f32 to vector<32x32xf32>
    %343 = arith.mulf %341, %342 : vector<32x32xf32>
    %344 = arith.addf %343, %11 : vector<32x32xf32>
    %cst_126 = arith.constant dense<0xFF800000> : vector<32xf32>
    %345 = vector.multi_reduction <maximumf>, %344, %cst_126 [1] : vector<32x32xf32> to vector<32xf32>
    %346 = vector.shape_cast %345 : vector<32xf32> to vector<32x1xf32>
    %347 = vector.broadcast %346 : vector<32x1xf32> to vector<32x32xf32>
    %348 = arith.subf %344, %347 : vector<32x32xf32>
    %349 = math.exp %348 : vector<32x32xf32>
    %cst_127 = arith.constant dense<0.000000e+00> : vector<32xf32>
    %350 = vector.multi_reduction <add>, %349, %cst_127 [1] : vector<32x32xf32> to vector<32xf32>
    %351 = vector.shape_cast %350 : vector<32xf32> to vector<32x1xf32>
    %352 = tpu.reciprocal %351 {approx = true} : vector<32x1xf32> -> vector<32x1xf32>
    %353 = vector.broadcast %352 : vector<32x1xf32> to vector<32x32xf32>
    %354 = arith.mulf %349, %353 : vector<32x32xf32>
    %355 = arith.truncf %354 : vector<32x32xf32> to vector<32x32xbf16>
    %356 = arith.truncf %338 : vector<32x8xf32> to vector<32x8xbf16>
    %cst_128 = arith.constant dense<0.000000e+00> : vector<32x8xf32>
    %357 = tpu.matmul %355, %356, %cst_128 {dimension_numbers = #tpu.dot_dimension_numbers<[1], [0], [0], [1], [0, 0, 1, 1], [], []>} : vector<32x32xbf16>, vector<32x8xbf16>, vector<32x8xf32> -> vector<32x8xf32>
    %358 = vector.extract_strided_slice %255 {offsets = [24, 0], sizes = [8, 32], strides = [1, 1]} : vector<32x32xf32> to vector<8x32xf32>
    %359 = arith.truncf %357 : vector<32x8xf32> to vector<32x8xbf16>
    %360 = arith.truncf %358 : vector<8x32xf32> to vector<8x32xbf16>
    %cst_129 = arith.constant dense<0.000000e+00> : vector<32x32xf32>
    %361 = tpu.matmul %359, %360, %cst_129 {dimension_numbers = #tpu.dot_dimension_numbers<[1], [0], [0], [1], [0, 0, 1, 1], [], []>} : vector<32x8xbf16>, vector<8x32xbf16>, vector<32x32xf32> -> vector<32x32xf32>
    %362 = arith.addf %335, %361 : vector<32x32xf32>
    %363 = arith.addf %218, %362 : vector<32x32xf32>
    %c1_130 = arith.constant 1 : index
    %c0_131 = arith.constant 0 : index
    %c0_132 = arith.constant 0 : index
    %364 = vector.load %arg10[%c1_130, %c0_131, %c0_132] : memref<2x1x32xf32, #tpu.memory_space<vmem>>, vector<1x1x32xf32>
    %365 = vector.shape_cast %364 : vector<1x1x32xf32> to vector<1x32xf32>
    %366 = vector.broadcast %365 : vector<1x32xf32> to vector<32x32xf32>
    %367 = arith.addf %363, %366 : vector<32x32xf32>
    %c1_133 = arith.constant 1 : index
    %c0_134 = arith.constant 0 : index
    %c0_135 = arith.constant 0 : index
    %368 = vector.load %arg11[%c1_133, %c0_134, %c0_135] : memref<2x1x32xf32, #tpu.memory_space<vmem>>, vector<1x1x32xf32>
    %369 = vector.shape_cast %368 : vector<1x1x32xf32> to vector<1x32xf32>
    %c1_136 = arith.constant 1 : index
    %c0_137 = arith.constant 0 : index
    %c0_138 = arith.constant 0 : index
    %370 = vector.load %arg12[%c1_136, %c0_137, %c0_138] : memref<2x1x32xf32, #tpu.memory_space<vmem>>, vector<1x1x32xf32>
    %371 = vector.shape_cast %370 : vector<1x1x32xf32> to vector<1x32xf32>
    %cst_139 = arith.constant dense<0.000000e+00> : vector<32xf32>
    %372 = vector.multi_reduction <add>, %367, %cst_139 [1] : vector<32x32xf32> to vector<32xf32>
    %373 = vector.shape_cast %372 : vector<32xf32> to vector<32x1xf32>
    %cst_140 = arith.constant 3.200000e+01 : f32
    %374 = vector.broadcast %cst_140 : f32 to vector<32x1xf32>
    %375 = arith.divf %373, %374 : vector<32x1xf32>
    %376 = vector.broadcast %375 : vector<32x1xf32> to vector<32x32xf32>
    %377 = arith.subf %367, %376 : vector<32x32xf32>
    %378 = arith.mulf %377, %377 : vector<32x32xf32>
    %cst_141 = arith.constant dense<0.000000e+00> : vector<32xf32>
    %379 = vector.multi_reduction <add>, %378, %cst_141 [1] : vector<32x32xf32> to vector<32xf32>
    %380 = vector.shape_cast %379 : vector<32xf32> to vector<32x1xf32>
    %cst_142 = arith.constant 3.200000e+01 : f32
    %381 = vector.broadcast %cst_142 : f32 to vector<32x1xf32>
    %382 = arith.divf %380, %381 : vector<32x1xf32>
    %383 = vector.broadcast %375 : vector<32x1xf32> to vector<32x32xf32>
    %384 = arith.subf %367, %383 : vector<32x32xf32>
    %cst_143 = arith.constant 9.99999974E-6 : f32
    %385 = vector.broadcast %cst_143 : f32 to vector<32x1xf32>
    %386 = arith.addf %382, %385 : vector<32x1xf32>
    %387 = math.rsqrt %386 : vector<32x1xf32>
    %388 = vector.broadcast %387 : vector<32x1xf32> to vector<32x32xf32>
    %389 = arith.mulf %384, %388 : vector<32x32xf32>
    %390 = vector.broadcast %369 : vector<1x32xf32> to vector<32x32xf32>
    %391 = arith.mulf %389, %390 : vector<32x32xf32>
    %392 = vector.broadcast %371 : vector<1x32xf32> to vector<32x32xf32>
    %393 = arith.addf %391, %392 : vector<32x32xf32>
    %c1_144 = arith.constant 1 : index
    %c0_145 = arith.constant 0 : index
    %c0_146 = arith.constant 0 : index
    %394 = vector.load %arg13[%c1_144, %c0_145, %c0_146] : memref<2x32x128xf32, #tpu.memory_space<vmem>>, vector<1x32x128xf32>
    %395 = vector.shape_cast %394 : vector<1x32x128xf32> to vector<32x128xf32>
    %396 = arith.truncf %393 : vector<32x32xf32> to vector<32x32xbf16>
    %397 = arith.truncf %395 : vector<32x128xf32> to vector<32x128xbf16>
    %cst_147 = arith.constant dense<0.000000e+00> : vector<32x128xf32>
    %398 = tpu.matmul %396, %397, %cst_147 {dimension_numbers = #tpu.dot_dimension_numbers<[1], [0], [0], [1], [0, 0, 1, 1], [], []>} : vector<32x32xbf16>, vector<32x128xbf16>, vector<32x128xf32> -> vector<32x128xf32>
    %c1_148 = arith.constant 1 : index
    %c0_149 = arith.constant 0 : index
    %c0_150 = arith.constant 0 : index
    %399 = vector.load %arg14[%c1_148, %c0_149, %c0_150] : memref<2x1x128xf32, #tpu.memory_space<vmem>>, vector<1x1x128xf32>
    %400 = vector.shape_cast %399 : vector<1x1x128xf32> to vector<1x128xf32>
    %401 = vector.broadcast %400 : vector<1x128xf32> to vector<32x128xf32>
    %402 = arith.addf %398, %401 : vector<32x128xf32>
    %cst_151 = arith.constant 5.000000e-01 : f32
    %403 = vector.broadcast %cst_151 : f32 to vector<32x128xf32>
    %404 = arith.mulf %403, %402 : vector<32x128xf32>
    %cst_152 = arith.constant 4.471500e-02 : f32
    %405 = vector.broadcast %cst_152 : f32 to vector<32x128xf32>
    %406 = arith.mulf %405, %402 : vector<32x128xf32>
    %407 = arith.mulf %406, %402 : vector<32x128xf32>
    %408 = arith.mulf %407, %402 : vector<32x128xf32>
    %409 = arith.addf %402, %408 : vector<32x128xf32>
    %cst_153 = arith.constant 0.797884583 : f32
    %410 = vector.broadcast %cst_153 : f32 to vector<32x128xf32>
    %411 = arith.mulf %410, %409 : vector<32x128xf32>
    %412 = math.tanh %411 : vector<32x128xf32>
    %cst_154 = arith.constant 1.000000e+00 : f32
    %413 = vector.broadcast %cst_154 : f32 to vector<32x128xf32>
    %414 = arith.addf %413, %412 : vector<32x128xf32>
    %415 = arith.mulf %404, %414 : vector<32x128xf32>
    %c1_155 = arith.constant 1 : index
    %c0_156 = arith.constant 0 : index
    %c0_157 = arith.constant 0 : index
    %416 = vector.load %arg15[%c1_155, %c0_156, %c0_157] : memref<2x128x32xf32, #tpu.memory_space<vmem>>, vector<1x128x32xf32>
    %417 = vector.shape_cast %416 : vector<1x128x32xf32> to vector<128x32xf32>
    %418 = arith.truncf %415 : vector<32x128xf32> to vector<32x128xbf16>
    %419 = arith.truncf %417 : vector<128x32xf32> to vector<128x32xbf16>
    %cst_158 = arith.constant dense<0.000000e+00> : vector<32x32xf32>
    %420 = tpu.matmul %418, %419, %cst_158 {dimension_numbers = #tpu.dot_dimension_numbers<[1], [0], [0], [1], [0, 0, 1, 1], [], []>} : vector<32x128xbf16>, vector<128x32xbf16>, vector<32x32xf32> -> vector<32x32xf32>
    %c1_159 = arith.constant 1 : index
    %c0_160 = arith.constant 0 : index
    %c0_161 = arith.constant 0 : index
    %421 = vector.load %arg16[%c1_159, %c0_160, %c0_161] : memref<2x1x32xf32, #tpu.memory_space<vmem>>, vector<1x1x32xf32>
    %422 = vector.shape_cast %421 : vector<1x1x32xf32> to vector<1x32xf32>
    %423 = vector.broadcast %422 : vector<1x32xf32> to vector<32x32xf32>
    %424 = arith.addf %420, %423 : vector<32x32xf32>
    %425 = arith.addf %367, %424 : vector<32x32xf32>
    %c0_162 = arith.constant 0 : index
    %c0_163 = arith.constant 0 : index
    %426 = vector.load %arg17[%c0_162, %c0_163] : memref<1x32xf32, #tpu.memory_space<vmem>>, vector<1x32xf32>
    %c0_164 = arith.constant 0 : index
    %c0_165 = arith.constant 0 : index
    %427 = vector.load %arg18[%c0_164, %c0_165] : memref<1x32xf32, #tpu.memory_space<vmem>>, vector<1x32xf32>
    %cst_166 = arith.constant dense<0.000000e+00> : vector<32xf32>
    %428 = vector.multi_reduction <add>, %425, %cst_166 [1] : vector<32x32xf32> to vector<32xf32>
    %429 = vector.shape_cast %428 : vector<32xf32> to vector<32x1xf32>
    %cst_167 = arith.constant 3.200000e+01 : f32
    %430 = vector.broadcast %cst_167 : f32 to vector<32x1xf32>
    %431 = arith.divf %429, %430 : vector<32x1xf32>
    %432 = vector.broadcast %431 : vector<32x1xf32> to vector<32x32xf32>
    %433 = arith.subf %425, %432 : vector<32x32xf32>
    %434 = arith.mulf %433, %433 : vector<32x32xf32>
    %cst_168 = arith.constant dense<0.000000e+00> : vector<32xf32>
    %435 = vector.multi_reduction <add>, %434, %cst_168 [1] : vector<32x32xf32> to vector<32xf32>
    %436 = vector.shape_cast %435 : vector<32xf32> to vector<32x1xf32>
    %cst_169 = arith.constant 3.200000e+01 : f32
    %437 = vector.broadcast %cst_169 : f32 to vector<32x1xf32>
    %438 = arith.divf %436, %437 : vector<32x1xf32>
    %439 = vector.broadcast %431 : vector<32x1xf32> to vector<32x32xf32>
    %440 = arith.subf %425, %439 : vector<32x32xf32>
    %cst_170 = arith.constant 9.99999974E-6 : f32
    %441 = vector.broadcast %cst_170 : f32 to vector<32x1xf32>
    %442 = arith.addf %438, %441 : vector<32x1xf32>
    %443 = math.rsqrt %442 : vector<32x1xf32>
    %444 = vector.broadcast %443 : vector<32x1xf32> to vector<32x32xf32>
    %445 = arith.mulf %440, %444 : vector<32x32xf32>
    %446 = vector.broadcast %426 : vector<1x32xf32> to vector<32x32xf32>
    %447 = arith.mulf %445, %446 : vector<32x32xf32>
    %448 = vector.broadcast %427 : vector<1x32xf32> to vector<32x32xf32>
    %449 = arith.addf %447, %448 : vector<32x32xf32>
    %c0_171 = arith.constant 0 : index
    %c0_172 = arith.constant 0 : index
    %450 = vector.load %arg19[%c0_171, %c0_172] : memref<32x48xf32, #tpu.memory_space<vmem>>, vector<32x48xf32>
    %451 = arith.truncf %449 : vector<32x32xf32> to vector<32x32xbf16>
    %452 = arith.truncf %450 : vector<32x48xf32> to vector<32x48xbf16>
    %cst_173 = arith.constant dense<0.000000e+00> : vector<32x48xf32>
    %453 = tpu.matmul %451, %452, %cst_173 {dimension_numbers = #tpu.dot_dimension_numbers<[1], [0], [0], [1], [0, 0, 1, 1], [], []>} : vector<32x32xbf16>, vector<32x48xbf16>, vector<32x48xf32> -> vector<32x48xf32>
    %c0_174 = arith.constant 0 : index
    %c0_175 = arith.constant 0 : index
    %454 = vector.load %arg20[%c0_174, %c0_175] : memref<1x48xf32, #tpu.memory_space<vmem>>, vector<1x48xf32>
    %455 = vector.broadcast %454 : vector<1x48xf32> to vector<32x48xf32>
    %456 = arith.addf %453, %455 : vector<32x48xf32>
    %c0_176 = arith.constant 0 : index
    %c0_177 = arith.constant 0 : index
    %457 = vector.load %arg21[%c0_176, %c0_177] : memref<32x48xf32, #tpu.memory_space<vmem>>, vector<32x48xf32>
    tpu.vector_store %arg21[%c0_176, %c0_177], %456 {strides = array<i32>} : memref<32x48xf32, #tpu.memory_space<vmem>>, vector<32x48xf32>,
    return
  }
}

</mosaic_0001>

<bundles_post_ra>
// kernel: tpu_custom_call.1
= control target key start
LH: loop header
LB: loop body
LE: loop exit
PB: predicated region body
PF: predicated region fallthrough
CT: control target
= control target key end

     0   :  { %s3900_s0 = inlined_call_operand.vmem [shape: f32[32,32], index: 0, kind: input, shape index: {}]   ;;  %s3901_s1 = inlined_call_operand.vmem [shape: f32[32,32], index: 1, kind: input, shape index: {}]   ;;  %s3902_s2 = inlined_call_operand.hbm [shape: f32[16,32], index: 2, kind: input, shape index: {}]   ;;  %s3903_s3 = inlined_call_operand.vmem [shape: f32[32,32], index: 3, kind: input, shape index: {}]   ;;  %s3904_s4 = inlined_call_operand.vmem [shape: f32[1,32], index: 4, kind: input, shape index: {}]   ;;  %s3905_s5 = inlined_call_operand.vmem [shape: f32[2,1,32], index: 5, kind: input, shape index: {}]   ;;  %s3906_s6 = inlined_call_operand.hbm [shape: f32[2,1,32], index: 6, kind: input, shape index: {}]   ;;  %s3907_s7 = inlined_call_operand.vmem [shape: f32[2,32,96], index: 7, kind: input, shape index: {}]   ;;  %s3908_s8 = inlined_call_operand.vmem [shape: f32[2,1,96], index: 8, kind: input, shape index: {}]   ;;  %s3909_s9 = inlined_call_operand.vmem [shape: f32[2,32,32], index: 9, kind: input, shape index: {}]   ;;  %s3910_s10 = inlined_call_operand.vmem [shape: f32[2,1,32], index: 10, kind: input, shape index: {}]   ;;  %s3911_s11 = inlined_call_operand.hbm [shape: f32[2,1,32], index: 11, kind: input, shape index: {}]   ;;  %s3912_s12 = inlined_call_operand.vmem [shape: f32[2,1,32], index: 12, kind: input, shape index: {}]   ;;  %s3913_s13 = inlined_call_operand.vmem [shape: f32[2,32,128], index: 13, kind: input, shape index: {}]   ;;  %s3914_s14 = inlined_call_operand.vmem [shape: f32[2,1,128], index: 14, kind: input, shape index: {}]   ;;  %s3915_s15 = inlined_call_operand.vmem [shape: f32[2,128,32], index: 15, kind: input, shape index: {}]   ;;  %s3916_s16 = inlined_call_operand.vmem [shape: f32[2,1,32], index: 16, kind: input, shape index: {}]   ;;  %s3917_s17 = inlined_call_operand.vmem [shape: f32[1,32], index: 17, kind: input, shape index: {}]   ;;  %s3918_s18 = inlined_call_operand.vmem [shape: f32[1,32], index: 18, kind: input, shape index: {}]   ;;  %s3919_s19 = inlined_call_operand.vmem [shape: f32[32,48], index: 19, kind: input, shape index: {}]   ;;  %s3920_s20 = inlined_call_operand.vmem [shape: f32[1,48], index: 20, kind: input, shape index: {}]   ;;  %s3921_s21 = inlined_call_operand.hbm [shape: f32[32,48], index: 21, kind: output, shape index: {}]  }
   0x1   :  { %3940 = sst [smem:[#allocation12_spill]] %s3900_s0 }
   0x2   :  { %3941 = sst [smem:[#allocation13_spill]] %s3901_s1 }
   0x3   :  { %3942 = sst [smem:[#allocation14_spill]] %s3902_s2 }
   0x4   :  { %3943 = sst [smem:[#allocation15_spill]] %s3903_s3 }
   0x5   :  { %3944 = sst [smem:[#allocation16_spill]] %s3904_s4 }
   0x6   :  { %3945 = sst [smem:[#allocation17_spill]] %s3905_s5 }
   0x7   :  { %26 = vsyncpa [#allocation3], 0 }
   0x8   :  { %27 = vsyncpa [#allocation6], 0  ;;  %s56_s26 = sshll.u32 %s3906_s6, 4  ;;  %s57_s26 = int_to_ptr.hbm [resolvable:$true] %s56_s26 }
   0x9   :  { %28 = vsyncpa [#allocation4], 0  ;;  %s2812_s27 = smov [#allocation5]   ;;  %s3946_s0 = sld [smem:[#allocation14_spill]] }
   0xa   :  { %s58_s3 = sshll.u32 %s2812_s27, 4  ;;  %s2813_s30 = smov 16   ;;  %s59_s3 = int_to_ptr.vmem [resolvable:$true] %s58_s3 }
   0xb   :  { %s2814_s5 = smov 1   ;;  %s2815_s22 = smov [#allocation2]  }
   0xc   :  { %64 = dma.hbm_to_vmem [thread:$0]  %s57_s26, 32, %s59_s3, [#allocation6], %s2813_s30, %s2813_s30, %s2814_s5  }
   0xd   :  { %s39_s23 = sshll.u32 %s2815_s22, 4  ;;  %s3926_s1 = smov 128   ;;  %s40_s23 = int_to_ptr.vmem [resolvable:$true] %s39_s23 }
   0xe   :  { %s3927_s24 = smov 8   ;;  %s77_s25 = sshll.u32 %s3911_s11, 4  ;;  %s78_s25 = int_to_ptr.hbm [resolvable:$true] %s77_s25 }
   0xf   :  { %s37_s4 = sshll.u32 %s3946_s0, 4  ;;  %s2818_s27 = smov [#allocation7]   ;;  %s38_s4 = int_to_ptr.hbm [resolvable:$true] %s37_s4 }
  0x10   :  { %45 = dma.hbm_to_vmem [thread:$0]  %s38_s4, 256, %s40_s23, [#allocation3], %s3926_s1, %s3926_s1, %s3927_s24  }
  0x11   :  { %s79_s28 = sshll.u32 %s2818_s27, 4  ;;  %s80_s28 = int_to_ptr.vmem [resolvable:$true] %s79_s28 }
  0x12   :  { %85 = dma.hbm_to_vmem [thread:$0]  %s78_s25, 32, %s80_s28, [#allocation6], %s2813_s30, %s2813_s30, %s2814_s5  }
  0x13   :  { %2806 = dma.done.wait [#allocation3], 256  }
  0x14   :  { %2807 = vsyncadd [#allocation3], 4294967040 }
  0x15   :  { %2808 = dma.done.wait [#allocation6], 64  }
  0x16   :  { %2809 = vsyncadd [#allocation6], 4294967232  ;;  %s3947_s29 = sld [smem:[#allocation15_spill]]  ;;  %vm133_vm0 = vcmask 261120   ;;  %v159_v14 = vld [vmem:[#allocation2] sm:$0xff]  ;;  %v160_v19 = vld [vmem:[#allocation2 + $0x8] sm:$0xff] }
  0x17   :  { %s3948_s2 = sld [smem:[#allocation12_spill]]  ;;  %v2819_v31 = vmov 32.0   ;;  %v282_v58 = vld [vmem:[%s3907_s7 + $0x10] sm:$0xff]  ;;  %v283_v59 = vld [vmem:[%s3907_s7 + $0x18] sm:$0xff]  ;;  %v280_v63 = vld [vmem:[%s3907_s7] sm:$0xff]  ;;  %s2820_s22 = smov 96  }
  0x18   :  { %s3949_s4 = sld [smem:[#allocation16_spill]]  ;;  %2520 = vrcp.f32 %v2819_v31  ;;  %v287_v60 = vpack.c.bf16 %v283_v59, %v282_v58  ;;  %vm329_vm14 = vcmask 64512   ;;  %s2821_s28 = smov 64   ;;  %vm582_vm15 = vcmask 1043456  }
  0x19   :  { %s3950_s3 = sld [smem:[#allocation17_spill]]  ;;  %s2822_s26 = smov 88  }
  0x1a   :  { %304 = vmatpush.bf16.msra.mxu1 %v287_v60  ;;  %s3951_s11 = sld [smem:[#allocation13_spill]]  ;;  %s2824_s0 = smov 80  }
  0x1b   :  { %s3934_s23 = smov 104   ;;  %s3936_s6 = smov 112  }
  0x1c   :  { %v123_v0 = vld [vmem:[%s3947_s29 + $0x10] sm:$0xff]  ;;  %v124_v1 = vld [vmem:[%s3947_s29 + $0x18] sm:$0xff]  ;;  %v121_v2 = vld [vmem:[%s3947_s29] sm:$0xff]  ;;  %s3930_s25 = smov 40   ;;  %s3928_s27 = smov 48  }
  0x1d   :  { %v128_v3 = vpack.c.bf16 %v124_v1, %v123_v0  ;;  %v122_v4 = vld [vmem:[%s3947_s29 + $0x8] sm:$0xff]  ;;  %v117_v5 = vld [vmem:[%s3948_s2] sm:$0xff]  ;;  %v119_v9 = vld [vmem:[%s3948_s2 + $0x10] sm:$0xff]  ;;  %s3938_s29 = smov 120  }
  0x1e   :  { %v127_v6 = vpack.c.bf16 %v122_v4, %v121_v2  ;;  %v118_v7 = vld [vmem:[%s3948_s2 + $0x8] sm:$0xff]  ;;  %v120_v10 = vld [vmem:[%s3948_s2 + $0x18] sm:$0xff]  ;;  %v2500_v12 = vld [vmem:[%s3949_s4] ss:$0 sm:$0xff]  ;;  %v2521_v32 = vpop.eup %2520  ;;  %s2825_s4 = smov 72   ;;  %s3932_s2 = smov 56  }
  0x1f   :  { %146 = vmatpush.bf16.msra.mxu0 %v128_v3  ;;  %v125_v8 = vpack.c.bf16 %v118_v7, %v117_v5  ;;  %v126_v11 = vpack.c.bf16 %v120_v10, %v119_v9  ;;  %v184_v33 = vmul.f32 32.0, %v2521_v32  ;;  %vm188_vm1 = vweird.f32 %v2521_v32  ;;  %v281_v0 = vld [vmem:[%s3907_s7 + $0x8] sm:$0xff] }
  0x20   :  { %v286_v1 = vpack.c.bf16 %v281_v0, %v280_v63  ;;  %v2503_v0 = vld [vmem:[%s3908_s8] ss:$0 sm:$0xff] }
  0x21   :  { %v185_v34 = vsub.f32 1.0, %v184_v33 }
  0x22   :  { %305 = vmatpush.bf16.msra.mxu1 %v286_v1 }
  0x23   :  { %147 = vmatpush.bf16.msra.mxu0 %v127_v6  ;;  %v186_v35 = vmul.f32 %v2521_v32, %v185_v34 }
  0x25   :  { %v187_v36 = vadd.f32 %v2521_v32, %v186_v35 }
  0x26   :  { %2386 = vmatmul.msk.bf16.vlgmr.msra.gmra.mxu0 %vm133_vm0, %v125_v8 }
  0x27   :  { %v2999_v37 = vsel %vm188_vm1, %v2521_v32, %v187_v36 }
  0x36   :  { %2387 = vmatmul.msk.bf16.gmra.mxu0 %vm133_vm0, %v126_v11 }
  0xa3   :  { %v149_v13 = vpop.f32.mrf.mxu0 }
  0xa4   :  { %v150_v15 = vadd.f32 %v2500_v12, %v149_v13 }
  0xa6   :  { %v2983_v16 = vadd.f32 %v159_v14, %v150_v15 }
  0xa8   :  { %v171_v17 = vsel %vm133_vm0, %v2983_v16, 0.0 }
  0xa9   :  { %172 = vadd.xlane.f32.xlu0 %v171_v17 }
  0xab   :  { %v151_v18 = vpop.f32.mrf.mxu0 }
  0xac   :  { %v152_v20 = vadd.f32 %v2500_v12, %v151_v18 }
  0xae   :  { %v2987_v21 = vadd.f32 %v160_v19, %v152_v20 }
  0xb0   :  { %v174_v22 = vsel %vm133_vm0, %v2987_v21, 0.0 }
  0xb1   :  { %175 = vadd.xlane.f32.xlu0 %v174_v22 }
  0xb3   :  { %v154_v23 = vpop.f32.mrf.mxu0 }
  0xb4   :  { %v155_v24 = vadd.f32 %v2500_v12, %v154_v23 }
  0xb6   :  { %v2991_v25 = vadd.f32 %v159_v14, %v155_v24 }
  0xb8   :  { %v177_v26 = vsel %vm133_vm0, %v2991_v25, 0.0 }
  0xb9   :  { %178 = vadd.xlane.f32.xlu1 %v177_v26 }
  0xbb   :  { %v156_v27 = vpop.f32.mrf.mxu0 }
  0xbc   :  { %v157_v28 = vadd.f32 %v2500_v12, %v156_v27 }
  0xbe   :  { %v2995_v29 = vadd.f32 %v160_v19, %v157_v28 }
  0xc0   :  { %v180_v30 = vsel %vm133_vm0, %v2995_v29, 0.0 }
  0xc1   :  { %181 = vadd.xlane.f32.xlu1 %v180_v30  ;;  %v2501_v30 = vld [vmem:[%s3950_s3] ss:$0 sm:$0xff] }
 0x11c   :  { %v173_v38 = vpop.xlane.xlu0 %172 }
 0x11d   :  { %v190_v39 = vmul.f32 %v2999_v37, %v173_v38  ;;  %v2502_v38 = vld [vmem:[#allocation5] ss:$0 sm:$0xff] }
 0x11f   :  { %v194_v40 = vsub.f32 %v2983_v16, %v190_v39 }
 0x121   :  { %v198_v41 = vmul.f32 %v194_v40, %v194_v40 }
 0x123   :  { %v202_v42 = vsel %vm133_vm0, %v198_v41, 0.0 }
 0x124   :  { %203 = vadd.xlane.f32.xlu2 %v202_v42  ;;  %v176_v43 = vpop.xlane.xlu0 %175 }
 0x125   :  { %v191_v44 = vmul.f32 %v2999_v37, %v176_v43 }
 0x127   :  { %v3006_v45 = vsub.f32 %v2987_v21, %v191_v44 }
 0x129   :  { %v199_v46 = vmul.f32 %v3006_v45, %v3006_v45 }
 0x12b   :  { %v205_v47 = vsel %vm133_vm0, %v199_v46, 0.0 }
 0x12c   :  { %v179_v48 = vpop.xlane.xlu1 %178  ;;  %206 = vadd.xlane.f32.xlu2 %v205_v47 }
 0x12d   :  { %v192_v49 = vmul.f32 %v2999_v37, %v179_v48 }
 0x12f   :  { %v3013_v50 = vsub.f32 %v2991_v25, %v192_v49 }
 0x131   :  { %v200_v51 = vmul.f32 %v3013_v50, %v3013_v50 }
 0x133   :  { %v208_v52 = vsel %vm133_vm0, %v200_v51, 0.0 }
 0x134   :  { %v182_v53 = vpop.xlane.xlu1 %181  ;;  %209 = vadd.xlane.f32.xlu0 %v208_v52 }
 0x135   :  { %v193_v54 = vmul.f32 %v2999_v37, %v182_v53 }
 0x137   :  { %v3020_v55 = vsub.f32 %v2995_v29, %v193_v54 }
 0x139   :  { %v201_v56 = vmul.f32 %v3020_v55, %v3020_v55 }
 0x13b   :  { %v211_v57 = vsel %vm133_vm0, %v201_v56, 0.0 }
 0x13c   :  { %212 = vadd.xlane.f32.xlu1 %v211_v57 }
 0x197   :  { %v204_v61 = vpop.xlane.xlu2 %203 }
 0x198   :  { %v214_v62 = vmul.f32 %v204_v61, %v2999_v37 }
 0x19a   :  { %v218_v2 = vadd.f32 1e-05, %v214_v62 }
 0x19c   :  { %2522 = vrsqrt.f32 %v218_v2  ;;  %vm228_vm3 = vweird.f32 %v218_v2 }
 0x19f   :  { %v207_v3 = vpop.xlane.xlu2 %206 }
 0x1a0   :  { %v215_v4 = vmul.f32 %v207_v3, %v2999_v37 }
 0x1a2   :  { %v2523_v5 = vpop.eup %2522  ;;  %v219_v6 = vadd.f32 1e-05, %v215_v4 }
 0x1a3   :  { %v223_v7 = vmul.f32 %v2523_v5, %v218_v2  ;;  %vm229_vm2 = vweird.f32 %v2523_v5 }
 0x1a4   :  { %2524 = vrsqrt.f32 %v219_v6  ;;  %vm230_vm4 = vmor %vm228_vm3, %vm229_vm2  ;;  %vm238_vm6 = vweird.f32 %v219_v6 }
 0x1a5   :  { %v224_v8 = vmul.f32 %v2523_v5, %v223_v7 }
 0x1a7   :  { %v225_v9 = vmul.f32 0.5, %v224_v8  ;;  %v210_v10 = vpop.xlane.xlu0 %209 }
 0x1a8   :  { %v216_v11 = vmul.f32 %v210_v10, %v2999_v37 }
 0x1a9   :  { %v226_v12 = vsub.f32 1.5, %v225_v9 }
 0x1aa   :  { %v2525_v13 = vpop.eup %2524  ;;  %v220_v14 = vadd.f32 1e-05, %v216_v11 }
 0x1ab   :  { %v227_v15 = vmul.f32 %v2523_v5, %v226_v12  ;;  %v233_v17 = vmul.f32 %v2525_v13, %v219_v6  ;;  %vm239_vm5 = vweird.f32 %v2525_v13 }
 0x1ac   :  { %2526 = vrsqrt.f32 %v220_v14  ;;  %vm240_vm7 = vmor %vm238_vm6, %vm239_vm5  ;;  %vm248_vm9 = vweird.f32 %v220_v14 }
 0x1ad   :  { %v234_v18 = vmul.f32 %v2525_v13, %v233_v17  ;;  %v231_v19 = vsel %vm230_vm4, %v2523_v5, %v227_v15 }
 0x1ae   :  { %v262_v28 = vmul.f32 %v231_v19, %v194_v40  ;;  %v3076_v19 = vld [vmem:[%s3951_s11 + $0x8] sm:$0xff] }
 0x1af   :  { %v235_v20 = vmul.f32 0.5, %v234_v18  ;;  %v213_v22 = vpop.xlane.xlu1 %212 }
 0x1b0   :  { %v217_v23 = vmul.f32 %v213_v22, %v2999_v37  ;;  %v269_v36 = vmul.f32 %v2501_v30, %v262_v28 }
 0x1b1   :  { %v236_v24 = vsub.f32 1.5, %v235_v20 }
 0x1b2   :  { %v2527_v26 = vpop.eup %2526  ;;  %v221_v27 = vadd.f32 1e-05, %v217_v23  ;;  %v276_v40 = vadd.f32 %v2502_v38, %v269_v36 }
 0x1b3   :  { %v237_v31 = vmul.f32 %v2525_v13, %v236_v24  ;;  %v243_v32 = vmul.f32 %v2527_v26, %v220_v14  ;;  %vm249_vm8 = vweird.f32 %v2527_v26 }
 0x1b4   :  { %2528 = vrsqrt.f32 %v221_v27  ;;  %vm250_vm10 = vmor %vm248_vm9, %vm249_vm8  ;;  %vm258_vm12 = vweird.f32 %v221_v27 }
 0x1b5   :  { %v241_v33 = vsel %vm240_vm7, %v2525_v13, %v237_v31  ;;  %v244_v34 = vmul.f32 %v2527_v26, %v243_v32  ;;  %v3069_v13 = vld [vmem:[%s3951_s11] sm:$0xff]  ;;  %v3090_v32 = vld [vmem:[%s3951_s11 + $0x18] sm:$0xff] }
 0x1b6   :  { %v263_v35 = vmul.f32 %v241_v33, %v3006_v45 }
 0x1b7   :  { %v245_v39 = vmul.f32 0.5, %v244_v34 }
 0x1b8   :  { %v270_v41 = vmul.f32 %v2501_v30, %v263_v35 }
 0x1b9   :  { %v246_v42 = vsub.f32 1.5, %v245_v39 }
 0x1ba   :  { %v2529_v43 = vpop.eup %2528  ;;  %v277_v44 = vadd.f32 %v2502_v38, %v270_v41 }
 0x1bb   :  { %v247_v46 = vmul.f32 %v2527_v26, %v246_v42  ;;  %v253_v47 = vmul.f32 %v2529_v43, %v221_v27  ;;  %vm259_vm11 = vweird.f32 %v2529_v43 }
 0x1bc   :  { %v284_v48 = vpack.c.bf16 %v277_v44, %v276_v40  ;;  %vm260_vm13 = vmor %vm258_vm12, %vm259_vm11 }
 0x1bd   :  { %v254_v49 = vmul.f32 %v2529_v43, %v253_v47  ;;  %v251_v51 = vsel %vm250_vm10, %v2527_v26, %v247_v46  ;;  %v3083_v26 = vld [vmem:[%s3951_s11 + $0x10] sm:$0xff] }
 0x1be   :  { %2388 = vmatmul.msk.bf16.vlgmr.msra.gmra.mxu1 %vm133_vm0, %v284_v48  ;;  %v264_v53 = vmul.f32 %v251_v51, %v3013_v50 }
 0x1bf   :  { %v255_v52 = vmul.f32 0.5, %v254_v49 }
 0x1c0   :  { %v271_v58 = vmul.f32 %v2501_v30, %v264_v53 }
 0x1c1   :  { %v256_v45 = vsub.f32 1.5, %v255_v52 }
 0x1c2   :  { %v278_v60 = vadd.f32 %v2502_v38, %v271_v58 }
 0x1c3   :  { %v257_v54 = vmul.f32 %v2529_v43, %v256_v45 }
 0x1c5   :  { %v261_v56 = vsel %vm260_vm13, %v2529_v43, %v257_v54 }
 0x1c6   :  { %v265_v57 = vmul.f32 %v261_v56, %v3020_v55 }
 0x1c8   :  { %v272_v59 = vmul.f32 %v2501_v30, %v265_v57 }
 0x1ca   :  { %v279_v61 = vadd.f32 %v2502_v38, %v272_v59 }
 0x1cc   :  { %v285_v62 = vpack.c.bf16 %v279_v61, %v278_v60 }
 0x1ce   :  { %2389 = vmatmul.msk.bf16.gmra.mxu1 %vm133_vm0, %v285_v62 }
 0x23b   :  { %v307_v63 = vpop.f32.mrf.mxu1 }
 0x23c   :  { %v308_v50 = vadd.f32 %v2503_v0, %v307_v63 }
 0x243   :  { %v309_v1 = vpop.f32.mrf.mxu1 }
 0x244   :  { %v310_v2 = vadd.f32 %v2503_v0, %v309_v1 }
 0x246   :  { %v3052_v3 = vpack.c.bf16 %v310_v2, %v308_v50 }
 0x248   :  { %325 = vrot.lane.b32.xlu0 %v3052_v3, %s2820_s22 }
 0x24b   :  { %v312_v55 = vpop.f32.mrf.mxu1 }
 0x24c   :  { %v313_v5 = vadd.f32 %v2503_v0, %v312_v55 }
 0x253   :  { %v314_v4 = vpop.f32.mrf.mxu1 }
 0x254   :  { %v315_v6 = vadd.f32 %v2503_v0, %v314_v4  ;;  %v317_v0 = vld [vmem:[%s3909_s9] sm:$0xff] }
 0x255   :  { %v448_v50 = vpack.c.bf16 %v317_v0, %v317_v0 }
 0x256   :  { %v3056_v7 = vpack.c.bf16 %v315_v6, %v313_v5 }
 0x257   :  { %v612_v4 = vsel %vm582_vm15, %v448_v50, 0 }
 0x258   :  { %327 = vrot.lane.b32.xlu2 %v3056_v7, %s2820_s22 }
 0x2b2   :  { %v328_v8 = vpop.permute.xlu2 %327 }
 0x2b3   :  { %v340_v9 = vsel %vm329_vm14, %v328_v8, 0 }
 0x2b4   :  { %348 = vmatpush.bf16.xpose.msra.mxu2 %v340_v9 }
 0x2ba   :  { %v326_v10 = vpop.permute.xlu0 %325 }
 0x2bb   :  { %v337_v11 = vsel %vm329_vm14, %v326_v10, 0 }
 0x2bc   :  { %349 = vmatpush.bf16.xpose.msra.mxu2 %v337_v11 }
 0x2c3   :  { %2390 = vmatmul.msk.bf16.vlgmr.msra.gmra.mxu2 %vm329_vm14, %v3052_v3 }
 0x2c4   :  { %621 = vmatpush.bf16.msrb.mxu2 %v612_v4 }
 0x2d3   :  { %2391 = vmatmul.msk.bf16.gmra.mxu2 %vm329_vm14, %v3056_v7 }
 0x346   :  { %v351_v12 = vpop.f32.mrf.mxu2 }
 0x347   :  { %v361_v14 = vmul.f32 0.35355338, %v351_v12 }
 0x349   :  { %v365_v15 = vadd.f32 %v361_v14, %v3069_v13 }
 0x34b   :  { %v369_v17 = vsel %vm133_vm0, %v365_v15, -inf }
 0x34c   :  { %370 = vmax.xlane.f32.xlu1 %v369_v17 }
 0x34e   :  { %v353_v18 = vpop.f32.mrf.mxu2 }
 0x34f   :  { %v362_v20 = vmul.f32 0.35355338, %v353_v18 }
 0x351   :  { %v366_v22 = vadd.f32 %v362_v20, %v3076_v19 }
 0x353   :  { %v372_v23 = vsel %vm133_vm0, %v366_v22, -inf }
 0x354   :  { %373 = vmax.xlane.f32.xlu1 %v372_v23 }
 0x356   :  { %v356_v24 = vpop.f32.mrf.mxu2 }
 0x357   :  { %v363_v27 = vmul.f32 0.35355338, %v356_v24 }
 0x359   :  { %v367_v28 = vadd.f32 %v363_v27, %v3083_v26 }
 0x35b   :  { %v375_v30 = vsel %vm133_vm0, %v367_v28, -inf }
 0x35c   :  { %376 = vmax.xlane.f32.xlu1 %v375_v30 }
 0x35e   :  { %v358_v31 = vpop.f32.mrf.mxu2 }
 0x35f   :  { %v364_v33 = vmul.f32 0.35355338, %v358_v31 }
 0x361   :  { %v368_v34 = vadd.f32 %v364_v33, %v3090_v32 }
 0x363   :  { %v378_v35 = vsel %vm133_vm0, %v368_v34, -inf }
 0x364   :  { %379 = vmax.xlane.f32.xlu2 %v378_v35 }
 0x375   :  { %417 = vrot.lane.b32.xlu1 %v3056_v7, %s2821_s28 }
 0x3bf   :  { %v371_v36 = vpop.xlane.xlu1 %370 }
 0x3c0   :  { %v381_v38 = vsub.f32 %v365_v15, %v371_v36 }
 0x3c2   :  { %v385_v39 = vmul.f32 1.442695, %v381_v38 }
 0x3c4   :  { %2530 = vpow2.f32 %v385_v39 }
 0x3c7   :  { %v374_v41 = vpop.xlane.xlu1 %373 }
 0x3c8   :  { %v382_v42 = vsub.f32 %v366_v22, %v374_v41 }
 0x3ca   :  { %v2531_v43 = vpop.eup %2530  ;;  %v387_v40 = vmul.f32 1.442695, %v382_v42 }
 0x3cb   :  { %v393_v44 = vsel %vm133_vm0, %v2531_v43, 0.0 }
 0x3cc   :  { %2532 = vpow2.f32 %v387_v40  ;;  %394 = vadd.xlane.f32.xlu0 %v393_v44 }
 0x3cf   :  { %v377_v46 = vpop.xlane.xlu1 %376 }
 0x3d0   :  { %v383_v47 = vsub.f32 %v367_v28, %v377_v46 }
 0x3d2   :  { %v2533_v48 = vpop.eup %2532  ;;  %v389_v49 = vmul.f32 1.442695, %v383_v47 }
 0x3d3   :  { %v396_v51 = vsel %vm133_vm0, %v2533_v48, 0.0 }
 0x3d4   :  { %2534 = vpow2.f32 %v389_v49  ;;  %397 = vadd.xlane.f32.xlu1 %v396_v51 }
 0x3d7   :  { %v380_v52 = vpop.xlane.xlu2 %379 }
 0x3d8   :  { %v384_v45 = vsub.f32 %v368_v34, %v380_v52 }
 0x3da   :  { %v2535_v53 = vpop.eup %2534  ;;  %v391_v54 = vmul.f32 1.442695, %v384_v45 }
 0x3db   :  { %v399_v56 = vsel %vm133_vm0, %v2535_v53, 0.0 }
 0x3dc   :  { %2536 = vpow2.f32 %v391_v54  ;;  %400 = vadd.xlane.f32.xlu2 %v399_v56 }
 0x3e2   :  { %v2537_v57 = vpop.eup %2536 }
 0x3e3   :  { %v402_v58 = vsel %vm133_vm0, %v2537_v57, 0.0 }
 0x3e4   :  { %403 = vadd.xlane.f32.xlu0 %v402_v58 }
 0x3e7   :  { %v418_v59 = vpop.permute.xlu1 %417 }
 0x3e8   :  { %433 = vmatpush.bf16.msra.mxu3 %v418_v59 }
 0x3ed   :  { %415 = vrot.lane.b32.xlu1 %v3052_v3, %s2821_s28 }
 0x3f4   :  { %453 = vrot.lane.b32.xlu2 %v3052_v3, %s2822_s26 }
 0x3f5   :  { %455 = vrot.lane.b32.xlu1 %v3056_v7, %s2822_s26 }
 0x3f8   :  { %449 = vrot.lane.b32.xlu0 %v3052_v3, %s3938_s29 }
 0x3fc   :  { %637 = vrot.lane.b32.xlu2 %v3052_v3, %s2824_s0 }
 0x3fd   :  { %451 = vrot.lane.b32.xlu1 %v3056_v7, %s3938_s29 }
 0x400   :  { %796 = vrot.lane.b32.xlu0 %v3052_v3, %s2825_s4 }
 0x404   :  { %792 = vrot.lane.b32.xlu2 %v3052_v3, %s3934_s23 }
 0x405   :  { %639 = vrot.lane.b32.xlu1 %v3056_v7, %s2824_s0 }
 0x408   :  { %635 = vrot.lane.b32.xlu0 %v3056_v7, %s3936_s6 }
 0x40d   :  { %798 = vrot.lane.b32.xlu1 %v3056_v7, %s2825_s4 }
 0x415   :  { %633 = vrot.lane.b32.xlu1 %v3052_v3, %s3936_s6 }
 0x41d   :  { %794 = vrot.lane.b32.xlu1 %v3056_v7, %s3934_s23 }
 0x43f   :  { %v395_v61 = vpop.xlane.xlu0 %394 }
 0x447   :  { %v398_v60 = vpop.xlane.xlu1 %397 }
 0x448   :  { %2538 = vrcp.f32 %v398_v60 }
 0x449   :  { %2540 = vrcp.f32 %v395_v61 }
 0x44e   :  { %v2539_v62 = vpop.eup %2538 }
 0x44f   :  { %v2541_v63 = vpop.eup %2540  ;;  %v410_v1 = vmul.f32 %v2539_v62, %v2533_v48  ;;  %v401_v8 = vpop.xlane.xlu2 %400 }
 0x450   :  { %v409_v55 = vmul.f32 %v2541_v63, %v2531_v43 }
 0x452   :  { %v413_v6 = vpack.c.bf16 %v410_v1, %v409_v55 }
 0x457   :  { %v404_v5 = vpop.xlane.xlu0 %403  ;;  %v454_v14 = vpop.permute.xlu2 %453 }
 0x458   :  { %2542 = vrcp.f32 %v404_v5  ;;  %v464_v20 = vsel %vm329_vm14, %v454_v14, 0 }
 0x459   :  { %2544 = vrcp.f32 %v401_v8 }
 0x45e   :  { %v2543_v11 = vpop.eup %2542 }
 0x45f   :  { %v416_v2 = vpop.permute.xlu1 %415  ;;  %v2545_v12 = vpop.eup %2544  ;;  %v412_v15 = vmul.f32 %v2543_v11, %v2537_v57 }
 0x460   :  { %434 = vmatpush.bf16.msra.mxu3 %v416_v2  ;;  %v411_v18 = vmul.f32 %v2545_v12, %v2535_v53  ;;  %v638_v28 = vpop.permute.xlu2 %637 }
 0x461   :  { %v648_v31 = vsel %vm329_vm14, %v638_v28, 0 }
 0x462   :  { %v414_v22 = vpack.c.bf16 %v412_v15, %v411_v18 }
 0x463   :  { %2392 = vmatmul.msk.bf16.vlgmr.msra.gmra.mxu3 %vm133_vm0, %v413_v6 }
 0x467   :  { %v456_v9 = vpop.permute.xlu1 %455 }
 0x468   :  { %v467_v10 = vsel %vm329_vm14, %v456_v9, 0  ;;  %v793_v61 = vpop.permute.xlu2 %792 }
 0x469   :  { %475 = vmatpush.bf16.xpose.msrb.mxu0 %v467_v10 }
 0x46a   :  { %v450_v23 = vpop.permute.xlu0 %449 }
 0x46f   :  { %v452_v17 = vpop.permute.xlu1 %451 }
 0x471   :  { %476 = vmatpush.bf16.xpose.msrb.mxu0 %v464_v20 }
 0x472   :  { %v797_v34 = vpop.permute.xlu0 %796 }
 0x473   :  { %2393 = vmatmul.msk.bf16.gmra.mxu3 %vm133_vm0, %v414_v22  ;;  %v807_v35 = vsel %vm329_vm14, %v797_v34, 0 }
 0x477   :  { %v640_v24 = vpop.permute.xlu1 %639 }
 0x478   :  { %v651_v27 = vsel %vm329_vm14, %v640_v24, 0  ;;  %2394 = vmatmul.msk.bf16.vlgmr.msrb.gmra.mxu0 %vm329_vm14, %v450_v23 }
 0x479   :  { %659 = vmatpush.bf16.xpose.msra.mxu0 %v651_v27 }
 0x47a   :  { %v636_v38 = vpop.permute.xlu0 %635 }
 0x47f   :  { %v799_v30 = vpop.permute.xlu1 %798 }
 0x480   :  { %v810_v33 = vsel %vm329_vm14, %v799_v30, 0 }
 0x481   :  { %660 = vmatpush.bf16.xpose.msra.mxu0 %v648_v31  ;;  %818 = vmatpush.bf16.xpose.msra.mxu2 %v810_v33 }
 0x487   :  { %v634_v36 = vpop.permute.xlu1 %633 }
 0x488   :  { %2395 = vmatmul.msk.bf16.gmra.mxu0 %vm329_vm14, %v452_v17 }
 0x489   :  { %819 = vmatpush.bf16.xpose.msra.mxu2 %v807_v35 }
 0x48f   :  { %v795_v5 = vpop.permute.xlu1 %794 }
 0x498   :  { %2402 = vmatmul.msk.bf16.vlgmr.msra.gmra.mxu0 %vm329_vm14, %v634_v36 }
 0x4a8   :  { %2403 = vmatmul.msk.bf16.gmra.mxu0 %vm329_vm14, %v636_v38 }
 0x4e6   :  { %v436_v39 = vpop.f32.mrf.mxu3 }
 0x4ee   :  { %v438_v41 = vpop.f32.mrf.mxu3 }
 0x4ef   :  { %v446_v42 = vpack.c.bf16 %v438_v41, %v436_v39 }
 0x4f1   :  { %2400 = vmatmul.msk.bf16.vlgmr.msrb.gmra.mxu2 %vm329_vm14, %v446_v42 }
 0x4f5   :  { %v478_v43 = vpop.f32.mrf.mxu0 }
 0x4f6   :  { %v488_v40 = vmul.f32 0.35355338, %v478_v43  ;;  %v441_v44 = vpop.f32.mrf.mxu3 }
 0x4f8   :  { %v492_v46 = vadd.f32 %v488_v40, %v3069_v13 }
 0x4fa   :  { %v496_v47 = vsel %vm133_vm0, %v492_v46, -inf }
 0x4fb   :  { %497 = vmax.xlane.f32.xlu2 %v496_v47 }
 0x4fd   :  { %v480_v48 = vpop.f32.mrf.mxu0 }
 0x4fe   :  { %v489_v49 = vmul.f32 0.35355338, %v480_v48  ;;  %v443_v51 = vpop.f32.mrf.mxu3 }
 0x4ff   :  { %v447_v52 = vpack.c.bf16 %v443_v51, %v441_v44 }
 0x500   :  { %v493_v45 = vadd.f32 %v489_v49, %v3076_v19 }
 0x501   :  { %2401 = vmatmul.msk.bf16.gmra.mxu2 %vm329_vm14, %v447_v52 }
 0x502   :  { %v499_v53 = vsel %vm133_vm0, %v493_v45, -inf }
 0x503   :  { %500 = vmax.xlane.f32.xlu0 %v499_v53 }
 0x505   :  { %v483_v54 = vpop.f32.mrf.mxu0 }
 0x506   :  { %v490_v56 = vmul.f32 0.35355338, %v483_v54 }
 0x508   :  { %v494_v57 = vadd.f32 %v490_v56, %v3083_v26 }
 0x50a   :  { %v502_v58 = vsel %vm133_vm0, %v494_v57, -inf }
 0x50b   :  { %503 = vmax.xlane.f32.xlu1 %v502_v58 }
 0x50d   :  { %v485_v59 = vpop.f32.mrf.mxu0 }
 0x50e   :  { %v491_v60 = vmul.f32 0.35355338, %v485_v59 }
 0x510   :  { %v495_v62 = vadd.f32 %v491_v60, %v3090_v32 }
 0x511   :  { %2408 = vmatmul.msk.bf16.vlgmr.msra.gmra.mxu2 %vm329_vm14, %v793_v61 }
 0x512   :  { %v505_v63 = vsel %vm133_vm0, %v495_v62, -inf }
 0x513   :  { %506 = vmax.xlane.f32.xlu2 %v505_v63 }
 0x515   :  { %v662_v0 = vpop.f32.mrf.mxu0 }
 0x516   :  { %v672_v1 = vmul.f32 0.35355338, %v662_v0 }
 0x518   :  { %v676_v50 = vadd.f32 %v672_v1, %v3069_v13 }
 0x51a   :  { %v680_v2 = vsel %vm133_vm0, %v676_v50, -inf }
 0x51b   :  { %681 = vmax.xlane.f32.xlu0 %v680_v2 }
 0x51d   :  { %v664_v55 = vpop.f32.mrf.mxu0 }
 0x51e   :  { %v673_v4 = vmul.f32 0.35355338, %v664_v55 }
 0x520   :  { %v3156_v6 = vadd.f32 %v673_v4, %v3076_v19 }
 0x521   :  { %2409 = vmatmul.msk.bf16.gmra.mxu2 %vm329_vm14, %v795_v5 }
 0x522   :  { %v683_v8 = vsel %vm133_vm0, %v3156_v6, -inf }
 0x523   :  { %684 = vmax.xlane.f32.xlu2 %v683_v8 }
 0x525   :  { %v667_v9 = vpop.f32.mrf.mxu0 }
 0x526   :  { %v674_v10 = vmul.f32 0.35355338, %v667_v9 }
 0x528   :  { %v3162_v11 = vadd.f32 %v674_v10, %v3083_v26 }
 0x52a   :  { %v686_v12 = vsel %vm133_vm0, %v3162_v11, -inf }
 0x52b   :  { %687 = vmax.xlane.f32.xlu2 %v686_v12 }
 0x52d   :  { %v669_v14 = vpop.f32.mrf.mxu0 }
 0x52e   :  { %v675_v15 = vmul.f32 0.35355338, %v669_v14 }
 0x530   :  { %v3167_v17 = vadd.f32 %v675_v15, %v3090_v32 }
 0x532   :  { %v689_v18 = vsel %vm133_vm0, %v3167_v17, -inf }
 0x533   :  { %690 = vmax.xlane.f32.xlu1 %v689_v18 }
 0x54c   :  { %542 = vrot.lane.b32.xlu1 %v3052_v3, %s3932_s2 }
 0x56e   :  { %v498_v20 = vpop.xlane.xlu2 %497 }
 0x56f   :  { %v508_v22 = vsub.f32 %v492_v46, %v498_v20 }
 0x571   :  { %v512_v23 = vmul.f32 1.442695, %v508_v22 }
 0x573   :  { %2546 = vpow2.f32 %v512_v23 }
 0x574   :  { %v3173_v24 = vpop.f32.mrf.mxu2 }
 0x576   :  { %v501_v27 = vpop.xlane.xlu0 %500 }
 0x577   :  { %v509_v28 = vsub.f32 %v493_v45, %v501_v27 }
 0x579   :  { %v3175_v30 = vpop.eup %2546  ;;  %v514_v31 = vmul.f32 1.442695, %v509_v28 }
 0x57a   :  { %v520_v33 = vsel %vm133_vm0, %v3175_v30, 0.0 }
 0x57b   :  { %2548 = vpow2.f32 %v514_v31  ;;  %521 = vadd.xlane.f32.xlu0 %v520_v33 }
 0x57c   :  { %v3179_v34 = vpop.f32.mrf.mxu2 }
 0x57e   :  { %v504_v35 = vpop.xlane.xlu1 %503 }
 0x57f   :  { %v510_v36 = vsub.f32 %v494_v57, %v504_v35 }
 0x581   :  { %v3181_v38 = vpop.eup %2548  ;;  %v516_v39 = vmul.f32 1.442695, %v510_v36 }
 0x582   :  { %v523_v41 = vsel %vm133_vm0, %v3181_v38, 0.0 }
 0x583   :  { %2550 = vpow2.f32 %v516_v39  ;;  %524 = vadd.xlane.f32.xlu2 %v523_v41 }
 0x584   :  { %v3185_v42 = vpop.f32.mrf.mxu2 }
 0x586   :  { %v507_v43 = vpop.xlane.xlu2 %506 }
 0x587   :  { %v511_v40 = vsub.f32 %v495_v62, %v507_v43 }
 0x589   :  { %v3187_v44 = vpop.eup %2550  ;;  %v518_v46 = vmul.f32 1.442695, %v511_v40 }
 0x58a   :  { %v526_v47 = vsel %vm133_vm0, %v3187_v44, 0.0 }
 0x58b   :  { %2552 = vpow2.f32 %v518_v46  ;;  %527 = vadd.xlane.f32.xlu0 %v526_v47 }
 0x58c   :  { %v3191_v48 = vpop.f32.mrf.mxu2 }
 0x58e   :  { %v682_v49 = vpop.xlane.xlu0 %681 }
 0x58f   :  { %v692_v51 = vsub.f32 %v676_v50, %v682_v49 }
 0x591   :  { %v3193_v52 = vpop.eup %2552  ;;  %v696_v45 = vmul.f32 1.442695, %v692_v51 }
 0x592   :  { %v529_v53 = vsel %vm133_vm0, %v3193_v52, 0.0 }
 0x593   :  { %2554 = vpow2.f32 %v696_v45  ;;  %530 = vadd.xlane.f32.xlu0 %v529_v53 }
 0x594   :  { %v821_v54 = vpop.f32.mrf.mxu2 }
 0x595   :  { %v831_v56 = vmul.f32 0.35355338, %v821_v54 }
 0x596   :  { %v685_v5 = vpop.xlane.xlu2 %684 }
 0x597   :  { %v3198_v57 = vadd.f32 %v831_v56, %v3069_v13  ;;  %v693_v9 = vsub.f32 %v3156_v6, %v685_v5 }
 0x599   :  { %v3200_v58 = vpop.eup %2554  ;;  %v839_v59 = vsel %vm133_vm0, %v3198_v57, -inf  ;;  %v698_v10 = vmul.f32 1.442695, %v693_v9 }
 0x59a   :  { %840 = vmax.xlane.f32.xlu1 %v839_v59  ;;  %v704_v60 = vsel %vm133_vm0, %v3200_v58, 0.0 }
 0x59b   :  { %544 = vrot.lane.b32.xlu2 %v3056_v7, %s3932_s2  ;;  %705 = vadd.xlane.f32.xlu0 %v704_v60  ;;  %2556 = vpow2.f32 %v698_v10 }
 0x59c   :  { %v823_v61 = vpop.f32.mrf.mxu2 }
 0x59d   :  { %v832_v62 = vmul.f32 0.35355338, %v823_v61 }
 0x59f   :  { %v3209_v63 = vadd.f32 %v832_v62, %v3076_v19 }
 0x5a1   :  { %v842_v13 = vsel %vm133_vm0, %v3209_v63, -inf }
 0x5a3   :  { %843 = vmax.xlane.f32.xlu0 %v842_v13 }
 0x5a4   :  { %v826_v0 = vpop.f32.mrf.mxu2 }
 0x5a5   :  { %v833_v1 = vmul.f32 0.35355338, %v826_v0 }
 0x5a6   :  { %v691_v6 = vpop.xlane.xlu1 %690 }
 0x5a7   :  { %v3214_v50 = vadd.f32 %v833_v1, %v3083_v26  ;;  %v3224_v26 = vpop.eup %2556  ;;  %v695_v14 = vsub.f32 %v3167_v17, %v691_v6 }
 0x5a8   :  { %v707_v12 = vsel %vm133_vm0, %v3224_v26, 0.0 }
 0x5a9   :  { %v845_v2 = vsel %vm133_vm0, %v3214_v50, -inf  ;;  %v702_v20 = vmul.f32 1.442695, %v695_v14 }
 0x5aa   :  { %846 = vmax.xlane.f32.xlu1 %v845_v2 }
 0x5ac   :  { %v828_v55 = vpop.f32.mrf.mxu2 }
 0x5ad   :  { %v834_v4 = vmul.f32 0.35355338, %v828_v55 }
 0x5af   :  { %v3219_v8 = vadd.f32 %v834_v4, %v3090_v32  ;;  %v688_v32 = vpop.xlane.xlu2 %687 }
 0x5b0   :  { %v694_v56 = vsub.f32 %v3162_v11, %v688_v32 }
 0x5b1   :  { %v848_v19 = vsel %vm133_vm0, %v3219_v8, -inf }
 0x5b2   :  { %849 = vmax.xlane.f32.xlu0 %v848_v19 }
 0x5be   :  { %v543_v33 = vpop.permute.xlu1 %542 }
 0x5c3   :  { %887 = vrot.lane.b32.xlu1 %v3056_v7, %s3930_s25 }
 0x5c4   :  { %708 = vadd.xlane.f32.xlu2 %v707_v12 }
 0x5c6   :  { %728 = vrot.lane.b32.xlu0 %v3056_v7, %s3928_s27 }
 0x5dc   :  { %726 = vrot.lane.b32.xlu2 %v3052_v3, %s3928_s27  ;;  %s3956_s27 = smov 40  }
 0x5ee   :  { %v522_v15 = vpop.xlane.xlu0 %521 }
 0x5f6   :  { %v525_v18 = vpop.xlane.xlu2 %524 }
 0x5f7   :  { %2558 = vrcp.f32 %v525_v18  ;;  %v318_v18 = vld [vmem:[%s3909_s9 + $0x8] sm:$0xff] }
 0x5f8   :  { %2560 = vrcp.f32 %v522_v15 }
 0x5f9   :  { %2562 = vpow2.f32 %v702_v20 }
 0x5fd   :  { %v2559_v22 = vpop.eup %2558 }
 0x5fe   :  { %v528_v23 = vpop.xlane.xlu0 %527  ;;  %v545_v27 = vpop.permute.xlu2 %544  ;;  %v537_v7 = vmul.f32 %v2559_v22, %v3181_v38 }
 0x5ff   :  { %v2561_v28 = vpop.eup %2560  ;;  %560 = vmatpush.bf16.msrb.mxu1 %v545_v27 }
 0x600   :  { %v3236_v31 = vpop.eup %2562  ;;  %v536_v35 = vmul.f32 %v2561_v28, %v3175_v30 }
 0x601   :  { %v713_v17 = vsel %vm133_vm0, %v3236_v31, 0.0 }
 0x602   :  { %v540_v36 = vpack.c.bf16 %v537_v7, %v536_v35 }
 0x603   :  { %561 = vmatpush.bf16.msrb.mxu1 %v543_v33 }
 0x605   :  { %714 = vadd.xlane.f32.xlu2 %v713_v17 }
 0x606   :  { %v531_v39 = vpop.xlane.xlu0 %530  ;;  %2396 = vmatmul.msk.bf16.vlgmr.msrb.gmra.mxu1 %vm133_vm0, %v540_v36 }
 0x607   :  { %2564 = vrcp.f32 %v531_v39 }
 0x608   :  { %2566 = vrcp.f32 %v528_v23 }
 0x60d   :  { %v2565_v41 = vpop.eup %2564  ;;  %v841_v43 = vpop.xlane.xlu1 %840 }
 0x60e   :  { %v851_v38 = vsub.f32 %v3198_v57, %v841_v43  ;;  %v706_v40 = vpop.xlane.xlu0 %705  ;;  %v2567_v46 = vpop.eup %2566  ;;  %v539_v30 = vmul.f32 %v2565_v41, %v3193_v52  ;;  %v700_v52 = vmul.f32 1.442695, %v694_v56 }
 0x60f   :  { %v538_v49 = vmul.f32 %v2567_v46, %v3187_v44 }
 0x610   :  { %v855_v47 = vmul.f32 1.442695, %v851_v38  ;;  %v319_v38 = vld [vmem:[%s3909_s9 + $0x10] sm:$0xff] }
 0x611   :  { %v541_v51 = vpack.c.bf16 %v539_v30, %v538_v49  ;;  %v759_v30 = vpack.c.bf16 %v319_v38, %v319_v38 }
 0x612   :  { %2568 = vpow2.f32 %v855_v47 }
 0x616   :  { %v844_v45 = vpop.xlane.xlu0 %843  ;;  %2397 = vmatmul.msk.bf16.gmra.mxu1 %vm133_vm0, %v541_v51 }
 0x617   :  { %v852_v53 = vsub.f32 %v3209_v63, %v844_v45 }
 0x618   :  { %v3247_v54 = vpop.eup %2568 }
 0x619   :  { %v857_v59 = vmul.f32 1.442695, %v852_v53  ;;  %v863_v57 = vsel %vm133_vm0, %v3247_v54, 0.0  ;;  %v767_v53 = vsel %vm582_vm15, %v759_v30, 0 }
 0x61a   :  { %864 = vadd.xlane.f32.xlu1 %v863_v57 }
 0x61b   :  { %2570 = vpow2.f32 %v857_v59 }
 0x61c   :  { %2572 = vpow2.f32 %v700_v52 }
 0x61d   :  { %v847_v60 = vpop.xlane.xlu1 %846 }
 0x61e   :  { %v853_v44 = vsub.f32 %v3214_v50, %v847_v60 }
 0x620   :  { %v859_v63 = vmul.f32 1.442695, %v853_v44 }
 0x621   :  { %v2571_v61 = vpop.eup %2570 }
 0x622   :  { %v866_v62 = vsel %vm133_vm0, %v2571_v61, 0.0  ;;  %v2573_v13 = vpop.eup %2572  ;;  %2574 = vpow2.f32 %v859_v63 }
 0x623   :  { %867 = vadd.xlane.f32.xlu0 %v866_v62  ;;  %v710_v11 = vsel %vm133_vm0, %v2573_v13, 0.0  ;;  %2576 = vrcp.f32 %v706_v40 }
 0x625   :  { %v850_v1 = vpop.xlane.xlu0 %849 }
 0x628   :  { %v3255_v0 = vpop.eup %2574 }
 0x629   :  { %v869_v2 = vsel %vm133_vm0, %v3255_v0, 0.0  ;;  %v2577_v5 = vpop.eup %2576 }
 0x62a   :  { %v720_v9 = vmul.f32 %v2577_v5, %v3200_v58  ;;  %v575_v58 = vpack.c.bf16 %v318_v18, %v318_v18 }
 0x62b   :  { %711 = vadd.xlane.f32.xlu0 %v710_v11 }
 0x633   :  { %885 = vrot.lane.b32.xlu1 %v3052_v3, %s3930_s25  ;;  %870 = vadd.xlane.f32.xlu0 %v869_v2  ;;  %v854_v3 = vsub.f32 %v3219_v8, %v850_v1  ;;  %s3954_s25 = smov 104  }
 0x635   :  { %v888_v50 = vpop.permute.xlu1 %887  ;;  %v861_v6 = vmul.f32 1.442695, %v854_v3 }
 0x636   :  { %903 = vmatpush.bf16.msrb.mxu0 %v888_v50 }
 0x637   :  { %v709_v55 = vpop.xlane.xlu2 %708 }
 0x638   :  { %2578 = vrcp.f32 %v709_v55  ;;  %v729_v4 = vpop.permute.xlu0 %728 }
 0x639   :  { %744 = vmatpush.bf16.msra.mxu1 %v729_v4  ;;  %2580 = vpow2.f32 %v861_v6 }
 0x63e   :  { %v2579_v19 = vpop.eup %2578 }
 0x63f   :  { %v721_v10 = vmul.f32 %v2579_v19, %v3224_v26  ;;  %v727_v12 = vpop.permute.xlu2 %726  ;;  %v2581_v14 = vpop.eup %2580  ;;  %v584_v26 = vsel %vm582_vm15, %v575_v58, 0 }
 0x640   :  { %745 = vmatpush.bf16.msra.mxu1 %v727_v12  ;;  %v872_v15 = vsel %vm133_vm0, %v2581_v14, 0.0  ;;  %593 = vmatpush.bf16.msrb.mxu3 %v584_v26 }
 0x641   :  { %v724_v32 = vpack.c.bf16 %v721_v10, %v720_v9 }
 0x643   :  { %2404 = vmatmul.msk.bf16.vlgmr.msra.gmra.mxu1 %vm133_vm0, %v724_v32 }
 0x644   :  { %776 = vmatpush.bf16.msra.mxu3 %v767_v53 }
 0x65d   :  { %873 = vadd.xlane.f32.xlu1 %v872_v15 }
 0x678   :  { %v715_v7 = vpop.xlane.xlu2 %714 }
 0x683   :  { %v563_v20 = vpop.f32.mrf.mxu1 }
 0x68b   :  { %v565_v22 = vpop.f32.mrf.mxu1 }
 0x68c   :  { %v573_v23 = vpack.c.bf16 %v565_v22, %v563_v20  ;;  %v2504_v20 = vld [vmem:[%s3910_s10] ss:$0 sm:$0xff] }
 0x68d   :  { %v865_v28 = vpop.xlane.xlu1 %864 }
 0x68e   :  { %2398 = vmatmul.msk.bf16.vlgmr.msrb.gmra.mxu3 %vm329_vm14, %v573_v23 }
 0x693   :  { %v568_v8 = vpop.f32.mrf.mxu1 }
 0x696   :  { %v868_v27 = vpop.xlane.xlu0 %867 }
 0x697   :  { %2582 = vrcp.f32 %v868_v27 }
 0x698   :  { %2584 = vrcp.f32 %v865_v28 }
 0x699   :  { %2586 = vrcp.f32 %v715_v7 }
 0x69b   :  { %v570_v33 = vpop.f32.mrf.mxu1 }
 0x69c   :  { %v574_v35 = vpack.c.bf16 %v570_v33, %v568_v8 }
 0x69d   :  { %v2583_v36 = vpop.eup %2582 }
 0x69e   :  { %v712_v17 = vpop.xlane.xlu0 %711  ;;  %2399 = vmatmul.msk.bf16.gmra.mxu3 %vm329_vm14, %v574_v35  ;;  %v2585_v39 = vpop.eup %2584  ;;  %v880_v43 = vmul.f32 %v2583_v36, %v2571_v61 }
 0x69f   :  { %2588 = vrcp.f32 %v712_v17  ;;  %v2587_v41 = vpop.eup %2586  ;;  %v879_v46 = vmul.f32 %v2585_v39, %v3247_v54 }
 0x6a0   :  { %v723_v51 = vmul.f32 %v2587_v41, %v3236_v31 }
 0x6a1   :  { %v883_v45 = vpack.c.bf16 %v880_v43, %v879_v46 }
 0x6a5   :  { %v2589_v40 = vpop.eup %2588  ;;  %v886_v47 = vpop.permute.xlu1 %885 }
 0x6a6   :  { %904 = vmatpush.bf16.msrb.mxu0 %v886_v47  ;;  %v722_v49 = vmul.f32 %v2589_v40, %v2573_v13  ;;  %v871_v54 = vpop.xlane.xlu0 %870  ;;  %v320_v13 = vld [vmem:[%s3909_s9 + $0x18] sm:$0xff] }
 0x6a7   :  { %2590 = vrcp.f32 %v871_v54  ;;  %v918_v11 = vpack.c.bf16 %v320_v13, %v320_v13 }
 0x6a8   :  { %v725_v56 = vpack.c.bf16 %v723_v51, %v722_v49 }
 0x6a9   :  { %2410 = vmatmul.msk.bf16.vlgmr.msrb.gmra.mxu0 %vm133_vm0, %v883_v45  ;;  %v926_v1 = vsel %vm582_vm15, %v918_v11, 0 }
 0x6aa   :  { %2405 = vmatmul.msk.bf16.gmra.mxu1 %vm133_vm0, %v725_v56 }
 0x6ab   :  { %935 = vmatpush.bf16.msrb.mxu1 %v926_v1 }
 0x6ad   :  { %v2591_v61 = vpop.eup %2590 }
 0x6ae   :  { %v881_v44 = vmul.f32 %v2591_v61, %v3255_v0 }
 0x6c0   :  { %v747_v59 = vpop.f32.mrf.mxu1 }
 0x6c8   :  { %v749_v57 = vpop.f32.mrf.mxu1 }
 0x6c9   :  { %v757_v52 = vpack.c.bf16 %v749_v57, %v747_v59 }
 0x6cb   :  { %2406 = vmatmul.msk.bf16.vlgmr.msra.gmra.mxu3 %vm329_vm14, %v757_v52 }
 0x6d0   :  { %v874_v60 = vpop.xlane.xlu1 %873 }
 0x6d1   :  { %2592 = vrcp.f32 %v874_v60 }
 0x6d7   :  { %v2593_v31 = vpop.eup %2592 }
 0x6d8   :  { %v882_v62 = vmul.f32 %v2593_v31, %v2581_v14 }
 0x6da   :  { %v884_v63 = vpack.c.bf16 %v882_v62, %v881_v44 }
 0x6dc   :  { %2411 = vmatmul.msk.bf16.gmra.mxu0 %vm133_vm0, %v884_v63 }
 0x711   :  { %v595_v12 = vpop.f32.mrf.mxu3 }
 0x712   :  { %v624_v15 = vadd.f32 %v3173_v24, %v595_v12  ;;  %v1068_v12 = vld [vmem:[%s3913_s13 + $0x8] sm:$0xff] }
 0x719   :  { %v597_v32 = vpop.f32.mrf.mxu3 }
 0x71a   :  { %v626_v8 = vadd.f32 %v3179_v34, %v597_v32 }
 0x721   :  { %v600_v3 = vpop.f32.mrf.mxu3 }
 0x722   :  { %v629_v34 = vadd.f32 %v3185_v42, %v600_v3 }
 0x726   :  { %v906_v2 = vpop.f32.mrf.mxu0 }
 0x727   :  { %v752_v50 = vpop.f32.mrf.mxu1 }
 0x729   :  { %v602_v6 = vpop.f32.mrf.mxu3 }
 0x72a   :  { %v631_v46 = vadd.f32 %v3191_v48, %v602_v6 }
 0x72e   :  { %v908_v55 = vpop.f32.mrf.mxu0 }
 0x72f   :  { %v916_v4 = vpack.c.bf16 %v908_v55, %v906_v2  ;;  %v754_v5 = vpop.f32.mrf.mxu1 }
 0x730   :  { %v758_v19 = vpack.c.bf16 %v754_v5, %v752_v50  ;;  %v1070_v5 = vld [vmem:[%s3913_s13 + $0x18] sm:$0xff] }
 0x731   :  { %2412 = vmatmul.msk.bf16.vlgmr.msrb.gmra.mxu1 %vm329_vm14, %v916_v4  ;;  %v1069_v4 = vld [vmem:[%s3913_s13 + $0x10] sm:$0xff] }
 0x732   :  { %2407 = vmatmul.msk.bf16.gmra.mxu3 %vm329_vm14, %v758_v19  ;;  %v1074_v19 = vpack.c.bf16 %v1070_v5, %v1069_v4 }
 0x734   :  { %1091 = vmatpush.bf16.msrb.mxu3 %v1074_v19 }
 0x74e   :  { %v778_v14 = vpop.f32.mrf.mxu3 }
 0x74f   :  { %v788_v18 = vadd.f32 %v778_v14, %v624_v15 }
 0x756   :  { %v780_v23 = vpop.f32.mrf.mxu3 }
 0x757   :  { %v789_v28 = vadd.f32 %v780_v23, %v626_v8 }
 0x759   :  { %v911_v0 = vpop.f32.mrf.mxu0 }
 0x761   :  { %v913_v9 = vpop.f32.mrf.mxu0 }
 0x762   :  { %v917_v10 = vpack.c.bf16 %v913_v9, %v911_v0 }
 0x764   :  { %2413 = vmatmul.msk.bf16.gmra.mxu1 %vm329_vm14, %v917_v10  ;;  %v1067_v10 = vld [vmem:[%s3913_s13] sm:$0xff] }
 0x765   :  { %v1073_v32 = vpack.c.bf16 %v1068_v12, %v1067_v10  ;;  %v1154_v10 = vld [vmem:[%s3915_s15 + $0x70] sm:$0xff] }
 0x767   :  { %1092 = vmatpush.bf16.msrb.mxu3 %v1073_v32  ;;  %v1153_v32 = vld [vmem:[%s3915_s15 + $0x68] sm:$0xff] }
 0x7ae   :  { %v937_v58 = vpop.f32.mrf.mxu1 }
 0x7af   :  { %v947_v26 = vadd.f32 %v937_v58, %v788_v18 }
 0x7b1   :  { %v951_v22 = vadd.f32 %v947_v26, %v2983_v16 }
 0x7b3   :  { %v3296_v27 = vadd.f32 %v2504_v20, %v951_v22 }
 0x7b5   :  { %v965_v7 = vsel %vm133_vm0, %v3296_v27, 0.0  ;;  %v783_v16 = vpop.f32.mrf.mxu3 }
 0x7b6   :  { %966 = vadd.xlane.f32.xlu0 %v965_v7  ;;  %v939_v24 = vpop.f32.mrf.mxu1  ;;  %v790_v39 = vadd.f32 %v783_v16, %v629_v34 }
 0x7b7   :  { %v948_v33 = vadd.f32 %v939_v24, %v789_v28 }
 0x7b9   :  { %v952_v35 = vadd.f32 %v948_v33, %v2987_v21 }
 0x7bb   :  { %v3301_v17 = vadd.f32 %v2504_v20, %v952_v35 }
 0x7bd   :  { %v968_v36 = vsel %vm133_vm0, %v3301_v17, 0.0  ;;  %v785_v40 = vpop.f32.mrf.mxu3 }
 0x7be   :  { %969 = vadd.xlane.f32.xlu0 %v968_v36  ;;  %v791_v21 = vadd.f32 %v785_v40, %v631_v46  ;;  %v2505_v36 = vld [vmem:[#allocation7] ss:$0 sm:$0xff] }
 0x7e1   :  { %v942_v41 = vpop.f32.mrf.mxu1 }
 0x7e2   :  { %v949_v43 = vadd.f32 %v942_v41, %v790_v39  ;;  %v2506_v41 = vld [vmem:[%s3912_s12] ss:$0 sm:$0xff] }
 0x7e4   :  { %v953_v38 = vadd.f32 %v949_v43, %v2991_v25 }
 0x7e6   :  { %v3308_v47 = vadd.f32 %v2504_v20, %v953_v38 }
 0x7e8   :  { %v971_v30 = vsel %vm133_vm0, %v3308_v47, 0.0 }
 0x7e9   :  { %v944_v49 = vpop.f32.mrf.mxu1  ;;  %972 = vadd.xlane.f32.xlu0 %v971_v30 }
 0x7ea   :  { %v950_v51 = vadd.f32 %v944_v49, %v791_v21 }
 0x7ec   :  { %v954_v45 = vadd.f32 %v950_v51, %v2995_v29 }
 0x7ee   :  { %v3313_v42 = vadd.f32 %v2504_v20, %v954_v45 }
 0x7f0   :  { %v974_v53 = vsel %vm133_vm0, %v3313_v42, 0.0 }
 0x7f1   :  { %975 = vadd.xlane.f32.xlu0 %v974_v53 }
 0x829   :  { %v967_v25 = vpop.xlane.xlu0 %966 }
 0x82a   :  { %v977_v48 = vmul.f32 %v967_v25, %v2999_v37 }
 0x82c   :  { %v981_v56 = vsub.f32 %v3296_v27, %v977_v48 }
 0x82e   :  { %v985_v59 = vmul.f32 %v981_v56, %v981_v56 }
 0x830   :  { %v989_v57 = vsel %vm133_vm0, %v985_v59, 0.0 }
 0x831   :  { %990 = vadd.xlane.f32.xlu2 %v989_v57  ;;  %v970_v52 = vpop.xlane.xlu0 %969 }
 0x832   :  { %v978_v54 = vmul.f32 %v970_v52, %v2999_v37 }
 0x834   :  { %v982_v29 = vsub.f32 %v3301_v17, %v978_v54 }
 0x836   :  { %v986_v60 = vmul.f32 %v982_v29, %v982_v29 }
 0x838   :  { %v992_v61 = vsel %vm133_vm0, %v986_v60, 0.0 }
 0x839   :  { %993 = vadd.xlane.f32.xlu0 %v992_v61 }
 0x85c   :  { %v973_v31 = vpop.xlane.xlu0 %972 }
 0x85d   :  { %v979_v44 = vmul.f32 %v973_v31, %v2999_v37 }
 0x85f   :  { %v3325_v62 = vsub.f32 %v3308_v47, %v979_v44 }
 0x861   :  { %v987_v63 = vmul.f32 %v3325_v62, %v3325_v62 }
 0x863   :  { %v995_v13 = vsel %vm133_vm0, %v987_v63, 0.0 }
 0x864   :  { %996 = vadd.xlane.f32.xlu2 %v995_v13  ;;  %v976_v11 = vpop.xlane.xlu0 %975 }
 0x865   :  { %v980_v1 = vmul.f32 %v976_v11, %v2999_v37 }
 0x867   :  { %v3332_v2 = vsub.f32 %v3313_v42, %v980_v1 }
 0x869   :  { %v988_v50 = vmul.f32 %v3332_v2, %v3332_v2 }
 0x86b   :  { %v998_v55 = vsel %vm133_vm0, %v988_v50, 0.0 }
 0x86c   :  { %999 = vadd.xlane.f32.xlu1 %v998_v55 }
 0x8a4   :  { %v991_v0 = vpop.xlane.xlu2 %990 }
 0x8a5   :  { %v1001_v9 = vmul.f32 %v991_v0, %v2999_v37 }
 0x8a7   :  { %v1005_v3 = vadd.f32 1e-05, %v1001_v9 }
 0x8a9   :  { %2594 = vrsqrt.f32 %v1005_v3  ;;  %vm1015_vm2 = vweird.f32 %v1005_v3 }
 0x8ac   :  { %v994_v6 = vpop.xlane.xlu0 %993 }
 0x8ad   :  { %v1002_v14 = vmul.f32 %v994_v6, %v2999_v37  ;;  %v1150_v6 = vld [vmem:[%s3915_s15 + $0x50] sm:$0xff] }
 0x8af   :  { %v2595_v15 = vpop.eup %2594  ;;  %v1006_v18 = vadd.f32 1e-05, %v1002_v14  ;;  %v1151_v14 = vld [vmem:[%s3915_s15 + $0x58] sm:$0xff] }
 0x8b0   :  { %v1010_v58 = vmul.f32 %v2595_v15, %v1005_v3  ;;  %vm1016_vm1 = vweird.f32 %v2595_v15 }
 0x8b1   :  { %2596 = vrsqrt.f32 %v1006_v18  ;;  %vm1017_vm3 = vmor %vm1015_vm2, %vm1016_vm1  ;;  %vm1025_vm5 = vweird.f32 %v1006_v18 }
 0x8b2   :  { %v1011_v26 = vmul.f32 %v2595_v15, %v1010_v58  ;;  %v1149_v58 = vld [vmem:[%s3915_s15 + $0x48] sm:$0xff] }
 0x8b4   :  { %v1012_v20 = vmul.f32 0.5, %v1011_v26 }
 0x8b6   :  { %v1013_v22 = vsub.f32 1.5, %v1012_v20  ;;  %v1146_v20 = vld [vmem:[%s3915_s15 + $0x30] sm:$0xff] }
 0x8b7   :  { %v2597_v23 = vpop.eup %2596 }
 0x8b8   :  { %v1014_v8 = vmul.f32 %v2595_v15, %v1013_v22  ;;  %v1020_v28 = vmul.f32 %v2597_v23, %v1006_v18  ;;  %vm1026_vm4 = vweird.f32 %v2597_v23  ;;  %v1148_v18 = vld [vmem:[%s3915_s15 + $0x40] sm:$0xff]  ;;  %v1147_v22 = vld [vmem:[%s3915_s15 + $0x38] sm:$0xff] }
 0x8b9   :  { %vm1027_vm6 = vmor %vm1025_vm5, %vm1026_vm4  ;;  %v1162_v26 = vpack.c.bf16 %v1149_v58, %v1148_v18 }
 0x8ba   :  { %v1021_v7 = vmul.f32 %v2597_v23, %v1020_v28  ;;  %v1018_v24 = vsel %vm1017_vm3, %v2595_v15, %v1014_v8  ;;  %v1163_v15 = vpack.c.bf16 %v1151_v14, %v1150_v6  ;;  %v1144_v8 = vld [vmem:[%s3915_s15 + $0x20] sm:$0xff]  ;;  %v1145_v28 = vld [vmem:[%s3915_s15 + $0x28] sm:$0xff] }
 0x8bb   :  { %v1049_v16 = vmul.f32 %v1018_v24, %v981_v56  ;;  %v1142_v24 = vld [vmem:[%s3915_s15 + $0x10] sm:$0xff] }
 0x8bc   :  { %v1022_v33 = vmul.f32 0.5, %v1021_v7  ;;  %v1160_v7 = vpack.c.bf16 %v1145_v28, %v1144_v8 }
 0x8bd   :  { %v1056_v43 = vmul.f32 %v2505_v36, %v1049_v16  ;;  %v1141_v16 = vld [vmem:[%s3915_s15 + $0x8] sm:$0xff] }
 0x8be   :  { %v1023_v35 = vsub.f32 1.5, %v1022_v33  ;;  %v1143_v33 = vld [vmem:[%s3915_s15 + $0x18] sm:$0xff] }
 0x8bf   :  { %v1063_v46 = vadd.f32 %v2506_v41, %v1056_v43 }
 0x8c0   :  { %v1024_v34 = vmul.f32 %v2597_v23, %v1023_v35  ;;  %v1159_v35 = vpack.c.bf16 %v1143_v33, %v1142_v24 }
 0x8c2   :  { %v1028_v39 = vsel %vm1027_vm6, %v2597_v23, %v1024_v34  ;;  %v1161_v23 = vpack.c.bf16 %v1147_v22, %v1146_v20  ;;  %v2508_v20 = vld [vmem:[%s3916_s16] ss:$0 sm:$0xff] }
 0x8c3   :  { %v1050_v38 = vmul.f32 %v1028_v39, %v982_v29  ;;  %v2507_v39 = vld [vmem:[%s3914_s14] ss:$0 sm:$0xff] }
 0x8c5   :  { %v1057_v40 = vmul.f32 %v2505_v36, %v1050_v38 }
 0x8c7   :  { %v1064_v21 = vadd.f32 %v2506_v41, %v1057_v40 }
 0x8c9   :  { %v1071_v30 = vpack.c.bf16 %v1064_v21, %v1063_v46 }
 0x8cb   :  { %2414 = vmatmul.msk.bf16.vlgmr.msrb.gmra.mxu3 %vm133_vm0, %v1071_v30 }
 0x8d7   :  { %v997_v49 = vpop.xlane.xlu2 %996 }
 0x8d8   :  { %v1003_v51 = vmul.f32 %v997_v49, %v2999_v37 }
 0x8da   :  { %v1007_v45 = vadd.f32 1e-05, %v1003_v51 }
 0x8dc   :  { %2598 = vrsqrt.f32 %v1007_v45  ;;  %vm1035_vm8 = vweird.f32 %v1007_v45 }
 0x8df   :  { %v1000_v53 = vpop.xlane.xlu1 %999 }
 0x8e0   :  { %v1004_v25 = vmul.f32 %v1000_v53, %v2999_v37 }
 0x8e2   :  { %v2599_v48 = vpop.eup %2598  ;;  %v1008_v56 = vadd.f32 1e-05, %v1004_v25 }
 0x8e3   :  { %v1030_v59 = vmul.f32 %v2599_v48, %v1007_v45  ;;  %vm1036_vm7 = vweird.f32 %v2599_v48 }
 0x8e4   :  { %2600 = vrsqrt.f32 %v1008_v56  ;;  %vm1037_vm9 = vmor %vm1035_vm8, %vm1036_vm7  ;;  %vm1045_vm11 = vweird.f32 %v1008_v56 }
 0x8e5   :  { %v1031_v57 = vmul.f32 %v2599_v48, %v1030_v59 }
 0x8e7   :  { %v1032_v52 = vmul.f32 0.5, %v1031_v57 }
 0x8e9   :  { %v1033_v54 = vsub.f32 1.5, %v1032_v52 }
 0x8ea   :  { %v2601_v29 = vpop.eup %2600 }
 0x8eb   :  { %v1034_v60 = vmul.f32 %v2599_v48, %v1033_v54  ;;  %v1040_v61 = vmul.f32 %v2601_v29, %v1008_v56  ;;  %vm1046_vm10 = vweird.f32 %v2601_v29 }
 0x8ec   :  { %vm1047_vm12 = vmor %vm1045_vm11, %vm1046_vm10 }
 0x8ed   :  { %v1041_v31 = vmul.f32 %v2601_v29, %v1040_v61  ;;  %v1038_v44 = vsel %vm1037_vm9, %v2599_v48, %v1034_v60 }
 0x8ee   :  { %v1051_v11 = vmul.f32 %v1038_v44, %v3325_v62  ;;  %v1155_v62 = vld [vmem:[%s3915_s15 + $0x78] sm:$0xff] }
 0x8ef   :  { %v1042_v63 = vmul.f32 0.5, %v1041_v31  ;;  %v1165_v12 = vpack.c.bf16 %v1155_v62, %v1154_v10 }
 0x8f0   :  { %v1058_v4 = vmul.f32 %v2505_v36, %v1051_v11 }
 0x8f1   :  { %v1043_v13 = vsub.f32 1.5, %v1042_v63  ;;  %1170 = vmatpush.bf16.msrb.mxu2 %v1165_v12 }
 0x8f2   :  { %v1065_v19 = vadd.f32 %v2506_v41, %v1058_v4 }
 0x8f3   :  { %v1044_v1 = vmul.f32 %v2601_v29, %v1043_v13 }
 0x8f5   :  { %v1048_v50 = vsel %vm1047_vm12, %v2601_v29, %v1044_v1 }
 0x8f6   :  { %v1052_v55 = vmul.f32 %v1048_v50, %v3332_v2  ;;  %v1152_v2 = vld [vmem:[%s3915_s15 + $0x60] sm:$0xff] }
 0x8f7   :  { %v1164_v3 = vpack.c.bf16 %v1153_v32, %v1152_v2 }
 0x8f8   :  { %v1059_v5 = vmul.f32 %v2505_v36, %v1052_v55  ;;  %v1140_v36 = vld [vmem:[%s3915_s15] sm:$0xff] }
 0x8f9   :  { %1171 = vmatpush.bf16.msrb.mxu2 %v1164_v3  ;;  %v1158_v34 = vpack.c.bf16 %v1141_v16, %v1140_v36 }
 0x8fa   :  { %v1066_v0 = vadd.f32 %v2506_v41, %v1059_v5 }
 0x8fc   :  { %v1072_v9 = vpack.c.bf16 %v1066_v0, %v1065_v19 }
 0x8fd   :  { %1172 = vmatpush.bf16.msrb.mxu2 %v1163_v15 }
 0x8fe   :  { %2415 = vmatmul.msk.bf16.gmra.mxu3 %vm133_vm0, %v1072_v9 }
 0x901   :  { %1173 = vmatpush.bf16.msrb.mxu2 %v1162_v26 }
 0x905   :  { %1174 = vmatpush.bf16.msrb.mxu2 %v1161_v23 }
 0x909   :  { %1175 = vmatpush.bf16.msrb.mxu2 %v1160_v7 }
 0x90d   :  { %1176 = vmatpush.bf16.msrb.mxu2 %v1159_v35 }
 0x911   :  { %1177 = vmatpush.bf16.msrb.mxu2 %v1158_v34 }
 0x94e   :  { %v1094_v41 = vpop.f32.mrf.mxu3 }
 0x94f   :  { %v1095_v43 = vadd.f32 %v2507_v39, %v1094_v41 }
 0x951   :  { %v1108_v38 = vmul.f32 0.044715, %v1095_v43  ;;  %v1104_v54 = vmul.f32 0.5, %v1095_v43 }
 0x953   :  { %v1112_v40 = vmul.f32 %v1108_v38, %v1095_v43 }
 0x955   :  { %v1116_v46 = vmul.f32 %v1112_v40, %v1095_v43 }
 0x956   :  { %v1096_v21 = vpop.f32.mrf.mxu3 }
 0x957   :  { %v1120_v30 = vadd.f32 %v1116_v46, %v1095_v43  ;;  %v1097_v49 = vadd.f32 %v2507_v39, %v1096_v21 }
 0x959   :  { %v1109_v51 = vmul.f32 0.044715, %v1097_v49  ;;  %v1124_v45 = vmul.f32 0.7978846, %v1120_v30  ;;  %v1105_v29 = vmul.f32 0.5, %v1097_v49 }
 0x95b   :  { %v1113_v53 = vmul.f32 %v1109_v51, %v1097_v49  ;;  %2602 = vtanh.f32 %v1124_v45 }
 0x95d   :  { %v1117_v25 = vmul.f32 %v1113_v53, %v1097_v49 }
 0x95f   :  { %v1121_v48 = vadd.f32 %v1117_v25, %v1097_v49 }
 0x961   :  { %v1125_v56 = vmul.f32 0.7978846, %v1121_v48  ;;  %v2603_v59 = vpop.eup %2602 }
 0x962   :  { %v1132_v57 = vadd.f32 1.0, %v2603_v59 }
 0x963   :  { %2604 = vtanh.f32 %v1125_v56 }
 0x964   :  { %v1136_v61 = vmul.f32 %v1132_v57, %v1104_v54 }
 0x969   :  { %v2605_v52 = vpop.eup %2604 }
 0x96a   :  { %v1133_v60 = vadd.f32 1.0, %v2605_v52 }
 0x96c   :  { %v1137_v31 = vmul.f32 %v1133_v60, %v1105_v29 }
 0x96e   :  { %v1156_v44 = vpack.c.bf16 %v1137_v31, %v1136_v61  ;;  %v2419_v61 = vld [vmem:[%s3907_s7 + $0x30] sm:$0xff]  ;;  %v2420_v31 = vld [vmem:[%s3907_s7 + $0x38] sm:$0xff] }
 0x970   :  { %1178 = vmatmul.bf16.vlgmr.msrb.gmra.mxu2 %v1156_v44  ;;  %v1307_v44 = vpack.c.bf16 %v2420_v31, %v2419_v61 }
 0x972   :  { %1325 = vmatpush.bf16.msra.mxu0 %v1307_v44 }
 0x981   :  { %v1099_v63 = vpop.f32.mrf.mxu3 }
 0x982   :  { %v1100_v13 = vadd.f32 %v2507_v39, %v1099_v63 }
 0x984   :  { %v1110_v11 = vmul.f32 0.044715, %v1100_v13  ;;  %v1106_v6 = vmul.f32 0.5, %v1100_v13 }
 0x986   :  { %v1114_v1 = vmul.f32 %v1110_v11, %v1100_v13  ;;  %v2417_v11 = vld [vmem:[%s3907_s7 + $0x20] sm:$0xff] }
 0x988   :  { %v1118_v50 = vmul.f32 %v1114_v1, %v1100_v13  ;;  %v2418_v1 = vld [vmem:[%s3907_s7 + $0x28] sm:$0xff]  ;;  %s3957_s7 = smov 48  }
 0x989   :  { %v1101_v55 = vpop.f32.mrf.mxu3 }
 0x98a   :  { %v1102_v4 = vadd.f32 %v2507_v39, %v1101_v55  ;;  %v1122_v5 = vadd.f32 %v1118_v50, %v1100_v13  ;;  %v1306_v50 = vpack.c.bf16 %v2418_v1, %v2417_v11  ;;  %v2511_v1 = vld [vmem:[%s3908_s8 + $0x1] ss:$0 sm:$0xff] }
 0x98c   :  { %v1111_v19 = vmul.f32 0.044715, %v1102_v4  ;;  %v1126_v9 = vmul.f32 0.7978846, %v1122_v5  ;;  %v1107_v14 = vmul.f32 0.5, %v1102_v4  ;;  %1326 = vmatpush.bf16.msra.mxu0 %v1306_v50 }
 0x98e   :  { %v1115_v0 = vmul.f32 %v1111_v19, %v1102_v4  ;;  %2606 = vtanh.f32 %v1126_v9 }
 0x990   :  { %v1119_v10 = vmul.f32 %v1115_v0, %v1102_v4 }
 0x992   :  { %v1123_v62 = vadd.f32 %v1119_v10, %v1102_v4 }
 0x994   :  { %v1127_v12 = vmul.f32 0.7978846, %v1123_v62  ;;  %v2607_v2 = vpop.eup %2606 }
 0x995   :  { %v1134_v32 = vadd.f32 1.0, %v2607_v2 }
 0x996   :  { %2608 = vtanh.f32 %v1127_v12 }
 0x997   :  { %v1138_v18 = vmul.f32 %v1134_v32, %v1106_v6 }
 0x99c   :  { %v2609_v3 = vpop.eup %2608 }
 0x99d   :  { %v1135_v15 = vadd.f32 1.0, %v2609_v3 }
 0x99f   :  { %v1139_v58 = vmul.f32 %v1135_v15, %v1107_v14 }
 0x9a1   :  { %v1157_v26 = vpack.c.bf16 %v1139_v58, %v1138_v18  ;;  %v2509_v58 = vld [vmem:[%s3950_s3 + $0x1] ss:$0 sm:$0xff] }
 0x9a3   :  { %1183 = vmatmul.bf16.gmra.mxu2 %v1157_v26 }
 0x9f3   :  { %v1179_v22 = vpop.f32.mrf.mxu2 }
 0x9f4   :  { %v1180_v23 = vadd.f32 %v2508_v20, %v1179_v22 }
 0x9f6   :  { %v3415_v8 = vadd.f32 %v1180_v23, %v3296_v27  ;;  %v2510_v23 = vld [vmem:[#allocation5 + $0x1] ss:$0 sm:$0xff] }
 0x9f8   :  { %v1197_v28 = vsel %vm133_vm0, %v3415_v8, 0.0 }
 0x9f9   :  { %1198 = vadd.xlane.f32.xlu0 %v1197_v28 }
 0x9fb   :  { %v1181_v7 = vpop.f32.mrf.mxu2 }
 0x9fc   :  { %v1182_v24 = vadd.f32 %v2508_v20, %v1181_v7 }
 0x9fe   :  { %v3420_v33 = vadd.f32 %v1182_v24, %v3301_v17 }
 0xa00   :  { %v1200_v35 = vsel %vm133_vm0, %v3420_v33, 0.0 }
 0xa01   :  { %1201 = vadd.xlane.f32.xlu2 %v1200_v35 }
 0xa26   :  { %v1184_v36 = vpop.f32.mrf.mxu2 }
 0xa27   :  { %v1185_v16 = vadd.f32 %v2508_v20, %v1184_v36 }
 0xa29   :  { %v3425_v34 = vadd.f32 %v1185_v16, %v3308_v47 }
 0xa2b   :  { %v1203_v27 = vsel %vm133_vm0, %v3425_v34, 0.0 }
 0xa2c   :  { %1204 = vadd.xlane.f32.xlu1 %v1203_v27 }
 0xa2e   :  { %v1186_v39 = vpop.f32.mrf.mxu2 }
 0xa2f   :  { %v1187_v41 = vadd.f32 %v2508_v20, %v1186_v39 }
 0xa31   :  { %v3430_v43 = vadd.f32 %v1187_v41, %v3313_v42 }
 0xa33   :  { %v1206_v17 = vsel %vm133_vm0, %v3430_v43, 0.0 }
 0xa34   :  { %1207 = vadd.xlane.f32.xlu0 %v1206_v17 }
 0xa6c   :  { %v1199_v38 = vpop.xlane.xlu0 %1198 }
 0xa6d   :  { %v1209_v40 = vmul.f32 %v1199_v38, %v2999_v37 }
 0xa6f   :  { %v1213_v46 = vsub.f32 %v3415_v8, %v1209_v40 }
 0xa71   :  { %v1217_v47 = vmul.f32 %v1213_v46, %v1213_v46 }
 0xa73   :  { %v1221_v21 = vsel %vm133_vm0, %v1217_v47, 0.0 }
 0xa74   :  { %v1202_v30 = vpop.xlane.xlu2 %1201  ;;  %1222 = vadd.xlane.f32.xlu2 %v1221_v21 }
 0xa75   :  { %v1210_v49 = vmul.f32 %v1202_v30, %v2999_v37 }
 0xa77   :  { %v1214_v51 = vsub.f32 %v3420_v33, %v1210_v49 }
 0xa79   :  { %v1218_v42 = vmul.f32 %v1214_v51, %v1214_v51 }
 0xa7b   :  { %v1224_v45 = vsel %vm133_vm0, %v1218_v42, 0.0 }
 0xa7c   :  { %1225 = vadd.xlane.f32.xlu1 %v1224_v45 }
 0xa9f   :  { %v1205_v53 = vpop.xlane.xlu1 %1204 }
 0xaa0   :  { %v1211_v25 = vmul.f32 %v1205_v53, %v2999_v37 }
 0xaa2   :  { %v3442_v48 = vsub.f32 %v3425_v34, %v1211_v25 }
 0xaa4   :  { %v1219_v56 = vmul.f32 %v3442_v48, %v3442_v48 }
 0xaa6   :  { %v1227_v59 = vsel %vm133_vm0, %v1219_v56, 0.0 }
 0xaa7   :  { %1228 = vadd.xlane.f32.xlu0 %v1227_v59  ;;  %v1208_v57 = vpop.xlane.xlu0 %1207 }
 0xaa8   :  { %v1212_v52 = vmul.f32 %v1208_v57, %v2999_v37 }
 0xaaa   :  { %v3449_v54 = vsub.f32 %v3430_v43, %v1212_v52 }
 0xaac   :  { %v1220_v29 = vmul.f32 %v3449_v54, %v3449_v54 }
 0xaae   :  { %v1230_v60 = vsel %vm133_vm0, %v1220_v29, 0.0 }
 0xaaf   :  { %1231 = vadd.xlane.f32.xlu2 %v1230_v60 }
 0xae7   :  { %v1223_v63 = vpop.xlane.xlu2 %1222 }
 0xae8   :  { %v1233_v13 = vmul.f32 %v1223_v63, %v2999_v37 }
 0xaea   :  { %v1237_v55 = vadd.f32 1e-05, %v1233_v13 }
 0xaec   :  { %2610 = vrsqrt.f32 %v1237_v55  ;;  %vm1247_vm1 = vweird.f32 %v1237_v55 }
 0xaef   :  { %v1226_v4 = vpop.xlane.xlu1 %1225 }
 0xaf0   :  { %v1234_v5 = vmul.f32 %v1226_v4, %v2999_v37 }
 0xaf2   :  { %v2611_v19 = vpop.eup %2610  ;;  %v1238_v0 = vadd.f32 1e-05, %v1234_v5 }
 0xaf3   :  { %v1242_v9 = vmul.f32 %v2611_v19, %v1237_v55  ;;  %vm1248_vm13 = vweird.f32 %v2611_v19 }
 0xaf4   :  { %2612 = vrsqrt.f32 %v1238_v0  ;;  %vm1249_vm2 = vmor %vm1247_vm1, %vm1248_vm13  ;;  %vm1257_vm4 = vweird.f32 %v1238_v0 }
 0xaf5   :  { %v1243_v10 = vmul.f32 %v2611_v19, %v1242_v9 }
 0xaf7   :  { %v1244_v62 = vmul.f32 0.5, %v1243_v10 }
 0xaf9   :  { %v1245_v12 = vsub.f32 1.5, %v1244_v62 }
 0xafa   :  { %v2613_v2 = vpop.eup %2612 }
 0xafb   :  { %v1246_v32 = vmul.f32 %v2611_v19, %v1245_v12  ;;  %v1252_v3 = vmul.f32 %v2613_v2, %v1238_v0  ;;  %vm1258_vm3 = vweird.f32 %v2613_v2 }
 0xafc   :  { %vm1259_vm5 = vmor %vm1257_vm4, %vm1258_vm3 }
 0xafd   :  { %v1253_v6 = vmul.f32 %v2613_v2, %v1252_v3  ;;  %v1250_v14 = vsel %vm1249_vm2, %v2611_v19, %v1246_v32 }
 0xafe   :  { %v1281_v26 = vmul.f32 %v1250_v14, %v1213_v46 }
 0xaff   :  { %v1254_v15 = vmul.f32 0.5, %v1253_v6  ;;  %v3497_v6 = vld [vmem:[%s3951_s11] sm:$0xff] }
 0xb00   :  { %v1288_v28 = vmul.f32 %v2509_v58, %v1281_v26  ;;  %v3504_v26 = vld [vmem:[%s3951_s11 + $0x8] sm:$0xff] }
 0xb01   :  { %v1255_v18 = vsub.f32 1.5, %v1254_v15 }
 0xb02   :  { %v1295_v35 = vadd.f32 %v2510_v23, %v1288_v28 }
 0xb03   :  { %v1256_v20 = vmul.f32 %v2613_v2, %v1255_v18 }
 0xb05   :  { %v1260_v22 = vsel %vm1259_vm5, %v2613_v2, %v1256_v20 }
 0xb06   :  { %v1282_v7 = vmul.f32 %v1260_v22, %v1214_v51 }
 0xb08   :  { %v1289_v24 = vmul.f32 %v2509_v58, %v1282_v7  ;;  %v3511_v7 = vld [vmem:[%s3951_s11 + $0x10] sm:$0xff] }
 0xb0a   :  { %v1296_v36 = vadd.f32 %v2510_v23, %v1289_v24 }
 0xb0c   :  { %v1304_v16 = vpack.c.bf16 %v1296_v36, %v1295_v35 }
 0xb0e   :  { %2422 = vmatmul.msk.bf16.vlgmr.msra.gmra.mxu0 %vm133_vm0, %v1304_v16 }
 0xb1a   :  { %v1229_v27 = vpop.xlane.xlu0 %1228 }
 0xb1b   :  { %v1235_v39 = vmul.f32 %v1229_v27, %v2999_v37  ;;  %v3518_v27 = vld [vmem:[%s3951_s11 + $0x18] sm:$0xff]  ;;  %s3952_s11 = smov 120  }
 0xb1d   :  { %v1239_v41 = vadd.f32 1e-05, %v1235_v39 }
 0xb1f   :  { %2614 = vrsqrt.f32 %v1239_v41  ;;  %vm1267_vm7 = vweird.f32 %v1239_v41 }
 0xb22   :  { %v1232_v17 = vpop.xlane.xlu2 %1231 }
 0xb23   :  { %v1236_v38 = vmul.f32 %v1232_v17, %v2999_v37 }
 0xb25   :  { %v2615_v40 = vpop.eup %2614  ;;  %v1240_v46 = vadd.f32 1e-05, %v1236_v38 }
 0xb26   :  { %v1262_v47 = vmul.f32 %v2615_v40, %v1239_v41  ;;  %vm1268_vm6 = vweird.f32 %v2615_v40 }
 0xb27   :  { %2616 = vrsqrt.f32 %v1240_v46  ;;  %vm1269_vm8 = vmor %vm1267_vm7, %vm1268_vm6  ;;  %vm1277_vm10 = vweird.f32 %v1240_v46 }
 0xb28   :  { %v1263_v21 = vmul.f32 %v2615_v40, %v1262_v47 }
 0xb2a   :  { %v1264_v30 = vmul.f32 0.5, %v1263_v21 }
 0xb2c   :  { %v1265_v49 = vsub.f32 1.5, %v1264_v30 }
 0xb2d   :  { %v2617_v51 = vpop.eup %2616 }
 0xb2e   :  { %v1266_v42 = vmul.f32 %v2615_v40, %v1265_v49  ;;  %v1272_v45 = vmul.f32 %v2617_v51, %v1240_v46  ;;  %vm1278_vm9 = vweird.f32 %v2617_v51 }
 0xb2f   :  { %vm1279_vm11 = vmor %vm1277_vm10, %vm1278_vm9 }
 0xb30   :  { %v1273_v53 = vmul.f32 %v2617_v51, %v1272_v45  ;;  %v1270_v25 = vsel %vm1269_vm8, %v2615_v40, %v1266_v42 }
 0xb31   :  { %v1283_v57 = vmul.f32 %v1270_v25, %v3442_v48 }
 0xb32   :  { %v1274_v56 = vmul.f32 0.5, %v1273_v53 }
 0xb33   :  { %v1290_v61 = vmul.f32 %v2509_v58, %v1283_v57 }
 0xb34   :  { %v1275_v59 = vsub.f32 1.5, %v1274_v56 }
 0xb35   :  { %v1297_v44 = vadd.f32 %v2510_v23, %v1290_v61 }
 0xb36   :  { %v1276_v52 = vmul.f32 %v2617_v51, %v1275_v59 }
 0xb38   :  { %v1280_v29 = vsel %vm1279_vm11, %v2617_v51, %v1276_v52 }
 0xb39   :  { %v1284_v60 = vmul.f32 %v1280_v29, %v3449_v54 }
 0xb3b   :  { %v1291_v31 = vmul.f32 %v2509_v58, %v1284_v60 }
 0xb3d   :  { %v1298_v63 = vadd.f32 %v2510_v23, %v1291_v31 }
 0xb3f   :  { %v1305_v13 = vpack.c.bf16 %v1298_v63, %v1297_v44 }
 0xb41   :  { %2423 = vmatmul.msk.bf16.gmra.mxu0 %vm133_vm0, %v1305_v13  ;;  %v2424_v13 = vld [vmem:[%s3909_s9 + $0x20] sm:$0xff] }
 0xb8b   :  { %v1328_v11 = vpop.f32.mrf.mxu0 }
 0xb8c   :  { %v1329_v48 = vadd.f32 %v2511_v1, %v1328_v11  ;;  %v1469_v11 = vpack.c.bf16 %v2424_v13, %v2424_v13 }
 0xb93   :  { %v1330_v50 = vpop.f32.mrf.mxu0 }
 0xb94   :  { %v1331_v55 = vadd.f32 %v2511_v1, %v1330_v50 }
 0xb96   :  { %v3480_v4 = vpack.c.bf16 %v1331_v55, %v1329_v48  ;;  %v1632_v48 = vsel %vm582_vm15, %v1469_v11, 0 }
 0xb98   :  { %1347 = vrot.lane.b32.xlu0 %v3480_v4, %s2820_s22 }
 0xbbe   :  { %v1333_v54 = vpop.f32.mrf.mxu0 }
 0xbbf   :  { %v1334_v19 = vadd.f32 %v2511_v1, %v1333_v54 }
 0xbc6   :  { %v1335_v5 = vpop.f32.mrf.mxu0 }
 0xbc7   :  { %v1336_v0 = vadd.f32 %v2511_v1, %v1335_v5 }
 0xbc9   :  { %v3484_v9 = vpack.c.bf16 %v1336_v0, %v1334_v19 }
 0xbcb   :  { %1349 = vrot.lane.b32.xlu1 %v3484_v9, %s2820_s22 }
 0xc0a   :  { %v1348_v12 = vpop.permute.xlu0 %1347 }
 0xc0b   :  { %v1358_v2 = vsel %vm329_vm14, %v1348_v12, 0 }
 0xc3d   :  { %v1350_v10 = vpop.permute.xlu1 %1349 }
 0xc3e   :  { %v1361_v62 = vsel %vm329_vm14, %v1350_v10, 0 }
 0xc3f   :  { %1369 = vmatpush.bf16.xpose.msra.mxu1 %v1361_v62 }
 0xc47   :  { %1370 = vmatpush.bf16.xpose.msra.mxu1 %v1358_v2 }
 0xc4e   :  { %2428 = vmatmul.msk.bf16.vlgmr.msra.gmra.mxu1 %vm329_vm14, %v3480_v4 }
 0xc5e   :  { %2429 = vmatmul.msk.bf16.gmra.mxu1 %vm329_vm14, %v3484_v9 }
 0xccb   :  { %v1372_v32 = vpop.f32.mrf.mxu1 }
 0xccc   :  { %v1382_v3 = vmul.f32 0.35355338, %v1372_v32 }
 0xcce   :  { %v1386_v14 = vadd.f32 %v3497_v6, %v1382_v3 }
 0xcd0   :  { %v1390_v15 = vsel %vm133_vm0, %v1386_v14, -inf }
 0xcd1   :  { %1391 = vmax.xlane.f32.xlu2 %v1390_v15 }
 0xcd3   :  { %v1374_v18 = vpop.f32.mrf.mxu1 }
 0xcd4   :  { %v1383_v58 = vmul.f32 0.35355338, %v1374_v18 }
 0xcd6   :  { %v1387_v20 = vadd.f32 %v3504_v26, %v1383_v58 }
 0xcd8   :  { %v1393_v22 = vsel %vm133_vm0, %v1387_v20, -inf }
 0xcd9   :  { %1394 = vmax.xlane.f32.xlu2 %v1393_v22 }
 0xcdb   :  { %v1377_v23 = vpop.f32.mrf.mxu1 }
 0xcdc   :  { %v1384_v28 = vmul.f32 0.35355338, %v1377_v23 }
 0xcde   :  { %v1388_v24 = vadd.f32 %v3511_v7, %v1384_v28 }
 0xce0   :  { %v1396_v35 = vsel %vm133_vm0, %v1388_v24, -inf }
 0xce1   :  { %1397 = vmax.xlane.f32.xlu2 %v1396_v35 }
 0xce3   :  { %v1379_v36 = vpop.f32.mrf.mxu1 }
 0xce4   :  { %v1385_v16 = vmul.f32 0.35355338, %v1379_v36 }
 0xce6   :  { %v1389_v39 = vadd.f32 %v3518_v27, %v1385_v16 }
 0xce8   :  { %v1399_v41 = vsel %vm133_vm0, %v1389_v39, -inf }
 0xce9   :  { %1400 = vmax.xlane.f32.xlu0 %v1399_v41 }
 0xcf9   :  { %1438 = vrot.lane.b32.xlu2 %v3484_v9, %s2821_s28 }
 0xd44   :  { %v1392_v17 = vpop.xlane.xlu2 %1391 }
 0xd45   :  { %v1402_v38 = vsub.f32 %v1386_v14, %v1392_v17 }
 0xd47   :  { %v1406_v40 = vmul.f32 1.442695, %v1402_v38 }
 0xd49   :  { %2618 = vpow2.f32 %v1406_v40 }
 0xd4c   :  { %v1395_v46 = vpop.xlane.xlu2 %1394 }
 0xd4d   :  { %v1403_v47 = vsub.f32 %v1387_v20, %v1395_v46 }
 0xd4f   :  { %v2619_v21 = vpop.eup %2618  ;;  %v1408_v30 = vmul.f32 1.442695, %v1403_v47 }
 0xd50   :  { %v1414_v49 = vsel %vm133_vm0, %v2619_v21, 0.0 }
 0xd51   :  { %2620 = vpow2.f32 %v1408_v30  ;;  %1415 = vadd.xlane.f32.xlu1 %v1414_v49 }
 0xd54   :  { %v1398_v51 = vpop.xlane.xlu2 %1397 }
 0xd55   :  { %v1404_v42 = vsub.f32 %v1388_v24, %v1398_v51 }
 0xd57   :  { %v2621_v45 = vpop.eup %2620  ;;  %v1410_v53 = vmul.f32 1.442695, %v1404_v42 }
 0xd58   :  { %v1417_v25 = vsel %vm133_vm0, %v2621_v45, 0.0 }
 0xd59   :  { %2622 = vpow2.f32 %v1410_v53  ;;  %1418 = vadd.xlane.f32.xlu2 %v1417_v25 }
 0xd5c   :  { %v1439_v56 = vpop.permute.xlu2 %1438  ;;  %v1401_v59 = vpop.xlane.xlu0 %1400 }
 0xd5d   :  { %v1405_v57 = vsub.f32 %v1389_v39, %v1401_v59  ;;  %1454 = vmatpush.bf16.msra.mxu3 %v1439_v56 }
 0xd5f   :  { %v2623_v52 = vpop.eup %2622  ;;  %v1412_v29 = vmul.f32 1.442695, %v1405_v57 }
 0xd60   :  { %v1420_v60 = vsel %vm133_vm0, %v2623_v52, 0.0 }
 0xd61   :  { %2624 = vpow2.f32 %v1412_v29  ;;  %1421 = vadd.xlane.f32.xlu0 %v1420_v60 }
 0xd67   :  { %v2625_v61 = vpop.eup %2624 }
 0xd68   :  { %v1423_v31 = vsel %vm133_vm0, %v2625_v61, 0.0 }
 0xd69   :  { %1424 = vadd.xlane.f32.xlu1 %v1423_v31 }
 0xd71   :  { %1436 = vrot.lane.b32.xlu2 %v3480_v4, %s2821_s28  ;;  %s3953_s28 = smov 112  }
 0xd75   :  { %1474 = vrot.lane.b32.xlu0 %v3480_v4, %s2822_s26 }
 0xd79   :  { %1476 = vrot.lane.b32.xlu2 %v3484_v9, %s2822_s26 }
 0xd7d   :  { %1659 = vrot.lane.b32.xlu0 %v3484_v9, %s2824_s0 }
 0xd81   :  { %1818 = vrot.lane.b32.xlu2 %v3484_v9, %s2825_s4 }
 0xd82   :  { %1470 = vrot.lane.b32.xlu1 %v3480_v4, %s3952_s11 }
 0xd85   :  { %1657 = vrot.lane.b32.xlu0 %v3480_v4, %s2824_s0 }
 0xd89   :  { %1472 = vrot.lane.b32.xlu2 %v3484_v9, %s3952_s11 }
 0xd8a   :  { %1653 = vrot.lane.b32.xlu1 %v3480_v4, %s3953_s28 }
 0xd8d   :  { %1814 = vrot.lane.b32.xlu0 %v3484_v9, %s3954_s25 }
 0xd91   :  { %1816 = vrot.lane.b32.xlu2 %v3480_v4, %s2825_s4  ;;  %s3955_s4 = smov 56  }
 0xd99   :  { %1812 = vrot.lane.b32.xlu2 %v3480_v4, %s3954_s25 }
 0xda1   :  { %1655 = vrot.lane.b32.xlu2 %v3484_v9, %s3953_s28 }
 0xdc4   :  { %v1416_v44 = vpop.xlane.xlu1 %1415 }
 0xdc5   :  { %2626 = vrcp.f32 %v1416_v44 }
 0xdcb   :  { %v2627_v1 = vpop.eup %2626 }
 0xdcc   :  { %v1419_v63 = vpop.xlane.xlu2 %1418  ;;  %v1430_v55 = vmul.f32 %v2627_v1, %v2619_v21 }
 0xdcd   :  { %2628 = vrcp.f32 %v1419_v63 }
 0xdd3   :  { %v2629_v50 = vpop.eup %2628 }
 0xdd4   :  { %v1431_v54 = vmul.f32 %v2629_v50, %v2621_v45  ;;  %v1437_v5 = vpop.permute.xlu2 %1436  ;;  %v1422_v0 = vpop.xlane.xlu0 %1421 }
 0xdd5   :  { %1455 = vmatpush.bf16.msra.mxu3 %v1437_v5  ;;  %2630 = vrcp.f32 %v1422_v0 }
 0xdd6   :  { %v1434_v19 = vpack.c.bf16 %v1431_v54, %v1430_v55 }
 0xdd8   :  { %2430 = vmatmul.msk.bf16.vlgmr.msra.gmra.mxu3 %vm133_vm0, %v1434_v19 }
 0xdd9   :  { %1641 = vmatpush.bf16.msrb.mxu3 %v1632_v48 }
 0xddb   :  { %v2631_v2 = vpop.eup %2630 }
 0xddc   :  { %v1477_v10 = vpop.permute.xlu2 %1476  ;;  %v1425_v62 = vpop.xlane.xlu1 %1424  ;;  %v1432_v14 = vmul.f32 %v2631_v2, %v2623_v52 }
 0xddd   :  { %v1488_v12 = vsel %vm329_vm14, %v1477_v10, 0  ;;  %2632 = vrcp.f32 %v1425_v62 }
 0xdde   :  { %1496 = vmatpush.bf16.xpose.msra.mxu2 %v1488_v12 }
 0xde3   :  { %v2633_v32 = vpop.eup %2632 }
 0xde4   :  { %v1819_v3 = vpop.permute.xlu2 %1818  ;;  %v1433_v15 = vmul.f32 %v2633_v32, %v2625_v61 }
 0xde5   :  { %v1830_v18 = vsel %vm329_vm14, %v1819_v3, 0 }
 0xde6   :  { %1838 = vmatpush.bf16.xpose.msra.mxu3 %v1830_v18  ;;  %v1435_v58 = vpack.c.bf16 %v1433_v15, %v1432_v14 }
 0xde7   :  { %v1475_v20 = vpop.permute.xlu0 %1474 }
 0xde8   :  { %v1485_v22 = vsel %vm329_vm14, %v1475_v20, 0  ;;  %2431 = vmatmul.msk.bf16.gmra.mxu3 %vm133_vm0, %v1435_v58 }
 0xde9   :  { %1497 = vmatpush.bf16.xpose.msra.mxu2 %v1485_v22 }
 0xdec   :  { %v1473_v23 = vpop.permute.xlu2 %1472 }
 0xdef   :  { %v1660_v28 = vpop.permute.xlu0 %1659 }
 0xdf0   :  { %v1671_v24 = vsel %vm329_vm14, %v1660_v28, 0 }
 0xdf1   :  { %1679 = vmatpush.bf16.xpose.msrb.mxu2 %v1671_v24 }
 0xdf4   :  { %v1817_v35 = vpop.permute.xlu2 %1816  ;;  %v1471_v36 = vpop.permute.xlu1 %1470 }
 0xdf5   :  { %v1827_v16 = vsel %vm329_vm14, %v1817_v35, 0  ;;  %2432 = vmatmul.msk.bf16.vlgmr.msra.gmra.mxu2 %vm329_vm14, %v1471_v36 }
 0xdf6   :  { %1839 = vmatpush.bf16.xpose.msra.mxu3 %v1827_v16 }
 0xdf7   :  { %v1658_v39 = vpop.permute.xlu0 %1657 }
 0xdf8   :  { %v1668_v41 = vsel %vm329_vm14, %v1658_v39, 0 }
 0xdf9   :  { %1680 = vmatpush.bf16.xpose.msrb.mxu2 %v1668_v41 }
 0xdfc   :  { %v1654_v17 = vpop.permute.xlu1 %1653  ;;  %v1813_v38 = vpop.permute.xlu2 %1812 }
 0xdff   :  { %v1815_v11 = vpop.permute.xlu0 %1814 }
 0xe04   :  { %v1656_v40 = vpop.permute.xlu2 %1655 }
 0xe05   :  { %2433 = vmatmul.msk.bf16.gmra.mxu2 %vm329_vm14, %v1473_v23 }
 0xe15   :  { %2440 = vmatmul.msk.bf16.vlgmr.msrb.gmra.mxu2 %vm329_vm14, %v1654_v17 }
 0xe25   :  { %2441 = vmatmul.msk.bf16.gmra.mxu2 %vm329_vm14, %v1656_v40 }
 0xe5b   :  { %v1457_v46 = vpop.f32.mrf.mxu3 }
 0xe63   :  { %v1459_v47 = vpop.f32.mrf.mxu3 }
 0xe64   :  { %v1467_v21 = vpack.c.bf16 %v1459_v47, %v1457_v46 }
 0xe66   :  { %2438 = vmatmul.msk.bf16.vlgmr.msrb.gmra.mxu3 %vm329_vm14, %v1467_v21 }
 0xe6b   :  { %v1462_v30 = vpop.f32.mrf.mxu3 }
 0xe73   :  { %v1464_v49 = vpop.f32.mrf.mxu3 }
 0xe74   :  { %v1468_v51 = vpack.c.bf16 %v1464_v49, %v1462_v30 }
 0xe76   :  { %2439 = vmatmul.msk.bf16.gmra.mxu3 %vm329_vm14, %v1468_v51 }
 0xe78   :  { %v1499_v42 = vpop.f32.mrf.mxu2 }
 0xe79   :  { %v1509_v45 = vmul.f32 0.35355338, %v1499_v42 }
 0xe7b   :  { %v1513_v53 = vadd.f32 %v3497_v6, %v1509_v45 }
 0xe7d   :  { %v1517_v25 = vsel %vm133_vm0, %v1513_v53, -inf }
 0xe7e   :  { %1518 = vmax.xlane.f32.xlu1 %v1517_v25 }
 0xe80   :  { %v1501_v56 = vpop.f32.mrf.mxu2 }
 0xe81   :  { %v1510_v59 = vmul.f32 0.35355338, %v1501_v56 }
 0xe83   :  { %v1514_v57 = vadd.f32 %v3504_v26, %v1510_v59 }
 0xe85   :  { %v1520_v52 = vsel %vm133_vm0, %v1514_v57, -inf }
 0xe86   :  { %2446 = vmatmul.msk.bf16.vlgmr.msra.gmra.mxu3 %vm329_vm14, %v1813_v38  ;;  %1521 = vmax.xlane.f32.xlu0 %v1520_v52 }
 0xe88   :  { %v1504_v29 = vpop.f32.mrf.mxu2 }
 0xe89   :  { %v1511_v60 = vmul.f32 0.35355338, %v1504_v29 }
 0xe8b   :  { %v1515_v61 = vadd.f32 %v3511_v7, %v1511_v60 }
 0xe8d   :  { %v1523_v31 = vsel %vm133_vm0, %v1515_v61, -inf }
 0xe8e   :  { %1524 = vmax.xlane.f32.xlu2 %v1523_v31 }
 0xe90   :  { %v1506_v44 = vpop.f32.mrf.mxu2 }
 0xe91   :  { %v1512_v63 = vmul.f32 0.35355338, %v1506_v44 }
 0xe93   :  { %v3580_v13 = vadd.f32 %v3518_v27, %v1512_v63 }
 0xe95   :  { %v1526_v1 = vsel %vm133_vm0, %v3580_v13, -inf }
 0xe96   :  { %1527 = vmax.xlane.f32.xlu1 %v1526_v1  ;;  %2447 = vmatmul.msk.bf16.gmra.mxu3 %vm329_vm14, %v1815_v11 }
 0xe98   :  { %v1682_v50 = vpop.f32.mrf.mxu2 }
 0xe99   :  { %v1692_v48 = vmul.f32 0.35355338, %v1682_v50 }
 0xe9b   :  { %v1696_v55 = vadd.f32 %v3497_v6, %v1692_v48 }
 0xe9d   :  { %v1700_v54 = vsel %vm133_vm0, %v1696_v55, -inf }
 0xe9e   :  { %1701 = vmax.xlane.f32.xlu1 %v1700_v54 }
 0xea0   :  { %v1684_v5 = vpop.f32.mrf.mxu2 }
 0xea1   :  { %v1693_v19 = vmul.f32 0.35355338, %v1684_v5 }
 0xea3   :  { %v3588_v0 = vadd.f32 %v3504_v26, %v1693_v19 }
 0xea5   :  { %v1703_v10 = vsel %vm133_vm0, %v3588_v0, -inf }
 0xea6   :  { %1704 = vmax.xlane.f32.xlu2 %v1703_v10 }
 0xea8   :  { %v1687_v62 = vpop.f32.mrf.mxu2 }
 0xea9   :  { %v1694_v12 = vmul.f32 0.35355338, %v1687_v62 }
 0xeab   :  { %v3593_v2 = vadd.f32 %v3511_v7, %v1694_v12 }
 0xead   :  { %v1706_v32 = vsel %vm133_vm0, %v3593_v2, -inf }
 0xeae   :  { %1707 = vmax.xlane.f32.xlu2 %v1706_v32 }
 0xeb0   :  { %v1689_v3 = vpop.f32.mrf.mxu2 }
 0xeb1   :  { %v1695_v14 = vmul.f32 0.35355338, %v1689_v3 }
 0xeb3   :  { %v3598_v15 = vadd.f32 %v3518_v27, %v1695_v14 }
 0xeb5   :  { %v1709_v18 = vsel %vm133_vm0, %v3598_v15, -inf }
 0xeb6   :  { %1710 = vmax.xlane.f32.xlu0 %v1709_v18 }
 0xeca   :  { %1565 = vrot.lane.b32.xlu0 %v3484_v9, %s3955_s4 }
 0xee9   :  { %v3604_v58 = vpop.f32.mrf.mxu3 }
 0xef1   :  { %v3606_v20 = vpop.f32.mrf.mxu3  ;;  %v1519_v22 = vpop.xlane.xlu1 %1518 }
 0xef2   :  { %v1529_v23 = vsub.f32 %v1513_v53, %v1519_v22 }
 0xef4   :  { %v1533_v28 = vmul.f32 1.442695, %v1529_v23 }
 0xef6   :  { %2634 = vpow2.f32 %v1533_v28 }
 0xef9   :  { %v3608_v24 = vpop.f32.mrf.mxu3  ;;  %v1522_v35 = vpop.xlane.xlu0 %1521 }
 0xefa   :  { %v1530_v36 = vsub.f32 %v1514_v57, %v1522_v35 }
 0xefc   :  { %v3610_v16 = vpop.eup %2634  ;;  %v1535_v39 = vmul.f32 1.442695, %v1530_v36 }
 0xefd   :  { %v1541_v41 = vsel %vm133_vm0, %v3610_v16, 0.0 }
 0xefe   :  { %2636 = vpow2.f32 %v1535_v39  ;;  %1542 = vadd.xlane.f32.xlu1 %v1541_v41 }
 0xf01   :  { %v3614_v17 = vpop.f32.mrf.mxu3  ;;  %v1525_v38 = vpop.xlane.xlu2 %1524 }
 0xf02   :  { %v1531_v40 = vsub.f32 %v1515_v61, %v1525_v38 }
 0xf04   :  { %v3616_v46 = vpop.eup %2636  ;;  %v1537_v47 = vmul.f32 1.442695, %v1531_v40 }
 0xf05   :  { %v1544_v21 = vsel %vm133_vm0, %v3616_v46, 0.0 }
 0xf06   :  { %2638 = vpow2.f32 %v1537_v47  ;;  %1545 = vadd.xlane.f32.xlu2 %v1544_v21 }
 0xf09   :  { %v1841_v30 = vpop.f32.mrf.mxu3  ;;  %v1528_v29 = vpop.xlane.xlu1 %1527 }
 0xf0a   :  { %v1851_v32 = vmul.f32 0.35355338, %v1841_v30 }
 0xf0c   :  { %v3620_v49 = vpop.eup %2638 }
 0xf0d   :  { %v1547_v51 = vsel %vm133_vm0, %v3620_v49, 0.0 }
 0xf0e   :  { %1548 = vadd.xlane.f32.xlu2 %v1547_v51 }
 0xf11   :  { %v1843_v42 = vpop.f32.mrf.mxu3 }
 0xf12   :  { %v1852_v45 = vmul.f32 0.35355338, %v1843_v42 }
 0xf14   :  { %v3625_v53 = vadd.f32 %v3504_v26, %v1852_v45  ;;  %v1702_v26 = vpop.xlane.xlu1 %1701 }
 0xf15   :  { %v1712_v60 = vsub.f32 %v1696_v55, %v1702_v26 }
 0xf16   :  { %v1862_v25 = vsel %vm133_vm0, %v3625_v53, -inf }
 0xf17   :  { %1563 = vrot.lane.b32.xlu1 %v3480_v4, %s3955_s4  ;;  %1863 = vmax.xlane.f32.xlu0 %v1862_v25  ;;  %v1716_v61 = vmul.f32 1.442695, %v1712_v60  ;;  %s2372_s4 = sshll.u32 %s3921_s21, 4  ;;  %s2373_s4 = int_to_ptr.hbm [resolvable:$true] %s2372_s4 }
 0xf19   :  { %v1846_v56 = vpop.f32.mrf.mxu3  ;;  %2640 = vpow2.f32 %v1716_v61  ;;  %v1705_v54 = vpop.xlane.xlu2 %1704 }
 0xf1a   :  { %v1853_v59 = vmul.f32 0.35355338, %v1846_v56  ;;  %v1713_v5 = vsub.f32 %v3588_v0, %v1705_v54 }
 0xf1c   :  { %v3632_v57 = vadd.f32 %v3511_v7, %v1853_v59  ;;  %v1532_v7 = vsub.f32 %v3580_v13, %v1528_v29  ;;  %v1718_v10 = vmul.f32 1.442695, %v1713_v5 }
 0xf1e   :  { %v1865_v52 = vsel %vm133_vm0, %v3632_v57, -inf  ;;  %v1539_v48 = vmul.f32 1.442695, %v1532_v7 }
 0xf1f   :  { %1866 = vmax.xlane.f32.xlu0 %v1865_v52  ;;  %v3640_v63 = vpop.eup %2640 }
 0xf20   :  { %v1724_v50 = vsel %vm133_vm0, %v3640_v63, 0.0  ;;  %2642 = vpow2.f32 %v1539_v48 }
 0xf21   :  { %v1848_v11 = vpop.f32.mrf.mxu3  ;;  %2644 = vpow2.f32 %v1718_v10  ;;  %v1708_v0 = vpop.xlane.xlu2 %1707 }
 0xf22   :  { %v1854_v1 = vmul.f32 0.35355338, %v1848_v11  ;;  %v1714_v22 = vsub.f32 %v3593_v2, %v1708_v0 }
 0xf24   :  { %v3646_v55 = vadd.f32 %v3518_v27, %v1854_v1  ;;  %v1855_v27 = vadd.f32 %v3497_v6, %v1851_v32  ;;  %v1720_v28 = vmul.f32 1.442695, %v1714_v22 }
 0xf26   :  { %1907 = vrot.lane.b32.xlu2 %v3484_v9, %s3956_s27  ;;  %v1868_v19 = vsel %vm133_vm0, %v3646_v55, -inf  ;;  %v2643_v13 = vpop.eup %2642  ;;  %v1859_v14 = vsel %vm133_vm0, %v1855_v27, -inf }
 0xf27   :  { %v1550_v62 = vsel %vm133_vm0, %v2643_v13, 0.0  ;;  %v2645_v12 = vpop.eup %2644 }
 0xf28   :  { %v1727_v3 = vsel %vm133_vm0, %v2645_v12, 0.0 }
 0xf29   :  { %v3638_v31 = vpop.xlane.xlu0 %1710 }
 0xf3c   :  { %v1566_v44 = vpop.permute.xlu0 %1565 }
 0xf3d   :  { %1581 = vmatpush.bf16.msrb.mxu0 %v1566_v44 }
 0xf41   :  { %1725 = vadd.xlane.f32.xlu1 %v1724_v50 }
 0xf49   :  { %1869 = vmax.xlane.f32.xlu1 %v1868_v19 }
 0xf4f   :  { %1551 = vadd.xlane.f32.xlu2 %v1550_v62  ;;  %v2425_v62 = vld [vmem:[%s3909_s9 + $0x28] sm:$0xff] }
 0xf57   :  { %1728 = vadd.xlane.f32.xlu2 %v1727_v3 }
 0xf5f   :  { %1860 = vmax.xlane.f32.xlu2 %v1859_v14 }
 0xf62   :  { %1746 = vrot.lane.b32.xlu1 %v3480_v4, %s3957_s7 }
 0xf71   :  { %v1543_v23 = vpop.xlane.xlu1 %1542 }
 0xf79   :  { %v1546_v18 = vpop.xlane.xlu2 %1545 }
 0xf7a   :  { %2646 = vrcp.f32 %v1546_v18 }
 0xf7b   :  { %2648 = vrcp.f32 %v1543_v23 }
 0xf7c   :  { %2650 = vpow2.f32 %v1720_v28 }
 0xf80   :  { %v2647_v36 = vpop.eup %2646 }
 0xf81   :  { %v1549_v35 = vpop.xlane.xlu2 %1548  ;;  %v2649_v39 = vpop.eup %2648  ;;  %v1558_v6 = vmul.f32 %v2647_v36, %v3616_v46 }
 0xf82   :  { %v3659_v41 = vpop.eup %2650  ;;  %v1557_v38 = vmul.f32 %v2649_v39, %v3610_v16 }
 0xf83   :  { %v1730_v51 = vsel %vm133_vm0, %v3659_v41, 0.0 }
 0xf84   :  { %v1561_v2 = vpack.c.bf16 %v1558_v6, %v1557_v38 }
 0xf89   :  { %v1564_v40 = vpop.permute.xlu1 %1563  ;;  %v1908_v47 = vpop.permute.xlu2 %1907 }
 0xf8a   :  { %1582 = vmatpush.bf16.msrb.mxu0 %v1564_v40  ;;  %1923 = vmatpush.bf16.msra.mxu2 %v1908_v47  ;;  %v1864_v21 = vpop.xlane.xlu0 %1863 }
 0xf8b   :  { %v1872_v30 = vsub.f32 %v3625_v53, %v1864_v21 }
 0xf8c   :  { %1731 = vadd.xlane.f32.xlu1 %v1730_v51 }
 0xf8d   :  { %v1877_v42 = vmul.f32 1.442695, %v1872_v30  ;;  %2434 = vmatmul.msk.bf16.vlgmr.msrb.gmra.mxu0 %vm133_vm0, %v1561_v2 }
 0xf8f   :  { %2652 = vpow2.f32 %v1877_v42 }
 0xf90   :  { %2654 = vrcp.f32 %v1549_v35 }
 0xf92   :  { %v1867_v53 = vpop.xlane.xlu0 %1866 }
 0xf93   :  { %v1873_v25 = vsub.f32 %v3632_v57, %v1867_v53 }
 0xf95   :  { %v3666_v46 = vpop.eup %2652  ;;  %v1879_v29 = vmul.f32 1.442695, %v1873_v25 }
 0xf96   :  { %v1886_v16 = vsel %vm133_vm0, %v3666_v46, 0.0  ;;  %v2655_v59 = vpop.eup %2654 }
 0xf97   :  { %1887 = vadd.xlane.f32.xlu2 %v1886_v16  ;;  %v1559_v60 = vmul.f32 %v2655_v59, %v3620_v49 }
 0xfaf   :  { %1905 = vrot.lane.b32.xlu2 %v3480_v4, %s3956_s27  ;;  %v1715_v4 = vsub.f32 %v3598_v15, %v3638_v31  ;;  %s3959_s27 = smov 128  }
 0xfb1   :  { %v1722_v57 = vmul.f32 1.442695, %v1715_v4  ;;  %v2427_v4 = vld [vmem:[%s3909_s9 + $0x38] sm:$0xff] }
 0xfb4   :  { %v1726_v56 = vpop.xlane.xlu1 %1725 }
 0xfbc   :  { %v1870_v3 = vpop.xlane.xlu1 %1869 }
 0xfbd   :  { %v1874_v0 = vsub.f32 %v3646_v55, %v1870_v3 }
 0xfbf   :  { %v1881_v18 = vmul.f32 1.442695, %v1874_v0 }
 0xfc2   :  { %v1552_v45 = vpop.xlane.xlu2 %1551 }
 0xfc3   :  { %2656 = vrcp.f32 %v1552_v45 }
 0xfc4   :  { %2658 = vrcp.f32 %v1726_v56 }
 0xfc9   :  { %v2657_v52 = vpop.eup %2656 }
 0xfca   :  { %v1729_v26 = vpop.xlane.xlu2 %1728  ;;  %v1560_v61 = vmul.f32 %v2657_v52, %v2643_v13  ;;  %v2659_v7 = vpop.eup %2658 }
 0xfcb   :  { %2660 = vrcp.f32 %v1729_v26  ;;  %v1740_v1 = vmul.f32 %v2659_v7, %v3640_v63  ;;  %v1938_v7 = vpack.c.bf16 %v2427_v4, %v2427_v4 }
 0xfcc   :  { %v1562_v44 = vpack.c.bf16 %v1560_v61, %v1559_v60  ;;  %2662 = vpow2.f32 %v1879_v29 }
 0xfcd   :  { %2664 = vpow2.f32 %v1722_v57 }
 0xfce   :  { %2435 = vmatmul.msk.bf16.gmra.mxu0 %vm133_vm0, %v1562_v44 }
 0xfd1   :  { %v2661_v11 = vpop.eup %2660 }
 0xfd2   :  { %v1741_v50 = vmul.f32 %v2661_v11, %v2645_v12  ;;  %v1861_v48 = vpop.xlane.xlu2 %1860  ;;  %v3678_v5 = vpop.eup %2662  ;;  %v1596_v12 = vpack.c.bf16 %v2425_v62, %v2425_v62  ;;  %v2426_v11 = vld [vmem:[%s3909_s9 + $0x30] sm:$0xff] }
 0xfd3   :  { %v1871_v54 = vsub.f32 %v1855_v27, %v1861_v48  ;;  %v1889_v15 = vsel %vm133_vm0, %v3678_v5, 0.0  ;;  %v2665_v31 = vpop.eup %2664  ;;  %v1779_v57 = vpack.c.bf16 %v2426_v11, %v2426_v11 }
 0xfd4   :  { %v1744_v49 = vpack.c.bf16 %v1741_v50, %v1740_v1  ;;  %v1733_v63 = vsel %vm133_vm0, %v2665_v31, 0.0  ;;  %v1604_v32 = vsel %vm582_vm15, %v1596_v12, 0  ;;  %v1747_v51 = vpop.permute.xlu1 %1746 }
 0xfd5   :  { %v1875_v19 = vmul.f32 1.442695, %v1871_v54  ;;  %1613 = vmatpush.bf16.msrb.mxu1 %v1604_v32  ;;  %v1787_v1 = vsel %vm582_vm15, %v1779_v57, 0 }
 0xfd7   :  { %2666 = vpow2.f32 %v1875_v19 }
 0xfd8   :  { %1890 = vadd.xlane.f32.xlu2 %v1889_v15  ;;  %2668 = vpow2.f32 %v1881_v18 }
 0xfd9   :  { %1796 = vmatpush.bf16.msra.mxu1 %v1787_v1 }
 0xfdd   :  { %v2667_v10 = vpop.eup %2666 }
 0xfde   :  { %v1883_v13 = vsel %vm133_vm0, %v2667_v10, 0.0  ;;  %v2669_v35 = vpop.eup %2668 }
 0xfdf   :  { %1884 = vadd.xlane.f32.xlu0 %v1883_v13  ;;  %v1892_v36 = vsel %vm133_vm0, %v2669_v35, 0.0 }
 0xfe0   :  { %1734 = vadd.xlane.f32.xlu2 %v1733_v63 }
 0xff3   :  { %1748 = vrot.lane.b32.xlu0 %v3484_v9, %s3957_s7 }
 0xfff   :  { %v1732_v45 = vpop.xlane.xlu1 %1731 }
0x100a   :  { %v1584_v27 = vpop.f32.mrf.mxu0  ;;  %v1888_v14 = vpop.xlane.xlu2 %1887 }
0x100b   :  { %2670 = vrcp.f32 %v1888_v14 }
0x1011   :  { %v2671_v55 = vpop.eup %2670 }
0x1012   :  { %v1586_v22 = vpop.f32.mrf.mxu0  ;;  %v1906_v23 = vpop.permute.xlu2 %1905  ;;  %v1900_v47 = vmul.f32 %v2671_v55, %v3666_v46 }
0x1013   :  { %v1594_v28 = vpack.c.bf16 %v1586_v22, %v1584_v27  ;;  %1924 = vmatpush.bf16.msra.mxu2 %v1906_v23 }
0x1015   :  { %2436 = vmatmul.msk.bf16.vlgmr.msrb.gmra.mxu1 %vm329_vm14, %v1594_v28  ;;  %v2512_v28 = vld [vmem:[%s3910_s10 + $0x1] ss:$0 sm:$0xff] }
0x101d   :  { %1893 = vadd.xlane.f32.xlu0 %v1892_v36 }
0x104b   :  { %v1589_v39 = vpop.f32.mrf.mxu0  ;;  %v1891_v30 = vpop.xlane.xlu2 %1890 }
0x1052   :  { %v1885_v9 = vpop.xlane.xlu0 %1884 }
0x1053   :  { %2672 = vrcp.f32 %v1885_v9  ;;  %v1591_v6 = vpop.f32.mrf.mxu0  ;;  %v1735_v16 = vpop.xlane.xlu2 %1734 }
0x1054   :  { %v1595_v38 = vpack.c.bf16 %v1591_v6, %v1589_v39  ;;  %2674 = vrcp.f32 %v1735_v16 }
0x1055   :  { %2676 = vrcp.f32 %v1732_v45 }
0x1056   :  { %2437 = vmatmul.msk.bf16.gmra.mxu1 %vm329_vm14, %v1595_v38  ;;  %2678 = vrcp.f32 %v1891_v30 }
0x1059   :  { %v2673_v40 = vpop.eup %2672 }
0x105a   :  { %v1899_v21 = vmul.f32 %v2673_v40, %v2667_v10  ;;  %v2675_v53 = vpop.eup %2674 }
0x105b   :  { %v2677_v25 = vpop.eup %2676  ;;  %v1743_v56 = vmul.f32 %v2675_v53, %v2665_v31 }
0x105c   :  { %v1903_v2 = vpack.c.bf16 %v1900_v47, %v1899_v21  ;;  %v1742_v46 = vmul.f32 %v2677_v25, %v3659_v41  ;;  %v2679_v29 = vpop.eup %2678  ;;  %v1946_v41 = vsel %vm582_vm15, %v1938_v7, 0 }
0x105d   :  { %v1901_v60 = vmul.f32 %v2679_v29, %v3678_v5 }
0x105e   :  { %2448 = vmatmul.msk.bf16.vlgmr.msra.gmra.mxu2 %vm133_vm0, %v1903_v2  ;;  %v1745_v59 = vpack.c.bf16 %v1743_v56, %v1742_v46 }
0x1065   :  { %v1749_v42 = vpop.permute.xlu0 %1748 }
0x1066   :  { %1764 = vmatpush.bf16.msra.mxu0 %v1749_v42 }
0x106a   :  { %1765 = vmatpush.bf16.msra.mxu0 %v1747_v51 }
0x106d   :  { %2442 = vmatmul.msk.bf16.vlgmr.msra.gmra.mxu0 %vm133_vm0, %v1744_v49 }
0x106e   :  { %1955 = vmatpush.bf16.msrb.mxu0 %v1946_v41 }
0x107d   :  { %2443 = vmatmul.msk.bf16.gmra.mxu0 %vm133_vm0, %v1745_v59 }
0x1090   :  { %v1894_v52 = vpop.xlane.xlu0 %1893 }
0x1091   :  { %2680 = vrcp.f32 %v1894_v52 }
0x1092   :  { %v1615_v12 = vpop.f32.mrf.mxu1 }
0x1093   :  { %v1644_v14 = vadd.f32 %v3604_v58, %v1615_v12  ;;  %v2455_v12 = vld [vmem:[%s3913_s13 + $0x28] sm:$0xff] }
0x1097   :  { %v2681_v26 = vpop.eup %2680 }
0x1098   :  { %v1902_v61 = vmul.f32 %v2681_v26, %v2669_v35 }
0x109a   :  { %v1904_v44 = vpack.c.bf16 %v1902_v61, %v1901_v60  ;;  %v1617_v32 = vpop.f32.mrf.mxu1 }
0x109b   :  { %v1646_v36 = vadd.f32 %v3606_v20, %v1617_v32 }
0x109c   :  { %2449 = vmatmul.msk.bf16.gmra.mxu2 %vm133_vm0, %v1904_v44 }
0x10d3   :  { %v1620_v3 = vpop.f32.mrf.mxu1 }
0x10d4   :  { %v1649_v20 = vadd.f32 %v3608_v24, %v1620_v3 }
0x10db   :  { %v1622_v27 = vpop.f32.mrf.mxu1 }
0x10dc   :  { %v1651_v45 = vadd.f32 %v3614_v17, %v1622_v27 }
0x10e1   :  { %v1926_v50 = vpop.f32.mrf.mxu2 }
0x10e9   :  { %v1928_v48 = vpop.f32.mrf.mxu2 }
0x10ea   :  { %v1936_v54 = vpack.c.bf16 %v1928_v48, %v1926_v50  ;;  %v1767_v5 = vpop.f32.mrf.mxu0 }
0x10ec   :  { %2450 = vmatmul.msk.bf16.vlgmr.msrb.gmra.mxu0 %vm329_vm14, %v1936_v54 }
0x10f2   :  { %v1769_v49 = vpop.f32.mrf.mxu0 }
0x10f3   :  { %v1777_v19 = vpack.c.bf16 %v1769_v49, %v1767_v5 }
0x10f5   :  { %2444 = vmatmul.msk.bf16.vlgmr.msra.gmra.mxu1 %vm329_vm14, %v1777_v19 }
0x10fa   :  { %v1772_v15 = vpop.f32.mrf.mxu0 }
0x1102   :  { %v1774_v31 = vpop.f32.mrf.mxu0 }
0x1103   :  { %v1778_v10 = vpack.c.bf16 %v1774_v31, %v1772_v15  ;;  %v2456_v15 = vld [vmem:[%s3913_s13 + $0x30] sm:$0xff]  ;;  %v2457_v31 = vld [vmem:[%s3913_s13 + $0x38] sm:$0xff] }
0x1105   :  { %2445 = vmatmul.msk.bf16.gmra.mxu1 %vm329_vm14, %v1778_v10  ;;  %v2098_v10 = vpack.c.bf16 %v2457_v31, %v2456_v15 }
0x1107   :  { %2116 = vmatpush.bf16.msrb.mxu1 %v2098_v10 }
0x111f   :  { %v1931_v13 = vpop.f32.mrf.mxu2 }
0x1127   :  { %v1933_v63 = vpop.f32.mrf.mxu2 }
0x1128   :  { %v1937_v62 = vpack.c.bf16 %v1933_v63, %v1931_v13 }
0x112a   :  { %2451 = vmatmul.msk.bf16.gmra.mxu0 %vm329_vm14, %v1937_v62  ;;  %v2454_v62 = vld [vmem:[%s3913_s13 + $0x20] sm:$0xff]  ;;  %s2831_s13 = smov [#allocation8]  }
0x112b   :  { %v2097_v32 = vpack.c.bf16 %v2455_v12, %v2454_v62  ;;  %v2475_v62 = vld [vmem:[%s3915_s15 + $0xf0] sm:$0xff]  ;;  %s2370_s26 = sshll.u32 %s2831_s13, 4  ;;  %s2371_s26 = int_to_ptr.vmem [resolvable:$true] %s2370_s26 }
0x112d   :  { %2117 = vmatpush.bf16.msrb.mxu1 %v2097_v32  ;;  %v2474_v32 = vld [vmem:[%s3915_s15 + $0xe8] sm:$0xff] }
0x1169   :  { %v1957_v0 = vpop.f32.mrf.mxu0 }
0x1171   :  { %v1959_v58 = vpop.f32.mrf.mxu0 }
0x1172   :  { %v1798_v18 = vpop.f32.mrf.mxu1 }
0x1173   :  { %v1808_v22 = vadd.f32 %v1798_v18, %v1644_v14 }
0x1175   :  { %v1967_v23 = vadd.f32 %v1957_v0, %v1808_v22 }
0x1177   :  { %v1971_v35 = vadd.f32 %v1967_v23, %v3415_v8 }
0x1179   :  { %v3719_v39 = vadd.f32 %v2512_v28, %v1971_v35 }
0x117a   :  { %v1800_v9 = vpop.f32.mrf.mxu1 }
0x117b   :  { %v1809_v6 = vadd.f32 %v1800_v9, %v1646_v36  ;;  %v1988_v38 = vsel %vm133_vm0, %v3719_v39, 0.0 }
0x117c   :  { %1989 = vadd.xlane.f32.xlu2 %v1988_v38 }
0x117d   :  { %v1968_v55 = vadd.f32 %v1959_v58, %v1809_v6 }
0x117f   :  { %v1972_v40 = vadd.f32 %v1968_v55, %v3420_v33 }
0x1181   :  { %v3724_v47 = vadd.f32 %v2512_v28, %v1972_v40 }
0x1182   :  { %v1803_v8 = vpop.f32.mrf.mxu1 }
0x1183   :  { %v1991_v21 = vsel %vm133_vm0, %v3724_v47, 0.0  ;;  %v1810_v2 = vadd.f32 %v1803_v8, %v1649_v20 }
0x1184   :  { %1992 = vadd.xlane.f32.xlu0 %v1991_v21  ;;  %v2513_v21 = vld [vmem:[#allocation7 + $0x1] ss:$0 sm:$0xff] }
0x118a   :  { %v1805_v16 = vpop.f32.mrf.mxu1 }
0x118b   :  { %v1811_v33 = vadd.f32 %v1805_v16, %v1651_v45 }
0x11a7   :  { %v1962_v30 = vpop.f32.mrf.mxu0 }
0x11a8   :  { %v1969_v51 = vadd.f32 %v1962_v30, %v1810_v2  ;;  %v2514_v30 = vld [vmem:[%s3912_s12 + $0x1] ss:$0 sm:$0xff] }
0x11aa   :  { %v1973_v42 = vadd.f32 %v1969_v51, %v3425_v34 }
0x11ac   :  { %v3731_v53 = vadd.f32 %v2512_v28, %v1973_v42 }
0x11ae   :  { %v1994_v25 = vsel %vm133_vm0, %v3731_v53, 0.0 }
0x11af   :  { %1995 = vadd.xlane.f32.xlu2 %v1994_v25  ;;  %v1964_v56 = vpop.f32.mrf.mxu0 }
0x11b0   :  { %v1970_v46 = vadd.f32 %v1964_v56, %v1811_v33 }
0x11b2   :  { %v1974_v59 = vadd.f32 %v1970_v46, %v3430_v43 }
0x11b4   :  { %v3736_v24 = vadd.f32 %v2512_v28, %v1974_v59 }
0x11b6   :  { %v1997_v52 = vsel %vm133_vm0, %v3736_v24, 0.0 }
0x11b7   :  { %1998 = vadd.xlane.f32.xlu0 %v1997_v52 }
0x11ef   :  { %v1990_v34 = vpop.xlane.xlu2 %1989 }
0x11f0   :  { %v2000_v17 = vmul.f32 %v1990_v34, %v2999_v37 }
0x11f2   :  { %v2004_v29 = vsub.f32 %v3719_v39, %v2000_v17 }
0x11f4   :  { %v2008_v26 = vmul.f32 %v2004_v29, %v2004_v29 }
0x11f6   :  { %v2012_v60 = vsel %vm133_vm0, %v2008_v26, 0.0 }
0x11f7   :  { %2013 = vadd.xlane.f32.xlu1 %v2012_v60  ;;  %v1993_v61 = vpop.xlane.xlu0 %1992 }
0x11f8   :  { %v2001_v44 = vmul.f32 %v1993_v61, %v2999_v37 }
0x11fa   :  { %v2005_v43 = vsub.f32 %v3724_v47, %v2001_v44 }
0x11fc   :  { %v2009_v4 = vmul.f32 %v2005_v43, %v2005_v43 }
0x11fe   :  { %v2015_v7 = vsel %vm133_vm0, %v2009_v4, 0.0 }
0x11ff   :  { %2016 = vadd.xlane.f32.xlu2 %v2015_v7 }
0x1222   :  { %v1996_v41 = vpop.xlane.xlu2 %1995 }
0x1223   :  { %v2002_v11 = vmul.f32 %v1996_v41, %v2999_v37 }
0x1225   :  { %v3748_v57 = vsub.f32 %v3731_v53, %v2002_v11 }
0x1227   :  { %v2010_v1 = vmul.f32 %v3748_v57, %v3748_v57 }
0x1229   :  { %v2018_v50 = vsel %vm133_vm0, %v2010_v1, 0.0 }
0x122a   :  { %2019 = vadd.xlane.f32.xlu0 %v2018_v50  ;;  %v1999_v48 = vpop.xlane.xlu0 %1998 }
0x122b   :  { %v2003_v54 = vmul.f32 %v1999_v48, %v2999_v37 }
0x122d   :  { %v3755_v5 = vsub.f32 %v3736_v24, %v2003_v54 }
0x122f   :  { %v2011_v49 = vmul.f32 %v3755_v5, %v3755_v5 }
0x1231   :  { %v2021_v19 = vsel %vm133_vm0, %v2011_v49, 0.0 }
0x1232   :  { %2022 = vadd.xlane.f32.xlu1 %v2021_v19 }
0x126a   :  { %v2014_v13 = vpop.xlane.xlu1 %2013 }
0x126b   :  { %v2024_v63 = vmul.f32 %v2014_v13, %v2999_v37 }
0x126d   :  { %v2028_v3 = vadd.f32 1e-05, %v2024_v63 }
0x126f   :  { %2682 = vrsqrt.f32 %v2028_v3  ;;  %vm2038_vm15 = vweird.f32 %v2028_v3 }
0x1272   :  { %v2017_v27 = vpop.xlane.xlu2 %2016 }
0x1273   :  { %v2025_v14 = vmul.f32 %v2017_v27, %v2999_v37  ;;  %v2471_v27 = vld [vmem:[%s3915_s15 + $0xd0] sm:$0xff] }
0x1275   :  { %v2683_v0 = vpop.eup %2682  ;;  %v2029_v18 = vadd.f32 1e-05, %v2025_v14  ;;  %v2472_v14 = vld [vmem:[%s3915_s15 + $0xd8] sm:$0xff] }
0x1276   :  { %v2033_v22 = vmul.f32 %v2683_v0, %v2028_v3  ;;  %vm2039_vm14 = vweird.f32 %v2683_v0 }
0x1277   :  { %2684 = vrsqrt.f32 %v2029_v18  ;;  %vm2040_vm12 = vmor %vm2038_vm15, %vm2039_vm14  ;;  %vm2048_vm1 = vweird.f32 %v2029_v18 }
0x1278   :  { %v2034_v23 = vmul.f32 %v2683_v0, %v2033_v22  ;;  %v2470_v22 = vld [vmem:[%s3915_s15 + $0xc8] sm:$0xff] }
0x127a   :  { %v2035_v28 = vmul.f32 0.5, %v2034_v23 }
0x127c   :  { %v2036_v35 = vsub.f32 1.5, %v2035_v28  ;;  %v2467_v28 = vld [vmem:[%s3915_s15 + $0xb0] sm:$0xff] }
0x127d   :  { %v2685_v36 = vpop.eup %2684 }
0x127e   :  { %v2037_v9 = vmul.f32 %v2683_v0, %v2036_v35  ;;  %v2043_v6 = vmul.f32 %v2685_v36, %v2029_v18  ;;  %vm2049_vm13 = vweird.f32 %v2685_v36  ;;  %v2469_v18 = vld [vmem:[%s3915_s15 + $0xc0] sm:$0xff]  ;;  %v2468_v35 = vld [vmem:[%s3915_s15 + $0xb8] sm:$0xff] }
0x127f   :  { %vm2050_vm2 = vmor %vm2048_vm1, %vm2049_vm13  ;;  %v2188_v23 = vpack.c.bf16 %v2470_v22, %v2469_v18 }
0x1280   :  { %v2044_v38 = vmul.f32 %v2685_v36, %v2043_v6  ;;  %v2041_v58 = vsel %vm2040_vm12, %v2683_v0, %v2037_v9  ;;  %v2189_v0 = vpack.c.bf16 %v2472_v14, %v2471_v27  ;;  %v2465_v9 = vld [vmem:[%s3915_s15 + $0xa0] sm:$0xff]  ;;  %v2466_v6 = vld [vmem:[%s3915_s15 + $0xa8] sm:$0xff] }
0x1281   :  { %v2072_v8 = vmul.f32 %v2041_v58, %v2004_v29  ;;  %v2463_v58 = vld [vmem:[%s3915_s15 + $0x90] sm:$0xff] }
0x1282   :  { %v2045_v55 = vmul.f32 0.5, %v2044_v38  ;;  %v2186_v38 = vpack.c.bf16 %v2466_v6, %v2465_v9 }
0x1283   :  { %v2079_v51 = vmul.f32 %v2513_v21, %v2072_v8  ;;  %v2462_v8 = vld [vmem:[%s3915_s15 + $0x88] sm:$0xff] }
0x1284   :  { %v2046_v40 = vsub.f32 1.5, %v2045_v55  ;;  %v2464_v55 = vld [vmem:[%s3915_s15 + $0x98] sm:$0xff] }
0x1285   :  { %v2086_v45 = vadd.f32 %v2514_v30, %v2079_v51 }
0x1286   :  { %v2047_v20 = vmul.f32 %v2685_v36, %v2046_v40  ;;  %v2185_v40 = vpack.c.bf16 %v2464_v55, %v2463_v58 }
0x1288   :  { %v2051_v2 = vsel %vm2050_vm2, %v2685_v36, %v2047_v20  ;;  %v2187_v36 = vpack.c.bf16 %v2468_v35, %v2467_v28  ;;  %v2515_v20 = vld [vmem:[%s3914_s14 + $0x1] ss:$0 sm:$0xff] }
0x1289   :  { %v2073_v42 = vmul.f32 %v2051_v2, %v2005_v43  ;;  %v2516_v28 = vld [vmem:[%s3916_s16 + $0x1] ss:$0 sm:$0xff] }
0x128b   :  { %v2080_v16 = vmul.f32 %v2513_v21, %v2073_v42 }
0x128d   :  { %v2087_v33 = vadd.f32 %v2514_v30, %v2080_v16 }
0x128f   :  { %v2095_v25 = vpack.c.bf16 %v2087_v33, %v2086_v45 }
0x1291   :  { %2459 = vmatmul.msk.bf16.vlgmr.msrb.gmra.mxu1 %vm133_vm0, %v2095_v25 }
0x129d   :  { %v2020_v56 = vpop.xlane.xlu0 %2019 }
0x129e   :  { %v2026_v46 = vmul.f32 %v2020_v56, %v2999_v37 }
0x12a0   :  { %v2030_v59 = vadd.f32 1e-05, %v2026_v46 }
0x12a2   :  { %2686 = vrsqrt.f32 %v2030_v59  ;;  %vm2058_vm4 = vweird.f32 %v2030_v59 }
0x12a5   :  { %v2023_v52 = vpop.xlane.xlu1 %2022 }
0x12a6   :  { %v2027_v34 = vmul.f32 %v2023_v52, %v2999_v37 }
0x12a8   :  { %v2687_v17 = vpop.eup %2686  ;;  %v2031_v29 = vadd.f32 1e-05, %v2027_v34 }
0x12a9   :  { %v2053_v26 = vmul.f32 %v2687_v17, %v2030_v59  ;;  %vm2059_vm3 = vweird.f32 %v2687_v17 }
0x12aa   :  { %2688 = vrsqrt.f32 %v2031_v29  ;;  %vm2060_vm5 = vmor %vm2058_vm4, %vm2059_vm3  ;;  %vm2068_vm7 = vweird.f32 %v2031_v29 }
0x12ab   :  { %v2054_v60 = vmul.f32 %v2687_v17, %v2053_v26 }
0x12ad   :  { %v2055_v61 = vmul.f32 0.5, %v2054_v60 }
0x12af   :  { %v2056_v44 = vsub.f32 1.5, %v2055_v61 }
0x12b0   :  { %v2689_v43 = vpop.eup %2688 }
0x12b1   :  { %v2057_v4 = vmul.f32 %v2687_v17, %v2056_v44  ;;  %v2063_v7 = vmul.f32 %v2689_v43, %v2031_v29  ;;  %vm2069_vm6 = vweird.f32 %v2689_v43 }
0x12b2   :  { %vm2070_vm8 = vmor %vm2068_vm7, %vm2069_vm6  ;;  %vm2361_vm6 = vcmask 392192  }
0x12b3   :  { %v2064_v41 = vmul.f32 %v2689_v43, %v2063_v7  ;;  %v2061_v11 = vsel %vm2060_vm5, %v2687_v17, %v2057_v4 }
0x12b4   :  { %v2074_v48 = vmul.f32 %v2061_v11, %v3748_v57  ;;  %v2476_v57 = vld [vmem:[%s3915_s15 + $0xf8] sm:$0xff] }
0x12b5   :  { %v2065_v1 = vmul.f32 0.5, %v2064_v41  ;;  %v2191_v12 = vpack.c.bf16 %v2476_v57, %v2475_v62 }
0x12b6   :  { %v2081_v15 = vmul.f32 %v2513_v21, %v2074_v48 }
0x12b7   :  { %v2066_v50 = vsub.f32 1.5, %v2065_v1  ;;  %2197 = vmatpush.bf16.msrb.mxu3 %v2191_v12 }
0x12b8   :  { %v2088_v10 = vadd.f32 %v2514_v30, %v2081_v15 }
0x12b9   :  { %v2067_v54 = vmul.f32 %v2689_v43, %v2066_v50 }
0x12bb   :  { %v2071_v49 = vsel %vm2070_vm8, %v2689_v43, %v2067_v54 }
0x12bc   :  { %v2075_v19 = vmul.f32 %v2071_v49, %v3755_v5  ;;  %v2473_v5 = vld [vmem:[%s3915_s15 + $0xe0] sm:$0xff] }
0x12bd   :  { %v2190_v3 = vpack.c.bf16 %v2474_v32, %v2473_v5 }
0x12be   :  { %v2082_v31 = vmul.f32 %v2513_v21, %v2075_v19  ;;  %v2461_v21 = vld [vmem:[%s3915_s15 + $0x80] sm:$0xff] }
0x12bf   :  { %2198 = vmatpush.bf16.msrb.mxu3 %v2190_v3  ;;  %v2184_v2 = vpack.c.bf16 %v2462_v8, %v2461_v21 }
0x12c0   :  { %v2089_v13 = vadd.f32 %v2514_v30, %v2082_v31 }
0x12c2   :  { %v2096_v63 = vpack.c.bf16 %v2089_v13, %v2088_v10 }
0x12c3   :  { %2199 = vmatpush.bf16.msrb.mxu3 %v2189_v0 }
0x12c4   :  { %2460 = vmatmul.msk.bf16.gmra.mxu1 %vm133_vm0, %v2096_v63 }
0x12c7   :  { %2200 = vmatpush.bf16.msrb.mxu3 %v2188_v23 }
0x12cb   :  { %2201 = vmatpush.bf16.msrb.mxu3 %v2187_v36 }
0x12cf   :  { %2202 = vmatpush.bf16.msrb.mxu3 %v2186_v38 }
0x12d3   :  { %2203 = vmatpush.bf16.msrb.mxu3 %v2185_v40 }
0x12d7   :  { %2204 = vmatpush.bf16.msrb.mxu3 %v2184_v2 }
0x130e   :  { %v2119_v30 = vpop.f32.mrf.mxu1 }
0x130f   :  { %v2120_v51 = vadd.f32 %v2515_v20, %v2119_v30 }
0x1311   :  { %v2133_v42 = vmul.f32 0.044715, %v2120_v51  ;;  %v2129_v44 = vmul.f32 0.5, %v2120_v51 }
0x1313   :  { %v2137_v16 = vmul.f32 %v2133_v42, %v2120_v51 }
0x1315   :  { %v2141_v45 = vmul.f32 %v2137_v16, %v2120_v51 }
0x1316   :  { %v2121_v33 = vpop.f32.mrf.mxu1 }
0x1317   :  { %v2145_v25 = vadd.f32 %v2141_v45, %v2120_v51  ;;  %v2122_v56 = vadd.f32 %v2515_v20, %v2121_v33 }
0x1319   :  { %v2134_v46 = vmul.f32 0.044715, %v2122_v56  ;;  %v2149_v59 = vmul.f32 0.7978846, %v2145_v25  ;;  %v2130_v43 = vmul.f32 0.5, %v2122_v56 }
0x131b   :  { %v2138_v52 = vmul.f32 %v2134_v46, %v2122_v56  ;;  %2690 = vtanh.f32 %v2149_v59 }
0x131d   :  { %v2142_v34 = vmul.f32 %v2138_v52, %v2122_v56 }
0x131f   :  { %v2146_v17 = vadd.f32 %v2142_v34, %v2122_v56 }
0x1321   :  { %v2150_v29 = vmul.f32 0.7978846, %v2146_v17  ;;  %v2691_v26 = vpop.eup %2690 }
0x1322   :  { %v2157_v60 = vadd.f32 1.0, %v2691_v26 }
0x1323   :  { %2692 = vtanh.f32 %v2150_v29 }
0x1324   :  { %v2161_v7 = vmul.f32 %v2157_v60, %v2129_v44 }
0x1329   :  { %v2693_v61 = vpop.eup %2692 }
0x132a   :  { %v2158_v4 = vadd.f32 1.0, %v2693_v61 }
0x132c   :  { %v2162_v41 = vmul.f32 %v2158_v4, %v2130_v43 }
0x132e   :  { %v2182_v11 = vpack.c.bf16 %v2162_v41, %v2161_v7  ;;  %v2326_v7 = vld [vmem:[%s3919_s19 + $0x10] sm:$0xff]  ;;  %v2327_v41 = vld [vmem:[%s3919_s19 + $0x18] sm:$0xff] }
0x1330   :  { %2205 = vmatmul.bf16.vlgmr.msrb.gmra.mxu3 %v2182_v11  ;;  %v2331_v11 = vpack.c.bf16 %v2327_v41, %v2326_v7  ;;  %v2519_v7 = vld [vmem:[%s3920_s20] ss:$0 sm:$0xff]  ;;  %s3958_s20 = smov 8  }
0x1332   :  { %2348 = vmatpush.bf16.msrb.mxu2 %v2331_v11 }
0x1341   :  { %v2124_v1 = vpop.f32.mrf.mxu1 }
0x1342   :  { %v2125_v50 = vadd.f32 %v2515_v20, %v2124_v1 }
0x1344   :  { %v2135_v48 = vmul.f32 0.044715, %v2125_v50  ;;  %v2131_v27 = vmul.f32 0.5, %v2125_v50 }
0x1346   :  { %v2139_v54 = vmul.f32 %v2135_v48, %v2125_v50  ;;  %v2324_v48 = vld [vmem:[%s3919_s19] sm:$0xff] }
0x1348   :  { %v2143_v49 = vmul.f32 %v2139_v54, %v2125_v50  ;;  %v2325_v54 = vld [vmem:[%s3919_s19 + $0x8] sm:$0xff] }
0x1349   :  { %v2126_v19 = vpop.f32.mrf.mxu1 }
0x134a   :  { %v2127_v15 = vadd.f32 %v2515_v20, %v2126_v19  ;;  %v2147_v31 = vadd.f32 %v2143_v49, %v2125_v50  ;;  %v2330_v49 = vpack.c.bf16 %v2325_v54, %v2324_v48 }
0x134c   :  { %v2136_v10 = vmul.f32 0.044715, %v2127_v15  ;;  %v2151_v63 = vmul.f32 0.7978846, %v2147_v31  ;;  %v2132_v14 = vmul.f32 0.5, %v2127_v15  ;;  %2349 = vmatpush.bf16.msrb.mxu2 %v2330_v49 }
0x134e   :  { %v2140_v13 = vmul.f32 %v2136_v10, %v2127_v15  ;;  %2694 = vtanh.f32 %v2151_v63 }
0x1350   :  { %v2144_v62 = vmul.f32 %v2140_v13, %v2127_v15 }
0x1352   :  { %v2148_v57 = vadd.f32 %v2144_v62, %v2127_v15 }
0x1354   :  { %v2152_v12 = vmul.f32 0.7978846, %v2148_v57  ;;  %v2695_v5 = vpop.eup %2694 }
0x1355   :  { %v2159_v32 = vadd.f32 1.0, %v2695_v5 }
0x1356   :  { %2696 = vtanh.f32 %v2152_v12 }
0x1357   :  { %v2163_v18 = vmul.f32 %v2159_v32, %v2131_v27 }
0x135c   :  { %v2697_v3 = vpop.eup %2696 }
0x135d   :  { %v2160_v0 = vadd.f32 1.0, %v2697_v3 }
0x135f   :  { %v2164_v22 = vmul.f32 %v2160_v0, %v2132_v14 }
0x1361   :  { %v2183_v23 = vpack.c.bf16 %v2164_v22, %v2163_v18  ;;  %v2517_v22 = vld [vmem:[%s3917_s17] ss:$0 sm:$0xff] }
0x1363   :  { %2210 = vmatmul.bf16.gmra.mxu3 %v2183_v23 }
0x13b3   :  { %v2206_v35 = vpop.f32.mrf.mxu3 }
0x13b4   :  { %v2207_v36 = vadd.f32 %v2516_v28, %v2206_v35 }
0x13b6   :  { %v2216_v9 = vadd.f32 %v2207_v36, %v3719_v39  ;;  %v2518_v36 = vld [vmem:[%s3918_s18] ss:$0 sm:$0xff] }
0x13b8   :  { %v2222_v6 = vsel %vm133_vm0, %v2216_v9, 0.0 }
0x13b9   :  { %2223 = vadd.xlane.f32.xlu2 %v2222_v6 }
0x13bb   :  { %v2208_v38 = vpop.f32.mrf.mxu3 }
0x13bc   :  { %v2209_v58 = vadd.f32 %v2516_v28, %v2208_v38 }
0x13be   :  { %v2217_v55 = vadd.f32 %v2209_v58, %v3724_v47 }
0x13c0   :  { %v2225_v40 = vsel %vm133_vm0, %v2217_v55, 0.0 }
0x13c1   :  { %2226 = vadd.xlane.f32.xlu0 %v2225_v40 }
0x13e6   :  { %v2211_v21 = vpop.f32.mrf.mxu3 }
0x13e7   :  { %v2212_v8 = vadd.f32 %v2516_v28, %v2211_v21 }
0x13e9   :  { %v2218_v20 = vadd.f32 %v2212_v8, %v3731_v53 }
0x13eb   :  { %v2228_v2 = vsel %vm133_vm0, %v2218_v20, 0.0 }
0x13ec   :  { %2229 = vadd.xlane.f32.xlu1 %v2228_v2 }
0x13ee   :  { %v2213_v30 = vpop.f32.mrf.mxu3 }
0x13ef   :  { %v2214_v51 = vadd.f32 %v2516_v28, %v2213_v30 }
0x13f1   :  { %v2219_v39 = vadd.f32 %v2214_v51, %v3736_v24 }
0x13f3   :  { %v2231_v42 = vsel %vm133_vm0, %v2219_v39, 0.0 }
0x13f4   :  { %2232 = vadd.xlane.f32.xlu2 %v2231_v42 }
0x142c   :  { %v2224_v16 = vpop.xlane.xlu2 %2223 }
0x142d   :  { %v2234_v47 = vmul.f32 %v2224_v16, %v2999_v37 }
0x142f   :  { %v2238_v45 = vsub.f32 %v2216_v9, %v2234_v47 }
0x1431   :  { %v2242_v33 = vmul.f32 %v2238_v45, %v2238_v45 }
0x1433   :  { %v2246_v25 = vsel %vm133_vm0, %v2242_v33, 0.0 }
0x1434   :  { %2247 = vadd.xlane.f32.xlu0 %v2246_v25  ;;  %v2227_v56 = vpop.xlane.xlu0 %2226 }
0x1435   :  { %v2235_v53 = vmul.f32 %v2227_v56, %v2999_v37 }
0x1437   :  { %v2239_v46 = vsub.f32 %v2217_v55, %v2235_v53 }
0x1439   :  { %v2243_v59 = vmul.f32 %v2239_v46, %v2239_v46 }
0x143b   :  { %v2249_v52 = vsel %vm133_vm0, %v2243_v59, 0.0 }
0x143c   :  { %2250 = vadd.xlane.f32.xlu1 %v2249_v52 }
0x145f   :  { %v2230_v24 = vpop.xlane.xlu1 %2229 }
0x1460   :  { %v2236_v34 = vmul.f32 %v2230_v24, %v2999_v37 }
0x1462   :  { %v3850_v17 = vsub.f32 %v2218_v20, %v2236_v34 }
0x1464   :  { %v2244_v29 = vmul.f32 %v3850_v17, %v3850_v17 }
0x1466   :  { %v2252_v26 = vsel %vm133_vm0, %v2244_v29, 0.0 }
0x1467   :  { %v2233_v60 = vpop.xlane.xlu2 %2232  ;;  %2253 = vadd.xlane.f32.xlu2 %v2252_v26 }
0x1468   :  { %v2237_v61 = vmul.f32 %v2233_v60, %v2999_v37 }
0x146a   :  { %v3856_v44 = vsub.f32 %v2219_v39, %v2237_v61 }
0x146c   :  { %v2245_v43 = vmul.f32 %v3856_v44, %v3856_v44 }
0x146e   :  { %v2255_v4 = vsel %vm133_vm0, %v2245_v43, 0.0 }
0x146f   :  { %2256 = vadd.xlane.f32.xlu0 %v2255_v4 }
0x14a7   :  { %v2248_v1 = vpop.xlane.xlu0 %2247 }
0x14a8   :  { %v2258_v50 = vmul.f32 %v2248_v1, %v2999_v37 }
0x14aa   :  { %v2262_v19 = vadd.f32 1e-05, %v2258_v50 }
0x14ac   :  { %2698 = vrsqrt.f32 %v2262_v19  ;;  %vm2272_vm10 = vweird.f32 %v2262_v19 }
0x14af   :  { %v2251_v15 = vpop.xlane.xlu1 %2250 }
0x14b0   :  { %v2259_v31 = vmul.f32 %v2251_v15, %v2999_v37 }
0x14b2   :  { %v2699_v10 = vpop.eup %2698  ;;  %v2263_v13 = vadd.f32 1e-05, %v2259_v31 }
0x14b3   :  { %v2267_v63 = vmul.f32 %v2699_v10, %v2262_v19  ;;  %vm2273_vm9 = vweird.f32 %v2699_v10 }
0x14b4   :  { %2700 = vrsqrt.f32 %v2263_v13  ;;  %vm2274_vm11 = vmor %vm2272_vm10, %vm2273_vm9  ;;  %vm2282_vm15 = vweird.f32 %v2263_v13 }
0x14b5   :  { %v2268_v62 = vmul.f32 %v2699_v10, %v2267_v63 }
0x14b7   :  { %v2269_v57 = vmul.f32 0.5, %v2268_v62 }
0x14b9   :  { %v2270_v12 = vsub.f32 1.5, %v2269_v57 }
0x14ba   :  { %v2701_v5 = vpop.eup %2700 }
0x14bb   :  { %v2271_v32 = vmul.f32 %v2699_v10, %v2270_v12  ;;  %v2277_v3 = vmul.f32 %v2701_v5, %v2263_v13  ;;  %vm2283_vm14 = vweird.f32 %v2701_v5 }
0x14bc   :  { %vm2284_vm12 = vmor %vm2282_vm15, %vm2283_vm14 }
0x14bd   :  { %v2278_v27 = vmul.f32 %v2701_v5, %v2277_v3  ;;  %v2275_v14 = vsel %vm2274_vm11, %v2699_v10, %v2271_v32 }
0x14be   :  { %v2306_v23 = vmul.f32 %v2275_v14, %v2238_v45 }
0x14bf   :  { %v2279_v0 = vmul.f32 0.5, %v2278_v27 }
0x14c0   :  { %v2313_v9 = vmul.f32 %v2517_v22, %v2306_v23 }
0x14c1   :  { %v2280_v18 = vsub.f32 1.5, %v2279_v0 }
0x14c2   :  { %v2320_v58 = vadd.f32 %v2518_v36, %v2313_v9 }
0x14c3   :  { %v2281_v28 = vmul.f32 %v2701_v5, %v2280_v18 }
0x14c5   :  { %v2285_v35 = vsel %vm2284_vm12, %v2701_v5, %v2281_v28 }
0x14c6   :  { %v2307_v6 = vmul.f32 %v2285_v35, %v2239_v46 }
0x14c8   :  { %v2314_v38 = vmul.f32 %v2517_v22, %v2307_v6 }
0x14ca   :  { %v2321_v55 = vadd.f32 %v2518_v36, %v2314_v38 }
0x14cc   :  { %v2328_v40 = vpack.c.bf16 %v2321_v55, %v2320_v58 }
0x14ce   :  { %2478 = vmatmul.msk.bf16.vlgmr.msrb.gmra.mxu2 %vm133_vm0, %v2328_v40 }
0x14da   :  { %v2254_v21 = vpop.xlane.xlu2 %2253 }
0x14db   :  { %v2260_v8 = vmul.f32 %v2254_v21, %v2999_v37 }
0x14dd   :  { %v2264_v20 = vadd.f32 1e-05, %v2260_v8 }
0x14df   :  { %2702 = vrsqrt.f32 %v2264_v20  ;;  %vm2292_vm1 = vweird.f32 %v2264_v20 }
0x14e2   :  { %v2257_v2 = vpop.xlane.xlu0 %2256 }
0x14e3   :  { %v2261_v30 = vmul.f32 %v2257_v2, %v2999_v37 }
0x14e5   :  { %v2703_v51 = vpop.eup %2702  ;;  %v2265_v39 = vadd.f32 1e-05, %v2261_v30 }
0x14e6   :  { %v2287_v42 = vmul.f32 %v2703_v51, %v2264_v20  ;;  %vm2293_vm13 = vweird.f32 %v2703_v51 }
0x14e7   :  { %2704 = vrsqrt.f32 %v2265_v39  ;;  %vm2294_vm2 = vmor %vm2292_vm1, %vm2293_vm13  ;;  %vm2302_vm4 = vweird.f32 %v2265_v39 }
0x14e8   :  { %v2288_v16 = vmul.f32 %v2703_v51, %v2287_v42 }
0x14ea   :  { %v2289_v47 = vmul.f32 0.5, %v2288_v16 }
0x14ec   :  { %v2290_v45 = vsub.f32 1.5, %v2289_v47 }
0x14ed   :  { %v2705_v33 = vpop.eup %2704 }
0x14ee   :  { %v2291_v25 = vmul.f32 %v2703_v51, %v2290_v45  ;;  %v2297_v56 = vmul.f32 %v2705_v33, %v2265_v39  ;;  %vm2303_vm3 = vweird.f32 %v2705_v33 }
0x14ef   :  { %vm2304_vm5 = vmor %vm2302_vm4, %vm2303_vm3 }
0x14f0   :  { %v2298_v53 = vmul.f32 %v2705_v33, %v2297_v56  ;;  %v2295_v46 = vsel %vm2294_vm2, %v2703_v51, %v2291_v25 }
0x14f1   :  { %v2308_v37 = vmul.f32 %v2295_v46, %v3850_v17 }
0x14f2   :  { %v2299_v59 = vmul.f32 0.5, %v2298_v53 }
0x14f3   :  { %v2315_v26 = vmul.f32 %v2517_v22, %v2308_v37 }
0x14f4   :  { %v2300_v52 = vsub.f32 1.5, %v2299_v59 }
0x14f5   :  { %v2322_v61 = vadd.f32 %v2518_v36, %v2315_v26 }
0x14f6   :  { %v2301_v24 = vmul.f32 %v2705_v33, %v2300_v52 }
0x14f8   :  { %v2305_v34 = vsel %vm2304_vm5, %v2705_v33, %v2301_v24 }
0x14f9   :  { %v2309_v29 = vmul.f32 %v2305_v34, %v3856_v44 }
0x14fb   :  { %v2316_v60 = vmul.f32 %v2517_v22, %v2309_v29 }
0x14fd   :  { %v2323_v43 = vadd.f32 %v2518_v36, %v2316_v60 }
0x14ff   :  { %v2329_v4 = vpack.c.bf16 %v2323_v43, %v2322_v61 }
0x1501   :  { %2479 = vmatmul.msk.bf16.gmra.mxu2 %vm133_vm0, %v2329_v4 }
0x1551   :  { %v2351_v41 = vpop.f32.mrf.mxu2 }
0x1552   :  { %v2352_v17 = vadd.f32 %v2519_v7, %v2351_v41 }
0x1554   :  { %2362 = vst.msk [vmem:[#allocation8] sm:$0xff] %vm2361_vm6, %v2352_v17 }
0x1559   :  { %v2353_v11 = vpop.f32.mrf.mxu2 }
0x155a   :  { %v2354_v1 = vadd.f32 %v2519_v7, %v2353_v11 }
0x155c   :  { %2363 = vst.msk [vmem:[#allocation8 + $0x8] sm:$0xff] %vm2361_vm6, %v2354_v1 }
0x1584   :  { %v2356_v44 = vpop.f32.mrf.mxu2 }
0x1585   :  { %v2357_v50 = vadd.f32 %v2519_v7, %v2356_v44 }
0x1587   :  { %2364 = vst.msk [vmem:[#allocation8 + $0x10] sm:$0xff] %vm2361_vm6, %v2357_v50 }
0x158c   :  { %v2358_v48 = vpop.f32.mrf.mxu2 }
0x158d   :  { %v2359_v54 = vadd.f32 %v2519_v7, %v2358_v48 }
0x158f   :  { %2365 = vst.msk [vmem:[#allocation8 + $0x18] sm:$0xff] %vm2361_vm6, %v2359_v54 }
0x1590   :  { %2378 = dma.vmem_to_hbm [thread:$0]  %s2371_s26, 512, %s2373_s4, [#allocation4], %s3959_s27, %s3959_s27, %s3958_s20  }
0x1591   :  { %2810 = dma.done.wait [#allocation4], 512  }
0x1592   :  { %2811 = vsyncadd [#allocation4], 4294966784 }
0x1593   :  { %2383 = vsyncpa [#allocation3], 1 }
0x1594   :  { %2384 = vsyncpa [#allocation6], 1 }
0x1595   :  { %2385 = vsyncpa [#allocation4], 1 }

</bundles_post_ra>
